<compile_context>
chip_gen: v5e
topology: v5e:2x2
jax: 0.10.0
libtpu: 0.0.40
codegen_flags: <defaults>
</compile_context>

<pallas_src>
import functools

import jax
import jax.numpy as jnp
from jax.experimental import pallas as pl
from jax.experimental.pallas import tpu as pltpu


def _round_up(x, m):
    return ((x + m - 1) // m) * m


def _vmem_capacity_bytes():
    try:
        return int(pltpu.get_tpu_info().vmem_capacity_bytes)
    except Exception:
        return 64 * 1024 * 1024  # conservative (v7x per-core physical VMEM)


def _per_row_vmem_bytes(d, k):
    # Double-buffered x/q/enc pipeline blocks + in-kernel (TM,K)/(TM,D) f32
    # temporaries (xw, dist, iota, enc, diffs, casts), per tile row.
    return 4 * (2 * d + 2 * d + 2 * k + 4 * k + 4 * d)


def _fixed_vmem_bytes(d, k, kp):
    # Resident codebook + ||w||^2 (double-buffered by default) + partial out.
    return 4 * (2 * k * d + 2 * k + 2 * kp) + (2 << 20)


def _choose_tm(m, d, k, kp, tm_cap, vmem_capacity):
    budget = max(vmem_capacity // 2, 8 << 20)
    tm = max((budget - _fixed_vmem_bytes(d, k, kp)) // _per_row_vmem_bytes(d, k), 8)
    tm = min(tm, 2048)
    if tm_cap is not None:
        tm = min(tm, max(int(tm_cap), 8))
    if tm >= 128:
        tm = (tm // 128) * 128
        tm = min(tm, _round_up(m, 128))
    else:
        tm = max((tm // 8) * 8, 8)
        tm = min(tm, _round_up(m, 8))
    return int(max(tm, 8))


def _vmem_limit_bytes(tm, d, k, kp, capacity):
    need = _per_row_vmem_bytes(d, k) * tm + _fixed_vmem_bytes(d, k, kp)
    limit = max(32 << 20, 2 * need)
    return int(min(limit, max(capacity - (4 << 20), 16 << 20)))


def _vq_kernel(x_ref, w_ref, wsq_ref, q_ref, enc_ref, part_ref, *,
               m_total, tm, k, compute_dtype):
    """One (TM, D) row-tile of the VQ lookup.

    x_ref    : (TM, D)  activation-dtype flattened inputs tile  (VMEM in)
    w_ref    : (K, D)   codebook in compute dtype (resident)    (VMEM in)
    wsq_ref  : (1, K)   f32 precomputed ||w_k||^2 (resident)    (VMEM in)
    q_ref    : (TM, D)  quantized rows (activation dtype)       (VMEM out)
    enc_ref  : (TM, K)  f32 one-hot encodings                   (VMEM out)
    part_ref : (1,1,KP) f32 [counts_0..K-1 | SSE | 0-pad]       (VMEM out)
    """
    i = pl.program_id(0)
    last = pl.num_programs(0) - 1

    x = x_ref[...].astype(jnp.float32)                        # (TM, D)
    w = w_ref[...]                                            # (K, D) compute dtype
    w_sq = wsq_ref[...]                                       # (1, K) f32
    TM = x.shape[0]

    # ||x||^2 per row (VPU/XLU, f32).
    x_sq = jnp.sum(x * x, axis=1, keepdims=True)              # (TM, 1)
    # x @ w^T on the MXU (bf16 inputs when enabled, f32 accumulation).
    xw = jax.lax.dot_general(
        x.astype(compute_dtype), w, (((1,), (1,)), ((), ())),
        preferred_element_type=jnp.float32)                   # (TM, K)
    dist = x_sq + w_sq - 2.0 * xw                             # (TM, K)

    # argmin over K with first-index tie-breaking (matches torch.argmin).
    min_d = jnp.min(dist, axis=1, keepdims=True)              # (TM, 1)
    iota_k = jax.lax.broadcasted_iota(jnp.int32, (TM, k), 1)  # (TM, K)
    idx = jnp.min(jnp.where(dist == min_d, iota_k, k), axis=1,
                  keepdims=True)                              # (TM, 1) i32
    enc = (iota_k == idx).astype(jnp.float32)                 # (TM, K)

    # quantized = one_hot @ codebook (second MXU matmul).
    q = jax.lax.dot_general(
        enc.astype(compute_dtype), w, (((1,), (0,)), ((), ())),
        preferred_element_type=jnp.float32)                   # (TM, D)

    q_ref[...] = q.astype(q_ref.dtype)
    enc_ref[...] = enc

    def emit_partials(valid):
        if valid is None:
            diff = q - x
            enc_m = enc
        else:
            diff = (q - x) * valid
            enc_m = enc * valid
        counts = jnp.sum(enc_m, axis=0, keepdims=True)        # (1, K)
        sse = jnp.sum(diff * diff, keepdims=True)             # (1, 1)
        part_ref[...] = jnp.zeros_like(part_ref)
        part_ref[0, :, 0:k] = counts
        part_ref[0, :, k:k + 1] = sse

    # Interior tiles: no tail padding -> unmasked partials (cheaper).
    @pl.when(i < last)
    def _():
        emit_partials(None)

    # Last tile only: mask out padded rows (rows >= m_total).
    @pl.when(i == last)
    def _():
        row = jax.lax.broadcasted_iota(jnp.int32, (TM, 1), 0) + i * tm
        emit_partials((row < m_total).astype(jnp.float32))


def vector_quantizer_forward(x_nchw, weight, commitment_cost, *, tm=None,
                             use_bf16_mxu=True):
    """Mirrors VectorQuantizer.forward.

    Returns (loss, quantized_nchw, perplexity, encodings[M, 1, K]).
    """
    N, C, H, W = x_nchw.shape
    D = C
    K = weight.shape[0]
    KP = _round_up(K + 1, 128)                      # counts + SSE, lane-padded

    x_nhwc = jnp.transpose(x_nchw, (0, 2, 3, 1))    # NCHW -> NHWC
    flat = x_nhwc.reshape(-1, D)                    # (M, D), activation dtype
    M = flat.shape[0]

    w_f32 = weight.astype(jnp.float32)
    w_sq = jnp.sum(w_f32 * w_f32, axis=1)[None, :]  # (1, K) exact f32
    compute_dtype = jnp.bfloat16 if use_bf16_mxu else jnp.float32
    w_dev = w_f32.astype(compute_dtype)             # resident codebook

    capacity = _vmem_capacity_bytes()
    TM = _choose_tm(M, D, K, KP, tm, capacity)
    M_pad = _round_up(M, TM)
    num_tiles = M_pad // TM
    flat_in = flat if M_pad == M else jnp.pad(flat, ((0, M_pad - M), (0, 0)))

    kernel = functools.partial(_vq_kernel, m_total=M, tm=TM, k=K,
                               compute_dtype=compute_dtype)

    flops = 4 * M_pad * K * D                       # two MXU matmuls per row
    bytes_accessed = (flat_in.size * flat_in.dtype.itemsize
                      + w_dev.size * w_dev.dtype.itemsize
                      + w_sq.size * 4
                      + M_pad * D * flat_in.dtype.itemsize      # q out
                      + M_pad * K * 4                           # one-hot out
                      + num_tiles * KP * 4)                     # partials

    q_pad, enc_pad, part = pl.pallas_call(
        kernel,
        grid=(num_tiles,),
        out_shape=(
            jax.ShapeDtypeStruct((M_pad, D), flat_in.dtype),    # quantized
            jax.ShapeDtypeStruct((M_pad, K), jnp.float32),      # one-hot
            jax.ShapeDtypeStruct((num_tiles, 1, KP), jnp.float32),  # partials
        ),
        in_specs=[
            pl.BlockSpec((TM, D), lambda i: (i, 0)),            # x tile
            pl.BlockSpec((K, D), lambda i: (0, 0)),             # codebook (resident)
            pl.BlockSpec((1, K), lambda i: (0, 0)),             # ||w||^2 (resident)
        ],
        out_specs=(
            pl.BlockSpec((TM, D), lambda i: (i, 0)),
            pl.BlockSpec((TM, K), lambda i: (i, 0)),
            pl.BlockSpec((1, 1, KP), lambda i: (i, 0, 0)),
        ),
        compiler_params=pltpu.CompilerParams(
            dimension_semantics=("parallel",),
            vmem_limit_bytes=_vmem_limit_bytes(TM, D, K, KP, capacity),
        ),
        cost_estimate=pl.CostEstimate(
            flops=flops, transcendentals=0, bytes_accessed=bytes_accessed),
    )(flat_in, w_dev, w_sq)

    q_flat = q_pad[:M].astype(jnp.float32)
    enc_flat = enc_pad[:M]                                      # (M, K) f32 one-hot
    counts = jnp.sum(part[:, 0, :K], axis=0)                    # (K,)
    sse = jnp.sum(part[:, 0, K])

    # codebook_loss and commitment_loss have the same forward value (MSE).
    mse = sse / (M * D)
    loss = mse + commitment_cost * mse

    q_nhwc = q_flat.reshape(N, H, W, D)
    x_nhwc_f32 = x_nhwc.astype(jnp.float32)
    # Exactly as written in the module: inputs - (quantized - inputs).detach()
    quantized_st = x_nhwc_f32 - jax.lax.stop_gradient(q_nhwc - x_nhwc_f32)
    quantized_nchw = jnp.transpose(quantized_st, (0, 3, 1, 2))

    avg_probs = counts / M
    perplexity = jnp.exp(-jnp.sum(avg_probs * jnp.log(avg_probs + 1e-10)))

    # The dense one-hot comes straight out of the kernel (single HBM write),
    # no wrapper-side re-materialization.
    encodings = enc_flat.reshape(M, 1, K)

    return loss, quantized_nchw, perplexity, encodings


def _reference(x_nchw, weight, commitment_cost):
    """Pure-JAX reference mirroring the PyTorch forward (for verification)."""
    N, C, H, W = x_nchw.shape
    inputs = jnp.transpose(x_nchw, (0, 2, 3, 1)).astype(jnp.float32)
    flat = inputs.reshape(-1, C)
    w = weight.astype(jnp.float32)
    dist = (jnp.sum(flat ** 2, axis=1, keepdims=True)
            + jnp.sum(w ** 2, axis=1)
            - 2.0 * flat @ w.T)
    idx = jnp.argmin(dist, axis=1)
    enc = jax.nn.one_hot(idx, w.shape[0], dtype=jnp.float32)
    q = (enc @ w).reshape(inputs.shape)
    mse = jnp.mean((q - inputs) ** 2)
    loss = mse + commitment_cost * mse
    q_st = inputs - jax.lax.stop_gradient(q - inputs)
    avgp = jnp.mean(enc, axis=0)
    perp = jnp.exp(-jnp.sum(avgp * jnp.log(avgp + 1e-10)))
    return (loss, jnp.transpose(q_st, (0, 3, 1, 2)), perp,
            enc.reshape(-1, 1, w.shape[0]))


def _check_exact(x, weight, commitment_cost, tm=None):
    out = vector_quantizer_forward(x, weight, commitment_cost, tm=tm,
                                   use_bf16_mxu=False)
    jax.block_until_ready(out)
    loss, quantized, perplexity, encodings = out
    r_loss, r_q, r_perp, r_enc = _reference(x, weight, commitment_cost)
    N, C, H, W = x.shape
    K = weight.shape[0]
    assert quantized.shape == (N, C, H, W)
    assert encodings.shape == (N * H * W, 1, K)
    assert jnp.allclose(loss, r_loss, atol=1e-4, rtol=1e-4)
    assert jnp.allclose(quantized, r_q, atol=1e-4, rtol=1e-4)
    assert jnp.allclose(perplexity, r_perp, atol=1e-4, rtol=1e-4)
    assert jnp.allclose(encodings, r_enc)


def _check_bf16(x, weight, commitment_cost, tm=None):
    out = vector_quantizer_forward(x, weight, commitment_cost, tm=tm,
                                   use_bf16_mxu=True)
    jax.block_until_ready(out)
    loss, quantized, perplexity, encodings = out
    r_loss, r_q, r_perp, _ = _reference(x, weight, commitment_cost)
    N, C, H, W = x.shape
    K = weight.shape[0]
    assert quantized.shape == (N, C, H, W)
    assert encodings.shape == (N * H * W, 1, K)
    # bf16 MXU path: a rare argmin flip only perturbs a handful of rows,
    # so check aggregate quantities with loose tolerance.
    assert jnp.allclose(loss, r_loss, atol=1e-2, rtol=1e-2)
    assert jnp.allclose(perplexity, r_perp, atol=5e-2, rtol=5e-2)
    assert jnp.mean(jnp.abs(quantized - r_q)) < 1e-2


if __name__ == "__main__":
    key = jax.random.PRNGKey(0)
    k_x, k_w, k_x2 = jax.random.split(key, 3)

    num_embeddings = 8
    embedding_dim = 4
    commitment_cost = 0.25
    N, H, W = 2, 16, 16

    x = jax.random.normal(k_x, (N, embedding_dim, H, W), dtype=jnp.float32)
    # nn.Embedding weight init: uniform(-1/K, 1/K), shape (K, D)
    weight = jax.random.uniform(
        k_w, (num_embeddings, embedding_dim),
        minval=-1.0 / num_embeddings, maxval=1.0 / num_embeddings,
        dtype=jnp.float32)

    # Exact-parity f32 path: single-tile (M = 512, auto TM).
    _check_exact(x, weight, commitment_cost, tm=None)

    # Multi-tile + masked-tail f32 path (M = 300, TM = 128 -> 3 tiles).
    x2 = jax.random.normal(k_x2, (1, embedding_dim, 15, 20), dtype=jnp.float32)
    _check_exact(x2, weight, commitment_cost, tm=128)

    # bf16-MXU fast path (the performance default), loose-tolerance sanity.
    _check_bf16(x, weight, commitment_cost)
    _check_bf16(x2, weight, commitment_cost, tm=128)

    print("KERNEL_OK")
</pallas_src>

<mosaic_0001>
module attributes {stable_mosaic.version = 11 : i64} {
  func.func @_vq_kernel(%arg0: i32, %arg1: memref<512x4xf32, #tpu.memory_space<vmem>>, %arg2: memref<8x4xf32, #tpu.memory_space<vmem>>, %arg3: memref<1x8xf32, #tpu.memory_space<vmem>>, %arg4: memref<512x4xf32, #tpu.memory_space<vmem>>, %arg5: memref<512x8xf32, #tpu.memory_space<vmem>>, %arg6: memref<1x1x128xf32, #tpu.memory_space<vmem>>) attributes {dimension_semantics = [#tpu.dimension_semantics<parallel>], iteration_bounds = array<i64: 1>, scalar_prefetch = 0 : i64, scratch_operands = 0 : i64, tpu.core_type = #tpu.core_type<tc>, window_params = [{transform_indices = @transform_0, window_bounds = array<i64: 512, 4>}, {pipeline_mode = #tpu.pipeline_mode<synchronous>, transform_indices = @transform_1, window_bounds = array<i64: 8, 4>}, {pipeline_mode = #tpu.pipeline_mode<synchronous>, transform_indices = @transform_2, window_bounds = array<i64: 1, 8>}, {transform_indices = @transform_3, window_bounds = array<i64: 512, 4>}, {transform_indices = @transform_4, window_bounds = array<i64: 512, 8>}, {transform_indices = @transform_5, window_bounds = array<i64: 1, 1, 128>}]} {
    %c0 = arith.constant 0 : index
    %c0_0 = arith.constant 0 : index
    %0 = vector.load %arg1[%c0, %c0_0] : memref<512x4xf32, #tpu.memory_space<vmem>>, vector<512x4xf32>
    %c0_1 = arith.constant 0 : index
    %c0_2 = arith.constant 0 : index
    %1 = vector.load %arg2[%c0_1, %c0_2] : memref<8x4xf32, #tpu.memory_space<vmem>>, vector<8x4xf32>
    %c0_3 = arith.constant 0 : index
    %c0_4 = arith.constant 0 : index
    %2 = vector.load %arg3[%c0_3, %c0_4] : memref<1x8xf32, #tpu.memory_space<vmem>>, vector<1x8xf32>
    %3 = arith.mulf %0, %0 : vector<512x4xf32>
    %cst = arith.constant dense<0.000000e+00> : vector<512xf32>
    %4 = vector.multi_reduction <add>, %3, %cst [1] : vector<512x4xf32> to vector<512xf32>
    %5 = vector.shape_cast %4 : vector<512xf32> to vector<512x1xf32>
    %cst_5 = arith.constant dense<0.000000e+00> : vector<512x8xf32>
    %6 = tpu.matmul %0, %1, %cst_5 {dimension_numbers = #tpu.dot_dimension_numbers<[1], [1], [0], [0], [0, 0, 1, 0], [], []>} : vector<512x4xf32>, vector<8x4xf32>, vector<512x8xf32> -> vector<512x8xf32>
    %7 = vector.broadcast %5 : vector<512x1xf32> to vector<512x8xf32>
    %8 = vector.broadcast %2 : vector<1x8xf32> to vector<512x8xf32>
    %9 = arith.addf %7, %8 : vector<512x8xf32>
    %cst_6 = arith.constant 2.000000e+00 : f32
    %10 = vector.broadcast %cst_6 : f32 to vector<512x8xf32>
    %11 = arith.mulf %10, %6 : vector<512x8xf32>
    %12 = arith.subf %9, %11 : vector<512x8xf32>
    %cst_7 = arith.constant dense<0x7F800000> : vector<512xf32>
    %13 = vector.multi_reduction <minimumf>, %12, %cst_7 [1] : vector<512x8xf32> to vector<512xf32>
    %14 = vector.shape_cast %13 : vector<512xf32> to vector<512x1xf32>
    %15 = tpu.iota {dimensions = array<i32: 1>} : vector<512x8xi32>
    %16 = vector.broadcast %14 : vector<512x1xf32> to vector<512x8xf32>
    %17 = arith.cmpf oeq, %12, %16 : vector<512x8xf32>
    %c8_i32 = arith.constant 8 : i32
    %18 = vector.broadcast %c8_i32 : i32 to vector<512x8xi32>
    %19 = arith.select %17, %15, %18 : vector<512x8xi1>, vector<512x8xi32>
    %cst_8 = arith.constant dense<2147483647> : vector<512xi32>
    %20 = vector.multi_reduction <minsi>, %19, %cst_8 [1] : vector<512x8xi32> to vector<512xi32>
    %21 = vector.shape_cast %20 : vector<512xi32> to vector<512x1xi32>
    %22 = vector.broadcast %21 : vector<512x1xi32> to vector<512x8xi32>
    %23 = arith.cmpi eq, %15, %22 : vector<512x8xi32>
    %24 = arith.extui %23 : vector<512x8xi1> to vector<512x8xi32>
    %25 = arith.sitofp %24 : vector<512x8xi32> to vector<512x8xf32>
    %cst_9 = arith.constant dense<0.000000e+00> : vector<512x4xf32>
    %26 = tpu.matmul %25, %1, %cst_9 {dimension_numbers = #tpu.dot_dimension_numbers<[1], [0], [0], [1], [0, 0, 1, 1], [], []>} : vector<512x8xf32>, vector<8x4xf32>, vector<512x4xf32> -> vector<512x4xf32>
    %c0_10 = arith.constant 0 : index
    %c0_11 = arith.constant 0 : index
    %27 = vector.load %arg4[%c0_10, %c0_11] : memref<512x4xf32, #tpu.memory_space<vmem>>, vector<512x4xf32>
    tpu.vector_store %arg4[%c0_10, %c0_11], %26 {strides = array<i32>} : memref<512x4xf32, #tpu.memory_space<vmem>>, vector<512x4xf32>,
    %c0_12 = arith.constant 0 : index
    %c0_13 = arith.constant 0 : index
    %28 = vector.load %arg5[%c0_12, %c0_13] : memref<512x8xf32, #tpu.memory_space<vmem>>, vector<512x8xf32>
    tpu.vector_store %arg5[%c0_12, %c0_13], %25 {strides = array<i32>} : memref<512x8xf32, #tpu.memory_space<vmem>>, vector<512x8xf32>,
    %c0_i32 = arith.constant 0 : i32
    %29 = arith.cmpi slt, %arg0, %c0_i32 : i32
    %30 = arith.extui %29 : i1 to i32
    %c0_i32_14 = arith.constant 0 : i32
    %31 = arith.cmpi ne, %30, %c0_i32_14 : i32
    scf.if %31 {
      %35 = arith.subf %26, %0 : vector<512x4xf32>
      %cst_17 = arith.constant dense<0.000000e+00> : vector<8xf32>
      %36 = vector.multi_reduction <add>, %25, %cst_17 [0] : vector<512x8xf32> to vector<8xf32>
      %37 = vector.shape_cast %36 : vector<8xf32> to vector<1x8xf32>
      %38 = arith.mulf %35, %35 : vector<512x4xf32>
      %39 = vector.shape_cast %38 : vector<512x4xf32> to vector<1x512x4xf32>
      %cst_18 = arith.constant dense<0.000000e+00> : vector<1xf32>
      %40 = vector.multi_reduction <add>, %39, %cst_18 [1, 2] : vector<1x512x4xf32> to vector<1xf32>
      %41 = vector.shape_cast %40 : vector<1xf32> to vector<1x1x1xf32>
      %42 = vector.extract %41[0, 0, 0] : f32 from vector<1x1x1xf32>
      %43 = vector.broadcast %42 : f32 to vector<1x1xf32>
      %cst_19 = arith.constant 0.000000e+00 : f32
      %44 = vector.broadcast %cst_19 : f32 to vector<1x1x128xf32>
      %c0_20 = arith.constant 0 : index
      %c0_21 = arith.constant 0 : index
      %c0_22 = arith.constant 0 : index
      %45 = vector.load %arg6[%c0_20, %c0_21, %c0_22] : memref<1x1x128xf32, #tpu.memory_space<vmem>>, vector<1x1x128xf32>
      tpu.vector_store %arg6[%c0_20, %c0_21, %c0_22], %44 {strides = array<i32>} : memref<1x1x128xf32, #tpu.memory_space<vmem>>, vector<1x1x128xf32>,
      %c0_23 = arith.constant 0 : index
      %c0_24 = arith.constant 0 : index
      %c0_25 = arith.constant 0 : index
      %46 = vector.load %arg6[%c0_23, %c0_24, %c0_25] : memref<1x1x128xf32, #tpu.memory_space<vmem>>, vector<1x1x8xf32>
      %47 = vector.shape_cast %46 : vector<1x1x8xf32> to vector<1x8xf32>
      %48 = vector.shape_cast %37 : vector<1x8xf32> to vector<1x1x8xf32>
      tpu.vector_store %arg6[%c0_23, %c0_24, %c0_25], %48 {strides = array<i32>} : memref<1x1x128xf32, #tpu.memory_space<vmem>>, vector<1x1x8xf32>,
      %c0_26 = arith.constant 0 : index
      %c0_27 = arith.constant 0 : index
      %c8 = arith.constant 8 : index
      %49 = vector.load %arg6[%c0_26, %c0_27, %c8] : memref<1x1x128xf32, #tpu.memory_space<vmem>>, vector<1x1x1xf32>
      %50 = vector.shape_cast %49 : vector<1x1x1xf32> to vector<1x1xf32>
      %51 = vector.shape_cast %43 : vector<1x1xf32> to vector<1x1x1xf32>
      tpu.vector_store %arg6[%c0_26, %c0_27, %c8], %51 {strides = array<i32>} : memref<1x1x128xf32, #tpu.memory_space<vmem>>, vector<1x1x1xf32>,
    } else {
    }
    %c0_i32_15 = arith.constant 0 : i32
    %32 = arith.cmpi eq, %arg0, %c0_i32_15 : i32
    %33 = arith.extui %32 : i1 to i32
    %c0_i32_16 = arith.constant 0 : i32
    %34 = arith.cmpi ne, %33, %c0_i32_16 : i32
    scf.if %34 {
      %35 = tpu.iota {dimensions = array<i32: 0>} : vector<512x1xi32>
      %c512_i32 = arith.constant 512 : i32
      %36 = arith.muli %arg0, %c512_i32 : i32
      %37 = vector.broadcast %36 : i32 to vector<512x1xi32>
      %38 = arith.addi %35, %37 : vector<512x1xi32>
      %c512_i32_17 = arith.constant 512 : i32
      %39 = vector.broadcast %c512_i32_17 : i32 to vector<512x1xi32>
      %40 = arith.cmpi slt, %38, %39 : vector<512x1xi32>
      %41 = arith.extui %40 : vector<512x1xi1> to vector<512x1xi32>
      %42 = arith.sitofp %41 : vector<512x1xi32> to vector<512x1xf32>
      %43 = arith.subf %26, %0 : vector<512x4xf32>
      %44 = vector.broadcast %42 : vector<512x1xf32> to vector<512x4xf32>
      %45 = arith.mulf %43, %44 : vector<512x4xf32>
      %46 = vector.broadcast %42 : vector<512x1xf32> to vector<512x8xf32>
      %47 = arith.mulf %25, %46 : vector<512x8xf32>
      %cst_18 = arith.constant dense<0.000000e+00> : vector<8xf32>
      %48 = vector.multi_reduction <add>, %47, %cst_18 [0] : vector<512x8xf32> to vector<8xf32>
      %49 = vector.shape_cast %48 : vector<8xf32> to vector<1x8xf32>
      %50 = arith.mulf %45, %45 : vector<512x4xf32>
      %51 = vector.shape_cast %50 : vector<512x4xf32> to vector<1x512x4xf32>
      %cst_19 = arith.constant dense<0.000000e+00> : vector<1xf32>
      %52 = vector.multi_reduction <add>, %51, %cst_19 [1, 2] : vector<1x512x4xf32> to vector<1xf32>
      %53 = vector.shape_cast %52 : vector<1xf32> to vector<1x1x1xf32>
      %54 = vector.extract %53[0, 0, 0] : f32 from vector<1x1x1xf32>
      %55 = vector.broadcast %54 : f32 to vector<1x1xf32>
      %cst_20 = arith.constant 0.000000e+00 : f32
      %56 = vector.broadcast %cst_20 : f32 to vector<1x1x128xf32>
      %c0_21 = arith.constant 0 : index
      %c0_22 = arith.constant 0 : index
      %c0_23 = arith.constant 0 : index
      %57 = vector.load %arg6[%c0_21, %c0_22, %c0_23] : memref<1x1x128xf32, #tpu.memory_space<vmem>>, vector<1x1x128xf32>
      tpu.vector_store %arg6[%c0_21, %c0_22, %c0_23], %56 {strides = array<i32>} : memref<1x1x128xf32, #tpu.memory_space<vmem>>, vector<1x1x128xf32>,
      %c0_24 = arith.constant 0 : index
      %c0_25 = arith.constant 0 : index
      %c0_26 = arith.constant 0 : index
      %58 = vector.load %arg6[%c0_24, %c0_25, %c0_26] : memref<1x1x128xf32, #tpu.memory_space<vmem>>, vector<1x1x8xf32>
      %59 = vector.shape_cast %58 : vector<1x1x8xf32> to vector<1x8xf32>
      %60 = vector.shape_cast %49 : vector<1x8xf32> to vector<1x1x8xf32>
      tpu.vector_store %arg6[%c0_24, %c0_25, %c0_26], %60 {strides = array<i32>} : memref<1x1x128xf32, #tpu.memory_space<vmem>>, vector<1x1x8xf32>,
      %c0_27 = arith.constant 0 : index
      %c0_28 = arith.constant 0 : index
      %c8 = arith.constant 8 : index
      %61 = vector.load %arg6[%c0_27, %c0_28, %c8] : memref<1x1x128xf32, #tpu.memory_space<vmem>>, vector<1x1x1xf32>
      %62 = vector.shape_cast %61 : vector<1x1x1xf32> to vector<1x1xf32>
      %63 = vector.shape_cast %55 : vector<1x1xf32> to vector<1x1x1xf32>
      tpu.vector_store %arg6[%c0_27, %c0_28, %c8], %63 {strides = array<i32>} : memref<1x1x128xf32, #tpu.memory_space<vmem>>, vector<1x1x1xf32>,
    } else {
    }
    return
  }
  func.func @transform_0(%arg0: i32) -> (i32, i32) {
    %c0_i32 = arith.constant 0 : i32
    %c0_i32_0 = arith.constant 0 : i32
    return %arg0, %c0_i32 : i32, i32
  }
  func.func @transform_1(%arg0: i32) -> (i32, i32) {
    %c0_i32 = arith.constant 0 : i32
    %c0_i32_0 = arith.constant 0 : i32
    %c0_i32_1 = arith.constant 0 : i32
    return %c0_i32, %c0_i32_0 : i32, i32
  }
  func.func @transform_2(%arg0: i32) -> (i32, i32) {
    %c0_i32 = arith.constant 0 : i32
    %c0_i32_0 = arith.constant 0 : i32
    %c0_i32_1 = arith.constant 0 : i32
    return %c0_i32, %c0_i32_0 : i32, i32
  }
  func.func @transform_3(%arg0: i32) -> (i32, i32) {
    %c0_i32 = arith.constant 0 : i32
    %c0_i32_0 = arith.constant 0 : i32
    return %arg0, %c0_i32 : i32, i32
  }
  func.func @transform_4(%arg0: i32) -> (i32, i32) {
    %c0_i32 = arith.constant 0 : i32
    %c0_i32_0 = arith.constant 0 : i32
    return %arg0, %c0_i32 : i32, i32
  }
  func.func @transform_5(%arg0: i32) -> (i32, i32, i32) {
    %c0_i32 = arith.constant 0 : i32
    %c0_i32_0 = arith.constant 0 : i32
    %c0_i32_1 = arith.constant 0 : i32
    return %arg0, %c0_i32, %c0_i32_0 : i32, i32, i32
  }
}

</mosaic_0001>

<bundles_post_ra>
// kernel: tpu_custom_call.1
= control target key start
LH: loop header
LB: loop body
LE: loop exit
PB: predicated region body
PF: predicated region fallthrough
CT: control target
= control target key end

     0   :  { %vm148_vm0 = vcmask 31744   ;;  %s8016_s0 = inlined_call_operand.vmem [shape: f32[512,4], index: 0, kind: input, shape index: {}]   ;;  %s8017_s1 = inlined_call_operand.vmem [shape: f32[8,4], index: 1, kind: input, shape index: {}]   ;;  %s8018_s2 = inlined_call_operand.vmem [shape: f32[1,8], index: 2, kind: input, shape index: {}]   ;;  %s8019_s3 = inlined_call_operand.vmem [shape: f32[512,4], index: 3, kind: output, shape index: {0}]   ;;  %s8020_s4 = inlined_call_operand.vmem [shape: f32[512,8], index: 4, kind: output, shape index: {1}]   ;;  %s8021_s5 = inlined_call_operand.hbm [shape: f32[1,1,128], index: 5, kind: output, shape index: {2}]  }
   0x1   :  { %v82_v0 = vld [vmem:[%s8017_s1] sm:$0xff]  ;;  %v20_v1 = vld [vmem:[%s8016_s0 + $0x10] sm:$0xff]  ;;  %v21_v5 = vld [vmem:[%s8016_s0 + $0x18] sm:$0xff] }
   0x2   :  { %v18_v2 = vld [vmem:[%s8016_s0] sm:$0xff]  ;;  %4233 = vmatpush.xpose.msk.msra.mxu0 %vm148_vm0, %v82_v0  ;;  %v86_v3 = vmul.f32 %v20_v1, %v20_v1  ;;  %4426 = vmatpush.xpose.msk.msra.mxu2 %vm148_vm0, %v82_v0  ;;  %v19_v8 = vld [vmem:[%s8016_s0 + $0x8] sm:$0xff]  ;;  %v87_v10 = vmul.f32 %v21_v5, %v21_v5 }
   0x3   :  { %v84_v4 = vmul.f32 %v18_v2, %v18_v2  ;;  %2622 = vmatpush.msra.mxu1 %v82_v0  ;;  %4427 = vmatpush.msra.mxu3 %v82_v0  ;;  %v22_v9 = vld [vmem:[%s8016_s0 + $0x20] sm:$0xff] }
   0x4   :  { %v155_v6 = vsel %vm148_vm0, %v86_v3, 0.0  ;;  %v88_v11 = vmul.f32 %v22_v9, %v22_v9 }
   0x5   :  { %v149_v7 = vsel %vm148_vm0, %v84_v4, 0.0  ;;  %156 = vadd.xlane.f32.xlu1 %v155_v6  ;;  %4234 = vmatmul.msk.f32.vlgmr.msra.gmra.mxu0 %vm148_vm0, %v18_v2 }
   0x6   :  { %150 = vadd.xlane.f32.xlu0 %v149_v7 }
   0x7   :  { %11 = vsyncpa [#allocation3], 0  ;;  %v85_v12 = vmul.f32 %v19_v8, %v19_v8  ;;  %v4584_v13 = vld [vmem:[%s8016_s0 + $0x28] sm:$0xff]  ;;  %v161_v14 = vsel %vm148_vm0, %v88_v11, 0.0  ;;  %v158_v15 = vsel %vm148_vm0, %v87_v10, 0.0  ;;  %v4594_v18 = vld [vmem:[%s8016_s0 + $0x38] sm:$0xff] }
   0x8   :  { %162 = vadd.xlane.f32.xlu2 %v161_v14  ;;  %v89_v16 = vmul.f32 %v4584_v13, %v4584_v13  ;;  %v4599_v19 = vld [vmem:[%s8016_s0 + $0x30] sm:$0xff]  ;;  %v91_v20 = vmul.f32 %v4594_v18, %v4594_v18  ;;  %v4608_v22 = vld [vmem:[%s8016_s0 + $0x100] sm:$0xff]  ;;  %v4631_v29 = vld [vmem:[%s8016_s0 + $0x48] sm:$0xff]  ;;  %vm940_vm1 = vcmask 64512   ;;  %s4220_s8 = sshll.u32 %s8021_s5, 4  ;;  %s4221_s8 = int_to_ptr.hbm [resolvable:$true] %s4220_s8 }
   0x9   :  { %v152_v17 = vsel %vm148_vm0, %v85_v12, 0.0  ;;  %v90_v23 = vmul.f32 %v4599_v19, %v4599_v19  ;;  %4266 = vmatmul.msk.f32.vlgmr.msra.gmra.mxu2 %vm148_vm0, %v4608_v22  ;;  %v4617_v24 = vld [vmem:[%s8016_s0 + $0x40] sm:$0xff]  ;;  %v4626_v28 = vld [vmem:[%s8016_s0 + $0x50] sm:$0xff]  ;;  %v4640_v32 = vld [vmem:[%s8016_s0 + $0x108] sm:$0xff]  ;;  %v93_v33 = vmul.f32 %v4631_v29, %v4631_v29 }
   0xa   :  { %v164_v21 = vsel %vm148_vm0, %v89_v16, 0.0  ;;  %v170_v25 = vsel %vm148_vm0, %v91_v20, 0.0  ;;  %v92_v26 = vmul.f32 %v4617_v24, %v4617_v24  ;;  %v94_v30 = vmul.f32 %v4626_v28, %v4626_v28  ;;  %v4649_v34 = vld [vmem:[%s8016_s0 + $0x58] sm:$0xff]  ;;  %v4658_v38 = vld [vmem:[%s8016_s0 + $0x68] sm:$0xff]  ;;  %v4663_v39 = vld [vmem:[%s8016_s0 + $0x60] sm:$0xff] }
   0xb   :  { %v167_v27 = vsel %vm148_vm0, %v90_v23, 0.0  ;;  %v95_v36 = vmul.f32 %v4649_v34, %v4649_v34  ;;  %v176_v37 = vsel %vm148_vm0, %v93_v33, 0.0  ;;  %v97_v40 = vmul.f32 %v4658_v38, %v4658_v38  ;;  %v4672_v42 = vld [vmem:[%s8016_s0 + $0x110] sm:$0xff]  ;;  %v4690_v48 = vld [vmem:[%s8016_s0 + $0x80] sm:$0xff]  ;;  %v4695_v49 = vld [vmem:[%s8016_s0 + $0x78] sm:$0xff] }
   0xc   :  { %v173_v31 = vsel %vm148_vm0, %v92_v26, 0.0  ;;  %v179_v35 = vsel %vm148_vm0, %v94_v30, 0.0  ;;  %v96_v43 = vmul.f32 %v4663_v39, %v4663_v39  ;;  %v4681_v44 = vld [vmem:[%s8016_s0 + $0x70] sm:$0xff]  ;;  %v100_v50 = vmul.f32 %v4690_v48, %v4690_v48  ;;  %v4704_v52 = vld [vmem:[%s8016_s0 + $0x118] sm:$0xff]  ;;  %v4713_v54 = vld [vmem:[%s8016_s0 + $0x88] sm:$0xff] }
   0xd   :  { %159 = vadd.xlane.f32.xlu1 %v158_v15  ;;  %4235 = vmatmul.msk.f32.gmra.mxu0 %vm148_vm0, %v19_v8  ;;  %v182_v41 = vsel %vm148_vm0, %v95_v36, 0.0  ;;  %v188_v45 = vsel %vm148_vm0, %v97_v40, 0.0  ;;  %v98_v46 = vmul.f32 %v4681_v44, %v4681_v44  ;;  %v99_v53 = vmul.f32 %v4695_v49, %v4695_v49  ;;  %v4722_v58 = vld [vmem:[%s8016_s0 + $0x98] sm:$0xff]  ;;  %v4727_v59 = vld [vmem:[%s8016_s0 + $0x90] sm:$0xff]  ;;  %v4737_v62 = vld [vmem:[%s8016_s0 + $0x120] sm:$0xff] }
   0xe   :  { %153 = vadd.xlane.f32.xlu0 %v152_v17  ;;  %v185_v47 = vsel %vm148_vm0, %v96_v43, 0.0  ;;  %v197_v55 = vsel %vm148_vm0, %v100_v50, 0.0  ;;  %v101_v56 = vmul.f32 %v4713_v54, %v4713_v54  ;;  %v103_v60 = vmul.f32 %v4722_v58, %v4722_v58  ;;  %v4746_v0 = vld [vmem:[%s8016_s0 + $0xa0] sm:$0xff]  ;;  %v4755_v4 = vld [vmem:[%s8016_s0 + $0xb0] sm:$0xff]  ;;  %v55_v17 = vld [vmem:[%s8016_s0 + $0x128] sm:$0xff] }
   0xf   :  { %v191_v51 = vsel %vm148_vm0, %v98_v46, 0.0  ;;  %v194_v57 = vsel %vm148_vm0, %v99_v53, 0.0  ;;  %v102_v63 = vmul.f32 %v4727_v59, %v4727_v59  ;;  %v104_v2 = vmul.f32 %v4746_v0, %v4746_v0  ;;  %v4786_v14 = vld [vmem:[%s8016_s0 + $0xc0] sm:$0xff]  ;;  %v4802_v20 = vld [vmem:[%s8016_s0 + $0xd0] sm:$0xff]  ;;  %v4861_v50 = vld [vmem:[%s8016_s0 + $0xf8] sm:$0xff] }
  0x10   :  { %165 = vadd.xlane.f32.xlu2 %v164_v21  ;;  %v200_v61 = vsel %vm148_vm0, %v101_v56, 0.0  ;;  %v106_v6 = vmul.f32 %v4755_v4, %v4755_v4  ;;  %v110_v21 = vmul.f32 %v4802_v20, %v4802_v20  ;;  %v56_v30 = vld [vmem:[%s8016_s0 + $0x130] sm:$0xff]  ;;  %v4827_v33 = vld [vmem:[%s8016_s0 + $0xe0] sm:$0xff]  ;;  %v118_v43 = vmul.f32 %v4672_v42, %v4672_v42 }
  0x11   :  { %4267 = vmatmul.msk.f32.gmra.mxu2 %vm148_vm0, %v4640_v32  ;;  %v203_v3 = vsel %vm148_vm0, %v102_v63, 0.0  ;;  %v209_v7 = vsel %vm148_vm0, %v104_v2, 0.0  ;;  %v120_v53 = vmul.f32 %v4737_v62, %v4737_v62  ;;  %v122_v56 = vmul.f32 %v56_v30, %v56_v30 }
  0x12   :  { %v215_v10 = vsel %vm148_vm0, %v106_v6, 0.0 }
  0x15   :  { %171 = vadd.xlane.f32.xlu1 %v170_v25  ;;  %4236 = vmatmul.msk.f32.gmra.mxu0 %vm148_vm0, %v20_v1  ;;  %v206_v1 = vsel %vm148_vm0, %v103_v60, 0.0  ;;  %v4811_v25 = vld [vmem:[%s8016_s0 + $0xd8] sm:$0xff]  ;;  %v116_v60 = vmul.f32 %v4608_v22, %v4608_v22  ;;  %v119_v22 = vmul.f32 %v4704_v52, %v4704_v52 }
  0x16   :  { %168 = vadd.xlane.f32.xlu0 %v167_v27  ;;  %v111_v26 = vmul.f32 %v4811_v25, %v4811_v25  ;;  %v227_v27 = vsel %vm148_vm0, %v110_v21, 0.0 }
  0x17   :  { %v245_v63 = vsel %vm148_vm0, %v116_v60, 0.0 }
  0x18   :  { %174 = vadd.xlane.f32.xlu2 %v173_v31  ;;  %v117_v31 = vmul.f32 %v4640_v32, %v4640_v32 }
  0x19   :  { %4268 = vmatmul.msk.f32.gmra.mxu2 %vm148_vm0, %v4672_v42  ;;  %v115_v42 = vmul.f32 %v4861_v50, %v4861_v50 }
  0x1a   :  { %v248_v36 = vsel %vm148_vm0, %v117_v31, 0.0 }
  0x1d   :  { %180 = vadd.xlane.f32.xlu1 %v179_v35  ;;  %4237 = vmatmul.msk.f32.gmra.mxu0 %vm148_vm0, %v21_v5  ;;  %v4760_v5 = vld [vmem:[%s8016_s0 + $0xa8] sm:$0xff]  ;;  %v112_v35 = vmul.f32 %v4827_v33, %v4827_v33 }
  0x1e   :  { %177 = vadd.xlane.f32.xlu0 %v176_v37  ;;  %v105_v8 = vmul.f32 %v4760_v5, %v4760_v5  ;;  %v4836_v37 = vld [vmem:[%s8016_s0 + $0xe8] sm:$0xff] }
  0x1f   :  { %v113_v32 = vmul.f32 %v4836_v37, %v4836_v37  ;;  %v233_v40 = vsel %vm148_vm0, %v112_v35, 0.0 }
  0x20   :  { %183 = vadd.xlane.f32.xlu2 %v182_v41  ;;  %v212_v12 = vsel %vm148_vm0, %v105_v8, 0.0  ;;  %v57_v41 = vld [vmem:[%s8016_s0 + $0x138] sm:$0xff] }
  0x21   :  { %4269 = vmatmul.msk.f32.gmra.mxu2 %vm148_vm0, %v4704_v52  ;;  %v123_v2 = vmul.f32 %v57_v41, %v57_v41 }
  0x23   :  { %v266_v6 = vsel %vm148_vm0, %v123_v2, 0.0  ;;  %v63_v2 = vld [vmem:[%s8016_s0 + $0x168] sm:$0xff] }
  0x25   :  { %189 = vadd.xlane.f32.xlu1 %v188_v45  ;;  %4238 = vmatmul.msk.f32.gmra.mxu0 %vm148_vm0, %v22_v9  ;;  %v4772_v9 = vld [vmem:[%s8016_s0 + $0xb8] sm:$0xff]  ;;  %v4852_v45 = vld [vmem:[%s8016_s0 + $0xf0] sm:$0xff] }
  0x26   :  { %186 = vadd.xlane.f32.xlu0 %v185_v47  ;;  %v107_v11 = vmul.f32 %v4772_v9, %v4772_v9  ;;  %v114_v46 = vmul.f32 %v4852_v45, %v4852_v45  ;;  %v251_v47 = vsel %vm148_vm0, %v118_v43, 0.0 }
  0x28   :  { %192 = vadd.xlane.f32.xlu2 %v191_v51  ;;  %v218_v16 = vsel %vm148_vm0, %v107_v11, 0.0  ;;  %v239_v51 = vsel %vm148_vm0, %v114_v46, 0.0  ;;  %v61_v11 = vld [vmem:[%s8016_s0 + $0x158] sm:$0xff] }
  0x29   :  { %4270 = vmatmul.msk.f32.gmra.mxu2 %vm148_vm0, %v4737_v62  ;;  %v121_v62 = vmul.f32 %v55_v17, %v55_v17 }
  0x2d   :  { %198 = vadd.xlane.f32.xlu1 %v197_v55  ;;  %4239 = vmatmul.msk.f32.gmra.mxu0 %vm148_vm0, %v4584_v13  ;;  %v4781_v13 = vld [vmem:[%s8016_s0 + $0xc8] sm:$0xff]  ;;  %v242_v55 = vsel %vm148_vm0, %v115_v42, 0.0 }
  0x2e   :  { %195 = vadd.xlane.f32.xlu0 %v194_v57  ;;  %v109_v15 = vmul.f32 %v4781_v13, %v4781_v13  ;;  %v257_v57 = vsel %vm148_vm0, %v120_v53, 0.0 }
  0x30   :  { %201 = vadd.xlane.f32.xlu2 %v200_v61  ;;  %v263_v61 = vsel %vm148_vm0, %v122_v56, 0.0 }
  0x31   :  { %4271 = vmatmul.msk.f32.gmra.mxu2 %vm148_vm0, %v55_v17 }
  0x35   :  { %207 = vadd.xlane.f32.xlu1 %v206_v1  ;;  %4240 = vmatmul.msk.f32.gmra.mxu0 %vm148_vm0, %v4599_v19  ;;  %v108_v19 = vmul.f32 %v4786_v14, %v4786_v14  ;;  %v260_v1 = vsel %vm148_vm0, %v121_v62, 0.0 }
  0x36   :  { %204 = vadd.xlane.f32.xlu0 %v203_v3  ;;  %v254_v3 = vsel %vm148_vm0, %v119_v22, 0.0 }
  0x37   :  { %v221_v23 = vsel %vm148_vm0, %v108_v19, 0.0 }
  0x38   :  { %210 = vadd.xlane.f32.xlu2 %v209_v7 }
  0x39   :  { %4272 = vmatmul.msk.f32.gmra.mxu2 %vm148_vm0, %v56_v30 }
  0x3d   :  { %216 = vadd.xlane.f32.xlu1 %v215_v10  ;;  %4241 = vmatmul.msk.f32.gmra.mxu0 %vm148_vm0, %v4594_v18  ;;  %v224_v18 = vsel %vm148_vm0, %v109_v15, 0.0  ;;  %v62_v10 = vld [vmem:[%s8016_s0 + $0x160] sm:$0xff] }
  0x3e   :  { %213 = vadd.xlane.f32.xlu0 %v212_v12  ;;  %v128_v12 = vmul.f32 %v62_v10, %v62_v10 }
  0x40   :  { %219 = vadd.xlane.f32.xlu2 %v218_v16  ;;  %v281_v17 = vsel %vm148_vm0, %v128_v12, 0.0 }
  0x41   :  { %4273 = vmatmul.msk.f32.gmra.mxu2 %vm148_vm0, %v57_v41 }
  0x45   :  { %225 = vadd.xlane.f32.xlu1 %v224_v18  ;;  %4242 = vmatmul.msk.f32.gmra.mxu0 %vm148_vm0, %v4617_v24  ;;  %v230_v24 = vsel %vm148_vm0, %v111_v26, 0.0 }
  0x46   :  { %222 = vadd.xlane.f32.xlu0 %v221_v23 }
  0x48   :  { %228 = vadd.xlane.f32.xlu2 %v227_v27 }
  0x4d   :  { %231 = vadd.xlane.f32.xlu1 %v230_v24  ;;  %4243 = vmatmul.msk.f32.gmra.mxu0 %vm148_vm0, %v4631_v29  ;;  %v236_v29 = vsel %vm148_vm0, %v113_v32, 0.0 }
  0x4e   :  { %249 = vadd.xlane.f32.xlu0 %v248_v36 }
  0x50   :  { %234 = vadd.xlane.f32.xlu2 %v233_v40 }
  0x55   :  { %237 = vadd.xlane.f32.xlu1 %v236_v29  ;;  %4244 = vmatmul.msk.f32.gmra.mxu0 %vm148_vm0, %v4626_v28  ;;  %v58_v28 = vld [vmem:[%s8016_s0 + $0x140] sm:$0xff] }
  0x56   :  { %252 = vadd.xlane.f32.xlu0 %v251_v47  ;;  %4274 = vmatmul.msk.f32.gmra.mxu2 %vm148_vm0, %v58_v28  ;;  %v124_v8 = vmul.f32 %v58_v28, %v58_v28 }
  0x58   :  { %240 = vadd.xlane.f32.xlu2 %v239_v51 }
  0x5d   :  { %243 = vadd.xlane.f32.xlu1 %v242_v55  ;;  %4245 = vmatmul.msk.f32.gmra.mxu0 %vm148_vm0, %v4649_v34  ;;  %v59_v34 = vld [vmem:[%s8016_s0 + $0x148] sm:$0xff] }
  0x5e   :  { %258 = vadd.xlane.f32.xlu0 %v257_v57  ;;  %4275 = vmatmul.msk.f32.gmra.mxu2 %vm148_vm0, %v59_v34  ;;  %v125_v7 = vmul.f32 %v59_v34, %v59_v34 }
  0x60   :  { %264 = vadd.xlane.f32.xlu2 %v263_v61  ;;  %v272_v52 = vsel %vm148_vm0, %v125_v7, 0.0 }
  0x65   :  { %246 = vadd.xlane.f32.xlu1 %v245_v63  ;;  %4246 = vmatmul.msk.f32.gmra.mxu0 %vm148_vm0, %v4663_v39  ;;  %v60_v39 = vld [vmem:[%s8016_s0 + $0x150] sm:$0xff] }
  0x66   :  { %261 = vadd.xlane.f32.xlu0 %v260_v1  ;;  %4276 = vmatmul.msk.f32.gmra.mxu2 %vm148_vm0, %v60_v39  ;;  %v126_v41 = vmul.f32 %v60_v39, %v60_v39 }
  0x6d   :  { %255 = vadd.xlane.f32.xlu1 %v254_v3  ;;  %4247 = vmatmul.msk.f32.gmra.mxu0 %vm148_vm0, %v4658_v38  ;;  %v269_v38 = vsel %vm148_vm0, %v124_v8, 0.0 }
  0x6e   :  { %267 = vadd.xlane.f32.xlu0 %v266_v6  ;;  %4277 = vmatmul.msk.f32.gmra.mxu2 %vm148_vm0, %v61_v11 }
  0x75   :  { %4248 = vmatmul.msk.f32.gmra.mxu0 %vm148_vm0, %v4681_v44  ;;  %270 = vadd.xlane.f32.xlu1 %v269_v38  ;;  %v4918_v44 = vld [vmem:[%s8018_s2] ss:$0 sm:$0xff]  ;;  %v5001_v38 = vld [vmem:[%s8016_s0 + $0x170] sm:$0xff] }
  0x76   :  { %273 = vadd.xlane.f32.xlu0 %v272_v52  ;;  %4278 = vmatmul.msk.f32.gmra.mxu2 %vm148_vm0, %v62_v10 }
  0x78   :  { %v157_v15 = vpop.xlane.xlu1 %156 }
  0x79   :  { %v151_v16 = vpop.xlane.xlu0 %150  ;;  %v750_v42 = vadd.f32 %v4918_v44, %v157_v15 }
  0x7a   :  { %v748_v26 = vadd.f32 %v4918_v44, %v151_v16  ;;  %v5018_v16 = vld [vmem:[%s8016_s0 + $0x178] sm:$0xff] }
  0x7b   :  { %v4911_v19 = vpop.xlane.xlu2 %162 }
  0x7d   :  { %4249 = vmatmul.msk.f32.gmra.mxu0 %vm148_vm0, %v4695_v49 }
  0x7e   :  { %282 = vadd.xlane.f32.xlu0 %v281_v17  ;;  %4279 = vmatmul.msk.f32.gmra.mxu2 %vm148_vm0, %v63_v2 }
  0x80   :  { %v4921_v18 = vpop.xlane.xlu1 %159 }
  0x81   :  { %v154_v21 = vpop.xlane.xlu0 %153 }
  0x82   :  { %v553_v23 = vpop.f32.mrf.mxu0  ;;  %v749_v32 = vadd.f32 %v4918_v44, %v154_v21 }
  0x83   :  { %v812_v27 = vmul.f32 2.0, %v553_v23  ;;  %v4924_v30 = vpop.xlane.xlu2 %165 }
  0x85   :  { %4250 = vmatmul.msk.f32.gmra.mxu0 %vm148_vm0, %v4690_v48  ;;  %v4928_v49 = vsub.f32 %v748_v26, %v812_v27  ;;  %v275_v48 = vsel %vm148_vm0, %v126_v41, 0.0 }
  0x86   :  { %276 = vadd.xlane.f32.xlu2 %v275_v48  ;;  %4280 = vmatmul.msk.f32.gmra.mxu2 %vm148_vm0, %v5001_v38 }
  0x87   :  { %v941_v31 = vsel %vm940_vm1, %v4928_v49, inf }
  0x88   :  { %v4932_v24 = vpop.xlane.xlu1 %171  ;;  %942 = vmin.xlane.f32.xlu0 %v941_v31 }
  0x89   :  { %v4934_v35 = vpop.xlane.xlu0 %168 }
  0x8a   :  { %v556_v36 = vpop.f32.mrf.mxu0 }
  0x8b   :  { %v813_v40 = vmul.f32 2.0, %v556_v36  ;;  %v4942_v29 = vpop.xlane.xlu2 %174  ;;  %v751_v36 = vadd.f32 %v4918_v44, %v4921_v18 }
  0x8d   :  { %4251 = vmatmul.msk.f32.gmra.mxu0 %vm148_vm0, %v4713_v54  ;;  %v4939_v43 = vsub.f32 %v749_v32, %v813_v40  ;;  %v127_v54 = vmul.f32 %v61_v11, %v61_v11 }
  0x8e   :  { %4281 = vmatmul.msk.f32.gmra.mxu2 %vm148_vm0, %v5018_v16 }
  0x8f   :  { %v944_v46 = vsel %vm940_vm1, %v4939_v43, inf  ;;  %v278_v57 = vsel %vm148_vm0, %v127_v54, 0.0 }
  0x90   :  { %v4946_v47 = vpop.xlane.xlu1 %180  ;;  %945 = vmin.xlane.f32.xlu0 %v944_v46  ;;  %279 = vadd.xlane.f32.xlu1 %v278_v57  ;;  %v752_v57 = vadd.f32 %v4918_v44, %v4911_v19 }
  0x91   :  { %v4949_v51 = vpop.xlane.xlu0 %177 }
  0x92   :  { %v559_v53 = vpop.f32.mrf.mxu0 }
  0x93   :  { %v814_v55 = vmul.f32 2.0, %v559_v53  ;;  %v4960_v61 = vpop.xlane.xlu2 %183 }
  0x95   :  { %4252 = vmatmul.msk.f32.gmra.mxu0 %vm148_vm0, %v4727_v59  ;;  %v4953_v56 = vsub.f32 %v750_v42, %v814_v55 }
  0x97   :  { %v947_v28 = vsel %vm940_vm1, %v4953_v56, inf }
  0x98   :  { %v4958_v60 = vpop.xlane.xlu1 %189  ;;  %948 = vmin.xlane.f32.xlu0 %v947_v28 }
  0x99   :  { %v4962_v62 = vpop.xlane.xlu0 %186 }
  0x9a   :  { %v562_v63 = vpop.f32.mrf.mxu0 }
  0x9b   :  { %v4970_v22 = vpop.xlane.xlu2 %192  ;;  %v815_v32 = vmul.f32 2.0, %v562_v63 }
  0x9d   :  { %4253 = vmatmul.msk.f32.gmra.mxu0 %vm148_vm0, %v4722_v58  ;;  %v4982_v58 = vpop.f32.mrf.mxu2  ;;  %v5047_v55 = vsub.f32 %v751_v36, %v815_v32 }
  0x9e   :  { %8121 = vst [vmem:[#allocation5_spill] sm:$0xff] %v4982_v58 }
  0x9f   :  { %v950_v63 = vsel %vm940_vm1, %v5047_v55, inf }
  0xa0   :  { %v4966_v59 = vpop.xlane.xlu1 %198 }
  0xa1   :  { %v4968_v1 = vpop.xlane.xlu0 %195 }
  0xa2   :  { %v565_v34 = vpop.f32.mrf.mxu0 }
  0xa3   :  { %v4986_v7 = vpop.xlane.xlu2 %201  ;;  %v816_v28 = vmul.f32 2.0, %v565_v34 }
  0xa5   :  { %4254 = vmatmul.msk.f32.gmra.mxu0 %vm148_vm0, %v4746_v0  ;;  %v652_v10 = vpop.f32.mrf.mxu2 }
  0xa6   :  { %v845_v17 = vmul.f32 2.0, %v652_v10 }
  0xa8   :  { %v4978_v3 = vpop.xlane.xlu1 %207 }
  0xa9   :  { %v4980_v6 = vpop.xlane.xlu0 %204 }
  0xaa   :  { %v4984_v39 = vpop.f32.mrf.mxu0 }
  0xab   :  { %v5003_v11 = vpop.xlane.xlu2 %210 }
  0xad   :  { %4255 = vmatmul.msk.f32.gmra.mxu0 %vm148_vm0, %v4760_v5 }
  0xb0   :  { %v4990_v0 = vpop.xlane.xlu1 %216 }
  0xb1   :  { %v4992_v52 = vpop.xlane.xlu0 %213 }
  0xb2   :  { %v4994_v8 = vpop.f32.mrf.mxu0 }
  0xb3   :  { %v5024_v23 = vpop.xlane.xlu2 %219 }
  0xb5   :  { %4256 = vmatmul.msk.f32.gmra.mxu0 %vm148_vm0, %v4755_v4  ;;  %v655_v4 = vpop.f32.mrf.mxu2 }
  0xb8   :  { %v5007_v5 = vpop.xlane.xlu1 %225 }
  0xb9   :  { %v5009_v12 = vpop.xlane.xlu0 %222 }
  0xba   :  { %v5011_v15 = vpop.f32.mrf.mxu0 }
  0xbb   :  { %v5049_v18 = vpop.xlane.xlu2 %228 }
  0xbc   :  { %8123 = vst [vmem:[#allocation7_spill] sm:$0xff] %v5049_v18 }
  0xbd   :  { %4257 = vmatmul.msk.f32.gmra.mxu0 %vm148_vm0, %v4772_v9  ;;  %v5034_v9 = vld [vmem:[%s8016_s0 + $0x180] sm:$0xff]  ;;  %v658_v48 = vpop.f32.mrf.mxu2 }
  0xbe   :  { %4282 = vmatmul.msk.f32.gmra.mxu2 %vm148_vm0, %v5034_v9 }
  0xc0   :  { %v5022_v21 = vpop.xlane.xlu1 %231 }
  0xc1   :  { %v250_v26 = vpop.xlane.xlu0 %249 }
  0xc2   :  { %v781_v27 = vadd.f32 %v4918_v44, %v250_v26  ;;  %v5042_v41 = vpop.f32.mrf.mxu0  ;;  %v5072_v26 = vsub.f32 %v752_v57, %v816_v28 }
  0xc4   :  { %v5027_v31 = vsub.f32 %v781_v27, %v845_v17 }
  0xc5   :  { %4258 = vmatmul.msk.f32.gmra.mxu0 %vm148_vm0, %v4786_v14  ;;  %v846_v14 = vmul.f32 2.0, %v655_v4  ;;  %v5064_v4 = vld [vmem:[%s8016_s0 + $0x188] sm:$0xff]  ;;  %v661_v34 = vpop.f32.mrf.mxu2 }
  0xc6   :  { %v1040_v40 = vsel %vm940_vm1, %v5027_v31, inf  ;;  %4283 = vmatmul.msk.f32.gmra.mxu2 %vm148_vm0, %v5064_v4 }
  0xc7   :  { %1041 = vmin.xlane.f32.xlu2 %v1040_v40  ;;  %v848_v40 = vmul.f32 2.0, %v661_v34 }
  0xc8   :  { %v5044_v46 = vpop.xlane.xlu1 %237 }
  0xc9   :  { %8122 = vst [vmem:[#allocation6_spill] sm:$0xff] %v5044_v46  ;;  %v253_v42 = vpop.xlane.xlu0 %252 }
  0xca   :  { %v782_v53 = vadd.f32 %v4918_v44, %v253_v42  ;;  %v5070_v19 = vpop.f32.mrf.mxu0  ;;  %v953_v42 = vsel %vm940_vm1, %v5072_v26, inf }
  0xcc   :  { %v5051_v54 = vsub.f32 %v782_v53, %v846_v14  ;;  %v5076_v14 = vpop.xlane.xlu2 %234  ;;  %v68_v53 = vld [vmem:[%s8016_s0 + $0x190] sm:$0xff] }
  0xcd   :  { %4259 = vmatmul.msk.f32.gmra.mxu0 %vm148_vm0, %v4781_v13  ;;  %v129_v13 = vmul.f32 %v63_v2, %v63_v2  ;;  %8125 = vst [vmem:[#allocation9_spill] sm:$0xff] %v5076_v14  ;;  %v69_v2 = vld [vmem:[%s8016_s0 + $0x198] sm:$0xff]  ;;  %v664_v34 = vpop.f32.mrf.mxu2 }
  0xce   :  { %v1043_v10 = vsel %vm940_vm1, %v5051_v54, inf  ;;  %v135_v28 = vmul.f32 %v69_v2, %v69_v2  ;;  %4284 = vmatmul.msk.f32.gmra.mxu2 %vm148_vm0, %v68_v53 }
  0xcf   :  { %951 = vmin.xlane.f32.xlu2 %v950_v63  ;;  %1044 = vmin.xlane.f32.xlu0 %v1043_v10  ;;  %v284_v32 = vsel %vm148_vm0, %v129_v13, 0.0 }
  0xd0   :  { %v5066_v17 = vpop.xlane.xlu1 %243  ;;  %v302_v10 = vsel %vm148_vm0, %v135_v28, 0.0  ;;  %v847_v28 = vmul.f32 2.0, %v658_v48 }
  0xd1   :  { %8124 = vst [vmem:[#allocation8_spill] sm:$0xff] %v5066_v17  ;;  %v259_v27 = vpop.xlane.xlu0 %258 }
  0xd2   :  { %v784_v36 = vadd.f32 %v4918_v44, %v259_v27  ;;  %v753_v27 = vadd.f32 %v4918_v44, %v4924_v30 }
  0xd4   :  { %v5090_v63 = vsub.f32 %v784_v36, %v848_v40  ;;  %v5103_v36 = vpop.xlane.xlu2 %240 }
  0xd5   :  { %4260 = vmatmul.msk.f32.gmra.mxu0 %vm148_vm0, %v4802_v20  ;;  %v5093_v20 = vpop.f32.mrf.mxu0  ;;  %8127 = vst [vmem:[#allocation11_spill] sm:$0xff] %v5103_v36 }
  0xd6   :  { %v1049_v13 = vsel %vm940_vm1, %v5090_v63, inf  ;;  %4285 = vmatmul.msk.f32.gmra.mxu2 %vm148_vm0, %v69_v2  ;;  %v667_v2 = vpop.f32.mrf.mxu2 }
  0xd7   :  { %954 = vmin.xlane.f32.xlu2 %v953_v42  ;;  %285 = vadd.xlane.f32.xlu0 %v284_v32  ;;  %v817_v32 = vmul.f32 2.0, %v4984_v39  ;;  %v130_v42 = vmul.f32 %v5001_v38, %v5001_v38 }
  0xd8   :  { %v5088_v57 = vpop.xlane.xlu1 %246 }
  0xd9   :  { %8126 = vst [vmem:[#allocation10_spill] sm:$0xff] %v5088_v57  ;;  %v5109_v57 = vsub.f32 %v753_v27, %v817_v32  ;;  %v287_v39 = vsel %vm148_vm0, %v130_v42, 0.0  ;;  %v131_v27 = vmul.f32 %v5018_v16, %v5018_v16 }
  0xdb   :  { %v956_v48 = vsel %vm940_vm1, %v5109_v57, inf }
  0xdd   :  { %4261 = vmatmul.msk.f32.gmra.mxu0 %vm148_vm0, %v4811_v25  ;;  %v262_v25 = vpop.xlane.xlu0 %261 }
  0xde   :  { %v785_v30 = vadd.f32 %v4918_v44, %v262_v25 }
  0xdf   :  { %303 = vadd.xlane.f32.xlu2 %v302_v10  ;;  %1050 = vmin.xlane.f32.xlu0 %v1049_v13  ;;  %v849_v10 = vmul.f32 2.0, %v664_v34  ;;  %v586_v13 = vpop.f32.mrf.mxu0  ;;  %v265_v34 = vpop.xlane.xlu2 %264 }
  0xe0   :  { %v256_v40 = vpop.xlane.xlu1 %255  ;;  %v786_v42 = vadd.f32 %v4918_v44, %v265_v34 }
  0xe1   :  { %v783_v58 = vadd.f32 %v4918_v44, %v256_v40  ;;  %v5123_v32 = vsub.f32 %v785_v30, %v849_v10  ;;  %v132_v10 = vmul.f32 %v5034_v9, %v5034_v9 }
  0xe3   :  { %v5111_v17 = vsub.f32 %v783_v58, %v847_v28  ;;  %v134_v58 = vmul.f32 %v68_v53, %v68_v53  ;;  %v290_v28 = vsel %vm148_vm0, %v131_v27, 0.0  ;;  %v1052_v25 = vsel %vm940_vm1, %v5123_v32, inf }
  0xe4   :  { %v818_v53 = vmul.f32 2.0, %v4994_v8  ;;  %v293_v27 = vsel %vm148_vm0, %v132_v10, 0.0 }
  0xe5   :  { %4262 = vmatmul.msk.f32.gmra.mxu0 %vm148_vm0, %v4827_v33  ;;  %v1046_v38 = vsel %vm940_vm1, %v5111_v17, inf  ;;  %v299_v40 = vsel %vm148_vm0, %v134_v58, 0.0  ;;  %v850_v33 = vmul.f32 2.0, %v667_v2 }
  0xe6   :  { %1047 = vmin.xlane.f32.xlu1 %v1046_v38  ;;  %v670_v38 = vpop.f32.mrf.mxu2 }
  0xe7   :  { %957 = vmin.xlane.f32.xlu2 %v956_v48  ;;  %288 = vadd.xlane.f32.xlu0 %v287_v39  ;;  %v589_v16 = vpop.f32.mrf.mxu0  ;;  %v5133_v30 = vsub.f32 %v786_v42, %v850_v33  ;;  %v754_v39 = vadd.f32 %v4918_v44, %v4934_v35  ;;  %v268_v48 = vpop.xlane.xlu0 %267  ;;  %v851_v58 = vmul.f32 2.0, %v670_v38  ;;  %v819_v35 = vmul.f32 2.0, %v5011_v15 }
  0xe8   :  { %v133_v33 = vmul.f32 %v5064_v4, %v5064_v4  ;;  %v822_v4 = vmul.f32 2.0, %v5093_v20  ;;  %v271_v38 = vpop.xlane.xlu1 %270 }
  0xe9   :  { %v5139_v2 = vsub.f32 %v754_v39, %v818_v53  ;;  %v1055_v8 = vsel %vm940_vm1, %v5133_v30, inf  ;;  %v820_v53 = vmul.f32 2.0, %v5042_v41  ;;  %v823_v39 = vmul.f32 2.0, %v586_v13 }
  0xea   :  { %v296_v15 = vsel %vm148_vm0, %v133_v33, 0.0  ;;  %v788_v13 = vadd.f32 %v4918_v44, %v271_v38  ;;  %v762_v33 = vadd.f32 %v4918_v44, %v4970_v22 }
  0xeb   :  { %v959_v9 = vsel %vm940_vm1, %v5139_v2, inf }
  0xed   :  { %4263 = vmatmul.msk.f32.gmra.mxu0 %vm148_vm0, %v4836_v37  ;;  %v787_v37 = vadd.f32 %v4918_v44, %v268_v48 }
  0xee   :  { %300 = vadd.xlane.f32.xlu1 %v299_v40  ;;  %v755_v40 = vadd.f32 %v4918_v44, %v4932_v24  ;;  %v759_v24 = vadd.f32 %v4918_v44, %v4960_v61  ;;  %v673_v48 = vpop.f32.mrf.mxu2 }
  0xef   :  { %291 = vadd.xlane.f32.xlu0 %v290_v28  ;;  %1053 = vmin.xlane.f32.xlu2 %v1052_v25  ;;  %v5150_v34 = vsub.f32 %v787_v37, %v851_v58  ;;  %v5156_v42 = vpop.f32.mrf.mxu0  ;;  %v756_v25 = vadd.f32 %v4918_v44, %v4942_v29  ;;  %v758_v29 = vadd.f32 %v4918_v44, %v4946_v47  ;;  %v852_v20 = vmul.f32 2.0, %v673_v48 }
  0xf0   :  { %v5158_v28 = vsub.f32 %v755_v40, %v819_v35  ;;  %v824_v58 = vmul.f32 2.0, %v589_v16  ;;  %v760_v40 = vadd.f32 %v4918_v44, %v4962_v62  ;;  %v757_v62 = vadd.f32 %v4918_v44, %v4949_v51 }
  0xf1   :  { %v5175_v41 = vsub.f32 %v756_v25, %v820_v53  ;;  %v5179_v37 = vsub.f32 %v758_v29, %v822_v4  ;;  %v821_v53 = vmul.f32 2.0, %v5070_v19 }
  0xf2   :  { %v962_v10 = vsel %vm940_vm1, %v5158_v28, inf  ;;  %v5196_v16 = vsub.f32 %v760_v40, %v824_v58 }
  0xf3   :  { %v971_v35 = vsel %vm940_vm1, %v5179_v37, inf  ;;  %v5207_v22 = vsub.f32 %v757_v62, %v821_v53 }
  0xf4   :  { %v977_v4 = vsel %vm940_vm1, %v5196_v16, inf }
  0xf5   :  { %4264 = vmatmul.msk.f32.gmra.mxu0 %vm148_vm0, %v4852_v45  ;;  %v1058_v45 = vsel %vm940_vm1, %v5150_v34, inf  ;;  %v968_v19 = vsel %vm940_vm1, %v5207_v22, inf }
  0xf6   :  { %1056 = vmin.xlane.f32.xlu1 %v1055_v8  ;;  %v965_v8 = vsel %vm940_vm1, %v5175_v41, inf  ;;  %v676_v25 = vpop.f32.mrf.mxu2 }
  0xf7   :  { %294 = vadd.xlane.f32.xlu0 %v293_v27  ;;  %960 = vmin.xlane.f32.xlu2 %v959_v9  ;;  %v595_v61 = vpop.f32.mrf.mxu0  ;;  %v5188_v9 = vsub.f32 %v788_v13, %v852_v20  ;;  %v853_v29 = vmul.f32 2.0, %v676_v25 }
  0xf8   :  { %v826_v27 = vmul.f32 2.0, %v595_v61 }
  0xf9   :  { %v277_v61 = vpop.xlane.xlu2 %276 }
  0xfa   :  { %v790_v13 = vadd.f32 %v4918_v44, %v277_v61  ;;  %v825_v61 = vmul.f32 2.0, %v5156_v42 }
  0xfd   :  { %4265 = vmatmul.msk.f32.gmra.mxu0 %vm148_vm0, %v4861_v50  ;;  %v5177_v50 = vsub.f32 %v759_v24, %v823_v39  ;;  %v274_v39 = vpop.xlane.xlu0 %273 }
  0xfe   :  { %1059 = vmin.xlane.f32.xlu1 %v1058_v45  ;;  %v5194_v45 = vsub.f32 %v762_v33, %v826_v27  ;;  %v679_v38 = vpop.f32.mrf.mxu2 }
  0xff   :  { %297 = vadd.xlane.f32.xlu0 %v296_v15  ;;  %963 = vmin.xlane.f32.xlu2 %v962_v10  ;;  %v974_v47 = vsel %vm940_vm1, %v5177_v50, inf  ;;  %v1061_v15 = vsel %vm940_vm1, %v5188_v9, inf  ;;  %v789_v10 = vadd.f32 %v4918_v44, %v274_v39  ;;  %v854_v20 = vmul.f32 2.0, %v679_v38 }
 0x100   :  { %8128 = vst [vmem:[#allocation12_spill] sm:$0xff] %v5194_v45  ;;  %v983_v24 = vsel %vm940_vm1, %v5194_v45, inf  ;;  %v1133_v38 = vlaneseq }
 0x101   :  { %v5212_v48 = vsub.f32 %v789_v10, %v853_v29  ;;  %v5217_v58 = vsub.f32 %v790_v13, %v854_v20  ;;  %v761_v13 = vadd.f32 %v4918_v44, %v4958_v60 }
 0x103   :  { %v1064_v51 = vsel %vm940_vm1, %v5212_v48, inf  ;;  %v1067_v33 = vsel %vm940_vm1, %v5217_v58, inf }
 0x106   :  { %966 = vmin.xlane.f32.xlu1 %v965_v8  ;;  %v283_v8 = vpop.xlane.xlu0 %282  ;;  %v682_v27 = vpop.f32.mrf.mxu2 }
 0x107   :  { %975 = vmin.xlane.f32.xlu0 %v974_v47  ;;  %972 = vmin.xlane.f32.xlu2 %v971_v35  ;;  %v280_v47 = vpop.xlane.xlu1 %279  ;;  %v5219_v35 = vpop.f32.mrf.mxu0  ;;  %v855_v40 = vmul.f32 2.0, %v682_v27  ;;  %v792_v62 = vadd.f32 %v4918_v44, %v283_v8  ;;  %v5243_v27 = vsub.f32 %v761_v13, %v825_v61 }
 0x10e   :  { %1062 = vmin.xlane.f32.xlu1 %v1061_v15  ;;  %v791_v15 = vadd.f32 %v4918_v44, %v280_v47  ;;  %v943_v25 = vpop.xlane.xlu0 %942 }
 0x10f   :  { %984 = vmin.xlane.f32.xlu0 %v983_v24  ;;  %978 = vmin.xlane.f32.xlu2 %v977_v4  ;;  %v685_v24 = vpop.f32.mrf.mxu2  ;;  %v5229_v39 = vpop.f32.mrf.mxu0  ;;  %vm1135_vm2 = vcmp.eq.f32.partialorder %v4928_v49, %v943_v25 }
 0x110   :  { %v5224_v53 = vsub.f32 %v791_v15, %v855_v40  ;;  %v856_v10 = vmul.f32 2.0, %v685_v24 }
 0x112   :  { %v1070_v4 = vsel %vm940_vm1, %v5224_v53, inf }
 0x116   :  { %969 = vmin.xlane.f32.xlu1 %v968_v19  ;;  %v946_v29 = vpop.xlane.xlu0 %945  ;;  %v5231_v19 = vsub.f32 %v792_v62, %v856_v10 }
 0x117   :  { %v5241_v8 = vpop.f32.mrf.mxu0  ;;  %vm1136_vm3 = vcmp.eq.f32.partialorder %v4939_v43, %v946_v29 }
 0x118   :  { %v1073_v20 = vsel %vm940_vm1, %v5231_v19, inf }
 0x11e   :  { %1065 = vmin.xlane.f32.xlu1 %v1064_v51  ;;  %v5236_v51 = vand.u32 127, %v1133_v38  ;;  %v5246_v40 = vpop.xlane.xlu0 %948  ;;  %v688_v38 = vpop.f32.mrf.mxu2 }
 0x11f   :  { %v5255_v60 = vpop.f32.mrf.mxu0  ;;  %v857_v43 = vmul.f32 2.0, %v688_v38  ;;  %vm1137_vm8 = vcmp.eq.f32.partialorder %v4953_v56, %v5246_v40 }
 0x120   :  { %v1199_v47 = vsel %vm1135_vm2, %v5236_v51, 8  ;;  %v1200_v25 = vsel %vm1136_vm3, %v5236_v51, 8 }
 0x121   :  { %v5251_v15 = vsel %vm940_vm1, %v1199_v47, 2147483647  ;;  %v5263_v10 = vsel %vm940_vm1, %v1200_v25, 2147483647 }
 0x122   :  { %v1265_v49 = vshra.s32 %v5251_v15, 16  ;;  %8130 = vst [vmem:[#allocation14_spill] sm:$0xff] %v5263_v10  ;;  %v1280_v61 = vshra.s32 %v5263_v10, 16 }
 0x124   :  { %v5260_v62 = vcvt.s32.f32 %v1265_v49  ;;  %v5274_v25 = vcvt.s32.f32 %v1280_v61 }
 0x126   :  { %1068 = vmin.xlane.f32.xlu1 %v1067_v33  ;;  %v980_v33 = vsel %vm940_vm1, %v5243_v27, inf  ;;  %8129 = vst [vmem:[#allocation13_spill] sm:$0xff] %v5260_v62  ;;  %v691_v61 = vpop.f32.mrf.mxu2 }
 0x127   :  { %v5268_v13 = vpop.f32.mrf.mxu0  ;;  %8131 = vst [vmem:[#allocation15_spill] sm:$0xff] %v5274_v25 }
 0x12e   :  { %1071 = vmin.xlane.f32.xlu1 %v1070_v4  ;;  %v694_v10 = vpop.f32.mrf.mxu2 }
 0x136   :  { %1074 = vmin.xlane.f32.xlu1 %v1073_v20 }
 0x13a   :  { %v1042_v42 = vpop.xlane.xlu2 %1041 }
 0x13b   :  { %vm1168_vm4 = vcmp.eq.f32.partialorder %v5027_v31, %v1042_v42  ;;  %v5285_v31 = vld [vmem:[%s8016_s0 + $0x1a0] sm:$0xff] }
 0x13c   :  { %4286 = vmatmul.msk.f32.gmra.mxu2 %vm148_vm0, %v5285_v31 }
 0x13e   :  { %981 = vmin.xlane.f32.xlu1 %v980_v33  ;;  %v1232_v33 = vsel %vm1168_vm4, %v5236_v51, 8 }
 0x13f   :  { %v5290_v42 = vsel %vm940_vm1, %v1232_v33, 2147483647  ;;  %v5304_v33 = vpop.f32.mrf.mxu0 }
 0x140   :  { %8134 = vst [vmem:[#allocation18_spill] sm:$0xff] %v5290_v42 }
 0x142   :  { %v5258_v24 = vpop.xlane.xlu2 %951  ;;  %v1045_v4 = vpop.xlane.xlu0 %1044 }
 0x143   :  { %vm1169_vm6 = vcmp.eq.f32.partialorder %v5051_v54, %v1045_v4  ;;  %v71_v54 = vld [vmem:[%s8016_s0 + $0x1a8] sm:$0xff]  ;;  %vm1138_vm12 = vcmp.eq.f32.partialorder %v5047_v55, %v5258_v24 }
 0x144   :  { %4287 = vmatmul.msk.f32.gmra.mxu2 %vm148_vm0, %v71_v54 }
 0x146   :  { %1268 = vmin.xlane.f32.xlu1 %v5260_v62 }
 0x14a   :  { %v955_v29 = vpop.xlane.xlu2 %954  ;;  %v286_v20 = vpop.xlane.xlu0 %285 }
 0x14b   :  { %vm1139_vm5 = vcmp.eq.f32.partialorder %v5072_v26, %v955_v29  ;;  %v793_v47 = vadd.f32 %v4918_v44, %v286_v20  ;;  %v1760_v20 = vshra.s32 %v5290_v42, 16 }
 0x14c   :  { %v1203_v49 = vsel %vm1139_vm5, %v5236_v51, 8 }
 0x14d   :  { %v5276_v46 = vsub.f32 %v793_v47, %v857_v43  ;;  %v5279_v36 = vsel %vm940_vm1, %v1203_v49, 2147483647  ;;  %v1233_v47 = vsel %vm1169_vm6, %v5236_v51, 8 }
 0x14e   :  { %8133 = vst [vmem:[#allocation17_spill] sm:$0xff] %v5279_v36  ;;  %1283 = vmin.xlane.f32.xlu1 %v5274_v25  ;;  %v1325_v38 = vshra.s32 %v5279_v36, 16  ;;  %v5313_v4 = vsel %vm940_vm1, %v1233_v47, 2147483647  ;;  %v858_v36 = vmul.f32 2.0, %v691_v61  ;;  %v72_v61 = vld [vmem:[%s8016_s0 + $0x1b0] sm:$0xff] }
 0x14f   :  { %8132 = vst [vmem:[#allocation16_spill] sm:$0xff] %v5276_v46  ;;  %v1076_v26 = vsel %vm940_vm1, %v5276_v46, inf  ;;  %4288 = vmatmul.msk.f32.gmra.mxu2 %vm148_vm0, %v72_v61 }
 0x150   :  { %1077 = vmin.xlane.f32.xlu2 %v1076_v26  ;;  %v5302_v49 = vcvt.s32.f32 %v1325_v38  ;;  %v5307_v26 = vcvt.s32.f32 %v1760_v20  ;;  %8137 = vst [vmem:[#allocation21_spill] sm:$0xff] %v5313_v4 }
 0x152   :  { %v5296_v43 = vpop.xlane.xlu2 %303  ;;  %v5298_v29 = vpop.xlane.xlu0 %1050  ;;  %8135 = vst [vmem:[#allocation19_spill] sm:$0xff] %v5302_v49 }
 0x153   :  { %8136 = vst [vmem:[#allocation20_spill] sm:$0xff] %v5307_v26  ;;  %vm1171_vm9 = vcmp.eq.f32.partialorder %v5090_v63, %v5298_v29 }
 0x154   :  { %v1235_v56 = vsel %vm1171_vm9, %v5236_v51, 8 }
 0x156   :  { %1328 = vmin.xlane.f32.xlu1 %v5302_v49  ;;  %v1775_v49 = vshra.s32 %v5313_v4, 16 }
 0x158   :  { %1763 = vmin.xlane.f32.xlu2 %v5307_v26  ;;  %v5325_v46 = vcvt.s32.f32 %v1775_v49 }
 0x159   :  { %v1048_v38 = vpop.xlane.xlu1 %1047 }
 0x15a   :  { %vm1170_vm7 = vcmp.eq.f32.partialorder %v5111_v17, %v1048_v38  ;;  %v289_v42 = vpop.xlane.xlu0 %288  ;;  %v5319_v20 = vpop.xlane.xlu2 %957  ;;  %8139 = vst [vmem:[#allocation23_spill] sm:$0xff] %v5325_v46  ;;  %v827_v17 = vmul.f32 2.0, %v5219_v35 }
 0x15b   :  { %v794_v25 = vadd.f32 %v4918_v44, %v289_v42  ;;  %v1234_v14 = vsel %vm1170_vm7, %v5236_v51, 8  ;;  %v616_v38 = vpop.f32.mrf.mxu0  ;;  %vm1140_vm11 = vcmp.eq.f32.partialorder %v5109_v57, %v5319_v20 }
 0x15c   :  { %v5334_v4 = vsel %vm940_vm1, %v1234_v14, 2147483647 }
 0x15d   :  { %v5323_v47 = vsub.f32 %v794_v25, %v858_v36  ;;  %8140 = vst [vmem:[#allocation24_spill] sm:$0xff] %v5334_v4  ;;  %v763_v36 = vadd.f32 %v4918_v44, %v4968_v1  ;;  %v859_v25 = vmul.f32 2.0, %v694_v10  ;;  %v1790_v35 = vshra.s32 %v5334_v4, 16 }
 0x15f   :  { %8138 = vst [vmem:[#allocation22_spill] sm:$0xff] %v5323_v47  ;;  %v1079_v26 = vsel %vm940_vm1, %v5323_v47, inf  ;;  %v5344_v47 = vsub.f32 %v763_v36, %v827_v17  ;;  %v5350_v45 = vcvt.s32.f32 %v1790_v35  ;;  %v764_v17 = vadd.f32 %v4918_v44, %v4966_v59 }
 0x160   :  { %1778 = vmin.xlane.f32.xlu2 %v5325_v46  ;;  %1080 = vmin.xlane.f32.xlu0 %v1079_v26  ;;  %v697_v26 = vpop.f32.mrf.mxu2  ;;  %v828_v46 = vmul.f32 2.0, %v5229_v39  ;;  %v137_v39 = vmul.f32 %v71_v54, %v71_v54  ;;  %v138_v54 = vmul.f32 %v72_v61, %v72_v61 }
 0x161   :  { %v5340_v42 = vpop.xlane.xlu1 %300  ;;  %8141 = vst [vmem:[#allocation25_spill] sm:$0xff] %v5344_v47  ;;  %v986_v1 = vsel %vm940_vm1, %v5344_v47, inf }
 0x162   :  { %v292_v49 = vpop.xlane.xlu0 %291  ;;  %v5346_v14 = vpop.xlane.xlu2 %1053  ;;  %8143 = vst [vmem:[#allocation27_spill] sm:$0xff] %v5350_v45  ;;  %v5365_v4 = vsub.f32 %v764_v17, %v828_v46  ;;  %v765_v46 = vadd.f32 %v4918_v44, %v4986_v7  ;;  %v769_v17 = vadd.f32 %v4918_v44, %v4992_v52  ;;  %v1201_v7 = vsel %vm1137_vm8, %v5236_v51, 8 }
 0x163   :  { %v795_v18 = vadd.f32 %v4918_v44, %v292_v49  ;;  %v5360_v36 = vpop.f32.mrf.mxu0  ;;  %v5399_v52 = vsel %vm940_vm1, %v1201_v7, 2147483647  ;;  %v766_v7 = vadd.f32 %v4918_v44, %v4980_v6  ;;  %vm1172_vm13 = vcmp.eq.f32.partialorder %v5123_v32, %v5346_v14 }
 0x164   :  { %v989_v59 = vsel %vm940_vm1, %v5365_v4, inf  ;;  %v1202_v6 = vsel %vm1138_vm12, %v5236_v51, 8 }
 0x165   :  { %v5348_v62 = vsub.f32 %v795_v18, %v859_v25  ;;  %v860_v18 = vmul.f32 2.0, %v697_v26 }
 0x167   :  { %8142 = vst [vmem:[#allocation26_spill] sm:$0xff] %v5348_v62  ;;  %v1082_v10 = vsel %vm940_vm1, %v5348_v62, inf  ;;  %v308_v62 = vsel %vm148_vm0, %v137_v39, 0.0  ;;  %v1295_v39 = vshra.s32 %v5399_v52, 16 }
 0x168   :  { %1793 = vmin.xlane.f32.xlu2 %v5350_v45  ;;  %987 = vmin.xlane.f32.xlu0 %v986_v1  ;;  %v829_v1 = vmul.f32 2.0, %v5241_v8 }
 0x169   :  { %1083 = vmin.xlane.f32.xlu1 %v1082_v10  ;;  %v5362_v25 = vpop.xlane.xlu1 %1056  ;;  %v833_v10 = vmul.f32 2.0, %v616_v38 }
 0x16a   :  { %v295_v49 = vpop.xlane.xlu0 %294  ;;  %v961_v45 = vpop.xlane.xlu2 %960  ;;  %vm1173_vm2 = vcmp.eq.f32.partialorder %v5133_v30, %v5362_v25  ;;  %v832_v25 = vmul.f32 2.0, %v5304_v33 }
 0x16b   :  { %v796_v35 = vadd.f32 %v4918_v44, %v295_v49  ;;  %vm1141_vm10 = vcmp.eq.f32.partialorder %v5139_v2, %v961_v45  ;;  %v5386_v38 = vpop.f32.mrf.mxu0  ;;  %v5392_v40 = vsub.f32 %v769_v17, %v833_v10  ;;  %v5402_v2 = vsel %vm940_vm1, %v1235_v56, 2147483647 }
 0x16c   :  { %v1205_v63 = vsel %vm1141_vm10, %v5236_v51, 8  ;;  %v5417_v10 = vcvt.s32.f32 %v1295_v39  ;;  %v772_v56 = vadd.f32 %v4918_v44, %v5009_v12 }
 0x16d   :  { %v5367_v47 = vsub.f32 %v796_v35, %v860_v18  ;;  %v5388_v18 = vsub.f32 %v765_v46, %v829_v1  ;;  %v1004_v45 = vsel %vm940_vm1, %v5392_v40, inf  ;;  %v5407_v61 = vsel %vm940_vm1, %v1205_v63, 2147483647 }
 0x16e   :  { %v1805_v35 = vshra.s32 %v5402_v2, 16  ;;  %v1355_v1 = vshra.s32 %v5407_v61, 16 }
 0x16f   :  { %8144 = vst [vmem:[#allocation28_spill] sm:$0xff] %v5367_v47  ;;  %v1085_v26 = vsel %vm940_vm1, %v5367_v47, inf  ;;  %v992_v29 = vsel %vm940_vm1, %v5388_v18, inf }
 0x170   :  { %990 = vmin.xlane.f32.xlu0 %v989_v59  ;;  %1086 = vmin.xlane.f32.xlu2 %v1085_v26  ;;  %v1204_v59 = vsel %vm1140_vm11, %v5236_v51, 8  ;;  %v5419_v46 = vcvt.s32.f32 %v1805_v35  ;;  %v5422_v17 = vcvt.s32.f32 %v1355_v1 }
 0x171   :  { %309 = vadd.xlane.f32.xlu1 %v308_v62  ;;  %v5381_v8 = vpop.xlane.xlu1 %1059  ;;  %v311_v62 = vsel %vm148_vm0, %v138_v54, 0.0  ;;  %v830_v54 = vmul.f32 2.0, %v5255_v60  ;;  %v5425_v57 = vsel %vm940_vm1, %v1204_v59, 2147483647 }
 0x172   :  { %v1340_v63 = vshra.s32 %v5425_v57, 16  ;;  %v5446_v24 = vpop.xlane.xlu2 %963  ;;  %vm1174_vm8 = vcmp.eq.f32.partialorder %v5150_v34, %v5381_v8 }
 0x173   :  { %v625_v26 = vpop.f32.mrf.mxu0  ;;  %vm1142_vm5 = vcmp.eq.f32.partialorder %v5158_v28, %v5446_v24 }
 0x174   :  { %v836_v20 = vmul.f32 2.0, %v625_v26  ;;  %v5449_v14 = vcvt.s32.f32 %v1340_v63  ;;  %v834_v63 = vmul.f32 2.0, %v5360_v36 }
 0x176   :  { %v5444_v55 = vsub.f32 %v772_v56, %v836_v20 }
 0x178   :  { %993 = vmin.xlane.f32.xlu0 %v992_v29  ;;  %312 = vadd.xlane.f32.xlu2 %v311_v62  ;;  %v5440_v62 = vsub.f32 %v766_v7, %v830_v54  ;;  %v1236_v29 = vsel %vm1172_vm13, %v5236_v51, 8  ;;  %8145 = vst [vmem:[#allocation29_spill] sm:$0xff] %v5444_v55  ;;  %v1013_v39 = vsel %vm940_vm1, %v5444_v55, inf  ;;  %v831_v7 = vmul.f32 2.0, %v5268_v13 }
 0x179   :  { %1005 = vmin.xlane.f32.xlu1 %v1004_v45  ;;  %v5411_v49 = vpop.xlane.xlu1 %966  ;;  %v5457_v45 = vsel %vm940_vm1, %v1236_v29, 2147483647  ;;  %v770_v13 = vadd.f32 %v4918_v44, %v4990_v0 }
 0x17a   :  { %v995_v12 = vsel %vm940_vm1, %v5440_v62, inf  ;;  %v1820_v26 = vshra.s32 %v5457_v45, 16  ;;  %vm1143_vm4 = vcmp.eq.f32.partialorder %v5175_v41, %v5411_v49  ;;  %v5534_v41 = vpop.xlane.xlu0 %297 }
 0x17c   :  { %v5473_v56 = vcvt.s32.f32 %v1820_v26 }
 0x180   :  { %1298 = vmin.xlane.f32.xlu0 %v5417_v10  ;;  %1808 = vmin.xlane.f32.xlu2 %v5419_v46 }
 0x181   :  { %1358 = vmin.xlane.f32.xlu1 %v5422_v17  ;;  %v1063_v60 = vpop.xlane.xlu1 %1062 }
 0x182   :  { %vm1175_vm14 = vcmp.eq.f32.partialorder %v5188_v9, %v1063_v60  ;;  %v5454_v9 = vsel %vm940_vm1, %v1202_v6, 2147483647  ;;  %v973_v6 = vpop.xlane.xlu2 %972 }
 0x183   :  { %v1239_v32 = vsel %vm1175_vm14, %v5236_v51, 8  ;;  %v1310_v59 = vshra.s32 %v5454_v9, 16  ;;  %vm1145_vm3 = vcmp.eq.f32.partialorder %v5179_v37, %v973_v6 }
 0x184   :  { %v5463_v35 = vsel %vm940_vm1, %v1239_v32, 2147483647  ;;  %v1209_v0 = vsel %vm1145_vm3, %v5236_v51, 8 }
 0x185   :  { %v1865_v54 = vshra.s32 %v5463_v35, 16  ;;  %v5471_v60 = vcvt.s32.f32 %v1310_v59  ;;  %v5499_v59 = vpop.f32.mrf.mxu2 }
 0x187   :  { %v5476_v29 = vcvt.s32.f32 %v1865_v54 }
 0x188   :  { %996 = vmin.xlane.f32.xlu0 %v995_v12  ;;  %1343 = vmin.xlane.f32.xlu2 %v5449_v14 }
 0x189   :  { %1014 = vmin.xlane.f32.xlu1 %v1013_v39  ;;  %v970_v1 = vpop.xlane.xlu1 %969  ;;  %v5496_v39 = vsub.f32 %v770_v13, %v834_v63  ;;  %v5529_v13 = vld [vmem:[%s8016_s0 + $0x1b8] sm:$0xff] }
 0x18a   :  { %vm1144_vm15 = vcmp.eq.f32.partialorder %v5207_v22, %v970_v1  ;;  %v767_v22 = vadd.f32 %v4918_v44, %v4978_v3  ;;  %v1237_v1 = vsel %vm1173_vm2, %v5236_v51, 8  ;;  %4289 = vmatmul.msk.f32.gmra.mxu2 %vm148_vm0, %v5529_v13 }
 0x18b   :  { %v1208_v20 = vsel %vm1144_vm15, %v5236_v51, 8  ;;  %v1007_v37 = vsel %vm940_vm1, %v5496_v39, inf  ;;  %v5510_v54 = vsel %vm940_vm1, %v1237_v1, 2147483647 }
 0x18c   :  { %v5483_v32 = vsel %vm940_vm1, %v1208_v20, 2147483647  ;;  %v5493_v3 = vsub.f32 %v767_v22, %v831_v7  ;;  %v5513_v20 = vsel %vm940_vm1, %v1209_v0, 2147483647  ;;  %v768_v7 = vadd.f32 %v4918_v44, %v5003_v11 }
 0x18d   :  { %v1400_v12 = vshra.s32 %v5483_v32, 16  ;;  %v1835_v63 = vshra.s32 %v5510_v54, 16  ;;  %v1415_v22 = vshra.s32 %v5513_v20, 16  ;;  %v1207_v11 = vsel %vm1143_vm4, %v5236_v51, 8 }
 0x18e   :  { %v998_v30 = vsel %vm940_vm1, %v5493_v3, inf  ;;  %v5523_v6 = vsub.f32 %v768_v7, %v832_v25  ;;  %v798_v25 = vadd.f32 %v4918_v44, %v5340_v42  ;;  %v628_v7 = vpop.f32.mrf.mxu0  ;;  %v74_v42 = vld [vmem:[%s8016_s0 + $0x1c0] sm:$0xff] }
 0x18f   :  { %v5505_v26 = vcvt.s32.f32 %v1400_v12  ;;  %v5536_v49 = vcvt.s32.f32 %v1835_v63  ;;  %v703_v12 = vpop.f32.mrf.mxu2  ;;  %v5540_v0 = vcvt.s32.f32 %v1415_v22  ;;  %v136_v63 = vmul.f32 %v5285_v31, %v5285_v31  ;;  %v976_v31 = vpop.xlane.xlu0 %975 }
 0x190   :  { %1313 = vmin.xlane.f32.xlu0 %v5471_v60  ;;  %1823 = vmin.xlane.f32.xlu2 %v5473_v56  ;;  %v1001_v1 = vsel %vm940_vm1, %v5523_v6, inf  ;;  %v837_v47 = vmul.f32 2.0, %v628_v7  ;;  %vm1146_vm7 = vcmp.eq.f32.partialorder %v5177_v50, %v976_v31  ;;  %v140_v7 = vmul.f32 %v74_v42, %v74_v42 }
 0x191   :  { %1868 = vmin.xlane.f32.xlu1 %v5476_v29  ;;  %v5490_v36 = vpop.xlane.xlu1 %1065  ;;  %v305_v28 = vsel %vm148_vm0, %v136_v63, 0.0  ;;  %v835_v50 = vmul.f32 2.0, %v5386_v38 }
 0x192   :  { %4290 = vmatmul.msk.f32.gmra.mxu2 %vm148_vm0, %v74_v42  ;;  %vm1176_vm6 = vcmp.eq.f32.partialorder %v5212_v48, %v5490_v36  ;;  %v317_v36 = vsel %vm148_vm0, %v140_v7, 0.0  ;;  %v5600_v42 = vld [vmem:[%s8018_s2] ss:$0 sm:$0xff] }
 0x193   :  { %v771_v31 = vadd.f32 %v5600_v42, %v5024_v23  ;;  %v799_v34 = vadd.f32 %v5600_v42, %v5296_v43 }
 0x196   :  { %v5578_v63 = vpop.f32.mrf.mxu0 }
 0x198   :  { %999 = vmin.xlane.f32.xlu0 %v998_v30  ;;  %1008 = vmin.xlane.f32.xlu2 %v1007_v37  ;;  %v5543_v30 = vsel %vm940_vm1, %v1207_v11, 2147483647  ;;  %v862_v37 = vmul.f32 2.0, %v703_v12  ;;  %v1206_v12 = vsel %vm1142_vm5, %v5236_v51, 8 }
 0x199   :  { %1403 = vmin.xlane.f32.xlu1 %v5505_v26  ;;  %v5520_v33 = vpop.xlane.xlu1 %1068  ;;  %8146 = vst [vmem:[#allocation30_spill] sm:$0xff] %v5543_v30  ;;  %v1385_v11 = vshra.s32 %v5543_v30, 16  ;;  %v5567_v55 = vsel %vm940_vm1, %v1206_v12, 2147483647  ;;  %v75_v12 = vld [vmem:[%s8016_s0 + $0x1c8] sm:$0xff] }
 0x19a   :  { %4291 = vmatmul.msk.f32.gmra.mxu2 %vm148_vm0, %v75_v12  ;;  %vm1177_vm12 = vcmp.eq.f32.partialorder %v5217_v58, %v5520_v33 }
 0x19b   :  { %v5564_v24 = vcvt.s32.f32 %v1385_v11 }
 0x19d   :  { %8148 = vst [vmem:[#allocation32_spill] sm:$0xff] %v5564_v24 }
 0x19e   :  { %v634_v23 = vpop.f32.mrf.mxu0 }
 0x1a0   :  { %1002 = vmin.xlane.f32.xlu0 %v1001_v1  ;;  %1838 = vmin.xlane.f32.xlu2 %v5536_v49  ;;  %v5560_v1 = vsub.f32 %v798_v25, %v862_v37  ;;  %v773_v25 = vadd.f32 %v4918_v44, %v5007_v5  ;;  %v1370_v37 = vshra.s32 %v5567_v55, 16  ;;  %v1210_v5 = vsel %vm1146_vm7, %v5236_v51, 8 }
 0x1a1   :  { %1418 = vmin.xlane.f32.xlu1 %v5540_v0  ;;  %v5553_v22 = vpop.xlane.xlu1 %1071  ;;  %v5606_v38 = vsel %vm940_vm1, %v1210_v5, 2147483647 }
 0x1a2   :  { %8147 = vst [vmem:[#allocation31_spill] sm:$0xff] %v5560_v1  ;;  %v1091_v30 = vsel %vm940_vm1, %v5560_v1, inf  ;;  %v5580_v11 = vsub.f32 %v773_v25, %v837_v47  ;;  %v5589_v48 = vcvt.s32.f32 %v1370_v37  ;;  %v5610_v25 = vsub.f32 %v771_v31, %v835_v50  ;;  %v706_v1 = vpop.f32.mrf.mxu2 }
 0x1a3   :  { %v1430_v7 = vshra.s32 %v5606_v38, 16  ;;  %v863_v8 = vmul.f32 2.0, %v706_v1  ;;  %v839_v31 = vmul.f32 2.0, %v634_v23  ;;  %vm1178_vm9 = vcmp.eq.f32.partialorder %v5224_v53, %v5553_v22  ;;  %v979_v1 = vpop.xlane.xlu2 %978 }
 0x1a4   :  { %8149 = vst [vmem:[#allocation33_spill] sm:$0xff] %v5580_v11  ;;  %v1016_v47 = vsel %vm940_vm1, %v5580_v11, inf  ;;  %vm1147_vm11 = vcmp.eq.f32.partialorder %v5196_v16, %v979_v1  ;;  %v985_v1 = vpop.xlane.xlu0 %984 }
 0x1a5   :  { %v5621_v50 = vcvt.s32.f32 %v1430_v7 }
 0x1a7   :  { %8150 = vst [vmem:[#allocation34_spill] sm:$0xff] %v5621_v50 }
 0x1a8   :  { %306 = vadd.xlane.f32.xlu0 %v305_v28  ;;  %1388 = vmin.xlane.f32.xlu2 %v5564_v24  ;;  %v1240_v28 = vsel %vm1176_vm6, %v5236_v51, 8  ;;  %v775_v24 = vadd.f32 %v5600_v42, %v5022_v21 }
 0x1a9   :  { %1092 = vmin.xlane.f32.xlu1 %v1091_v30  ;;  %v1075_v44 = vpop.xlane.xlu1 %1074  ;;  %v5595_v30 = vsel %vm940_vm1, %v1240_v28, 2147483647  ;;  %v1238_v28 = vsel %vm1174_vm8, %v5236_v51, 8 }
 0x1aa   :  { %v1880_v37 = vshra.s32 %v5595_v30, 16  ;;  %v5635_v7 = vsub.f32 %v775_v24, %v839_v31  ;;  %vm1179_vm10 = vcmp.eq.f32.partialorder %v5231_v19, %v1075_v44 }
 0x1ab   :  { %v1243_v31 = vsel %vm1179_vm10, %v5236_v51, 8 }
 0x1ac   :  { %v5617_v5 = vcvt.s32.f32 %v1880_v37  ;;  %v5633_v37 = vsub.f32 %v799_v34, %v863_v8  ;;  %8152 = vst [vmem:[#allocation36_spill] sm:$0xff] %v5635_v7  ;;  %v1022_v22 = vsel %vm940_vm1, %v5635_v7, inf  ;;  %v5666_v19 = vsel %vm940_vm1, %v1243_v31, 2147483647 }
 0x1ad   :  { %v1264_v31 = vand.u32 65535, %v5251_v15  ;;  %v838_v15 = vmul.f32 2.0, %v5578_v63 }
 0x1ae   :  { %8151 = vst [vmem:[#allocation35_spill] sm:$0xff] %v5633_v37  ;;  %v1094_v21 = vsel %vm940_vm1, %v5633_v37, inf }
 0x1b0   :  { %1373 = vmin.xlane.f32.xlu0 %v5589_v48  ;;  %1017 = vmin.xlane.f32.xlu2 %v1016_v47  ;;  %v1010_v47 = vsel %vm940_vm1, %v5610_v25, inf }
 0x1b1   :  { %318 = vadd.xlane.f32.xlu1 %v317_v36  ;;  %v982_v11 = vpop.xlane.xlu1 %981  ;;  %v5624_v36 = vsel %vm940_vm1, %v1238_v28, 2147483647  ;;  %v1242_v28 = vsel %vm1178_vm9, %v5236_v51, 8 }
 0x1b2   :  { %v1850_v43 = vshra.s32 %v5624_v36, 16  ;;  %v5651_v24 = vsel %vm940_vm1, %v1242_v28, 2147483647  ;;  %vm1148_vm13 = vcmp.eq.f32.partialorder %v5243_v27, %v982_v11 }
 0x1b3   :  { %v1910_v8 = vshra.s32 %v5651_v24, 16  ;;  %v1212_v58 = vsel %vm1148_vm13, %v5236_v51, 8 }
 0x1b4   :  { %v5638_v23 = vcvt.s32.f32 %v1850_v43  ;;  %v1211_v43 = vsel %vm1147_vm11, %v5236_v51, 8  ;;  %v5695_v11 = vsel %vm940_vm1, %v1212_v58, 2147483647 }
 0x1b5   :  { %v5663_v37 = vcvt.s32.f32 %v1910_v8  ;;  %v5669_v16 = vsel %vm940_vm1, %v1211_v43, 2147483647  ;;  %8158 = vst [vmem:[#allocation42_spill] sm:$0xff] %v5695_v11  ;;  %v8159_v43 = vld [vmem:[#allocation12_spill] sm:$0xff] }
 0x1b6   :  { %8154 = vst [vmem:[#allocation38_spill] sm:$0xff] %v5669_v16  ;;  %vm1149_vm14 = vcmp.eq.f32.partialorder %v8159_v43, %v985_v1 }
 0x1b7   :  { %8153 = vst [vmem:[#allocation37_spill] sm:$0xff] %v5663_v37  ;;  %v1213_v58 = vsel %vm1149_vm14, %v5236_v51, 8 }
 0x1b8   :  { %1011 = vmin.xlane.f32.xlu0 %v1010_v47  ;;  %1883 = vmin.xlane.f32.xlu2 %v5617_v5  ;;  %v797_v47 = vadd.f32 %v5600_v42, %v5534_v41  ;;  %v141_v41 = vmul.f32 %v75_v12, %v75_v12  ;;  %v139_v12 = vmul.f32 %v5529_v13, %v5529_v13 }
 0x1b9   :  { %1433 = vmin.xlane.f32.xlu1 %v5621_v50  ;;  %v861_v50 = vmul.f32 2.0, %v5499_v59  ;;  %v5645_v53 = vpop.xlane.xlu1 %1268 }
 0x1ba   :  { %v314_v33 = vsel %vm148_vm0, %v139_v12, 0.0 }
 0x1bb   :  { %v5655_v34 = vsub.f32 %v797_v47, %v861_v50  ;;  %v1925_v50 = vshra.s32 %v5666_v19, 16 }
 0x1bd   :  { %v1088_v28 = vsel %vm940_vm1, %v5655_v34, inf  ;;  %v5686_v8 = vcvt.s32.f32 %v1925_v50  ;;  %v1460_v50 = vshra.s32 %v5695_v11, 16 }
 0x1bf   :  { %v5714_v43 = vcvt.s32.f32 %v1460_v50 }
 0x1c0   :  { %1853 = vmin.xlane.f32.xlu0 %v5638_v23  ;;  %1095 = vmin.xlane.f32.xlu2 %v1094_v21  ;;  %v320_v21 = vsel %vm148_vm0, %v141_v41, 0.0  ;;  %v1241_v41 = vsel %vm1177_vm12, %v5236_v51, 8 }
 0x1c1   :  { %1023 = vmin.xlane.f32.xlu1 %v1022_v22  ;;  %v5677_v44 = vpop.xlane.xlu1 %1283  ;;  %v1445_v22 = vshra.s32 %v5669_v16, 16  ;;  %v5691_v27 = vsel %vm940_vm1, %v1241_v41, 2147483647  ;;  %v8160_v41 = vld [vmem:[#allocation13_spill] sm:$0xff]  ;;  %v8164_v16 = vld [vmem:[#allocation7_spill] sm:$0xff] }
 0x1c2   :  { %8155 = vst [vmem:[#allocation39_spill] sm:$0xff] %v5677_v44  ;;  %vm1270_vm15 = vcmp.eq.f32.partialorder %v8160_v41, %v5645_v53  ;;  %v774_v11 = vadd.f32 %v5600_v42, %v8164_v16  ;;  %v8165_v41 = vld [vmem:[#allocation16_spill] sm:$0xff] }
 0x1c3   :  { %v1078_v59 = vpop.xlane.xlu2 %1077  ;;  %v5688_v13 = vcvt.s32.f32 %v1445_v22  ;;  %8157 = vst [vmem:[#allocation41_spill] sm:$0xff] %v5691_v27 }
 0x1c4   :  { %8162 = vst [vmem:[#allocation13_spill] sm:$0xff] %v5714_v43  ;;  %vm1180_vm2 = vcmp.eq.f32.partialorder %v8165_v41, %v1078_v59  ;;  %v5726_v63 = vsub.f32 %v774_v11, %v838_v15  ;;  %v637_v59 = vpop.f32.mrf.mxu0 }
 0x1c5   :  { %8156 = vst [vmem:[#allocation40_spill] sm:$0xff] %v5688_v13 }
 0x1c6   :  { %8166 = vst [vmem:[#allocation7_spill] sm:$0xff] %v5726_v63  ;;  %v1019_v41 = vsel %vm940_vm1, %v5726_v63, inf  ;;  %v8173_v63 = vld [vmem:[#allocation9_spill] sm:$0xff] }
 0x1c8   :  { %321 = vadd.xlane.f32.xlu2 %v320_v21  ;;  %1089 = vmin.xlane.f32.xlu0 %v1088_v28  ;;  %v1895_v21 = vshra.s32 %v5691_v27, 16 }
 0x1c9   :  { %1913 = vmin.xlane.f32.xlu1 %v5663_v37  ;;  %v5706_v22 = vpop.xlane.xlu1 %1328 }
 0x1ca   :  { %v5711_v7 = vcvt.s32.f32 %v1895_v21 }
 0x1cb   :  { %v5680_v47 = vpop.xlane.xlu2 %1763 }
 0x1cc   :  { %8161 = vst [vmem:[#allocation12_spill] sm:$0xff] %v5711_v7 }
 0x1d0   :  { %1928 = vmin.xlane.f32.xlu2 %v5686_v8  ;;  %315 = vadd.xlane.f32.xlu0 %v314_v33  ;;  %v1266_v33 = vcvt.s32.f32 %v1264_v31 }
 0x1d1   :  { %1448 = vmin.xlane.f32.xlu1 %v5688_v13  ;;  %v5718_v13 = vsel %vm940_vm1, %v1213_v58, 2147483647  ;;  %v8167_v58 = vld [vmem:[#allocation25_spill] sm:$0xff] }
 0x1d2   :  { %v1271_v1 = vsel %vm1270_vm15, %v1266_v33, inf  ;;  %8163 = vst [vmem:[#allocation43_spill] sm:$0xff] %v5718_v13  ;;  %v1475_v50 = vshra.s32 %v5718_v13, 16  ;;  %v1244_v33 = vsel %vm1180_vm2, %v5236_v51, 8  ;;  %v8171_v13 = vld [vmem:[#allocation14_spill] sm:$0xff] }
 0x1d3   :  { %v5701_v28 = vpop.xlane.xlu2 %1778  ;;  %v5703_v12 = vpop.xlane.xlu0 %1080  ;;  %v5743_v15 = vsel %vm940_vm1, %v1244_v33, 2147483647  ;;  %v1279_v27 = vand.u32 65535, %v8171_v13 }
 0x1d5   :  { %v1281_v13 = vcvt.s32.f32 %v1279_v27 }
 0x1d8   :  { %1272 = vmin.xlane.f32.xlu2 %v1271_v1  ;;  %1898 = vmin.xlane.f32.xlu0 %v5711_v7 }
 0x1d9   :  { %1463 = vmin.xlane.f32.xlu1 %v5714_v43  ;;  %v5739_v43 = vcvt.s32.f32 %v1475_v50 }
 0x1db   :  { %v5724_v31 = vpop.xlane.xlu2 %1793  ;;  %v988_v21 = vpop.xlane.xlu0 %987  ;;  %8169 = vst [vmem:[#allocation25_spill] sm:$0xff] %v5739_v43 }
 0x1dc   :  { %v5730_v1 = vpop.xlane.xlu1 %1083  ;;  %vm1150_vm3 = vcmp.eq.f32.partialorder %v8167_v58, %v988_v21  ;;  %v840_v58 = vmul.f32 2.0, %v637_v59  ;;  %v8174_v59 = vld [vmem:[#allocation15_spill] sm:$0xff] }
 0x1dd   :  { %v1214_v7 = vsel %vm1150_vm3, %v5236_v51, 8  ;;  %vm1285_vm5 = vcmp.eq.f32.partialorder %v8174_v59, %v5677_v44 }
 0x1de   :  { %v5735_v16 = vsel %vm940_vm1, %v1214_v7, 2147483647  ;;  %v1940_v7 = vshra.s32 %v5743_v15, 16 }
 0x1df   :  { %8168 = vst [vmem:[#allocation16_spill] sm:$0xff] %v5735_v16  ;;  %v1490_v11 = vshra.s32 %v5735_v16, 16  ;;  %v776_v16 = vadd.f32 %v5600_v42, %v8173_v63  ;;  %v1286_v63 = vsel %vm1285_vm5, %v1281_v13, inf }
 0x1e0   :  { %1020 = vmin.xlane.f32.xlu0 %v1019_v41 }
 0x1e1   :  { %1478 = vmin.xlane.f32.xlu1 %v5739_v43  ;;  %v5746_v21 = vcvt.s32.f32 %v1490_v11  ;;  %v5761_v11 = vcvt.s32.f32 %v1940_v7  ;;  %v5763_v43 = vsub.f32 %v776_v16, %v840_v58 }
 0x1e3   :  { %8170 = vst [vmem:[#allocation44_spill] sm:$0xff] %v5746_v21  ;;  %v5750_v37 = vpop.xlane.xlu2 %1086  ;;  %1493 = vmin.xlane.f32.xlu2 %v5746_v21  ;;  %v991_v50 = vpop.xlane.xlu0 %990 }
 0x1e4   :  { %8172 = vst [vmem:[#allocation14_spill] sm:$0xff] %v5750_v37  ;;  %v5755_v33 = vpop.xlane.xlu1 %309  ;;  %vm1151_vm4 = vcmp.eq.f32.partialorder %v5365_v4, %v991_v50  ;;  %v1025_v4 = vsel %vm940_vm1, %v5763_v43, inf }
 0x1e5   :  { %v1215_v41 = vsel %vm1151_vm4, %v5236_v51, 8  ;;  %8175 = vst [vmem:[#allocation9_spill] sm:$0xff] %v5761_v11 }
 0x1e6   :  { %8176 = vst [vmem:[#allocation15_spill] sm:$0xff] %v5763_v43  ;;  %v5766_v21 = vsel %vm940_vm1, %v1215_v41, 2147483647 }
 0x1e7   :  { %8177 = vst [vmem:[#allocation45_spill] sm:$0xff] %v5766_v21  ;;  %v1505_v50 = vshra.s32 %v5766_v21, 16  ;;  %v8185_v21 = vld [vmem:[#allocation22_spill] sm:$0xff] }
 0x1e8   :  { %1943 = vmin.xlane.f32.xlu0 %v5761_v11  ;;  %vm1181_vm7 = vcmp.eq.f32.partialorder %v8185_v21, %v5703_v12  ;;  %v1294_v11 = vand.u32 65535, %v5399_v52  ;;  %v1309_v52 = vand.u32 65535, %v5454_v9 }
 0x1e9   :  { %1287 = vmin.xlane.f32.xlu1 %v1286_v63  ;;  %v5778_v16 = vcvt.s32.f32 %v1505_v50  ;;  %v8182_v63 = vld [vmem:[#allocation18_spill] sm:$0xff] }
 0x1eb   :  { %v5772_v37 = vpop.xlane.xlu2 %312  ;;  %1026 = vmin.xlane.f32.xlu2 %v1025_v4  ;;  %v994_v7 = vpop.xlane.xlu0 %993  ;;  %8179 = vst [vmem:[#allocation47_spill] sm:$0xff] %v5778_v16  ;;  %v1759_v4 = vand.u32 65535, %v8182_v63 }
 0x1ec   :  { %8178 = vst [vmem:[#allocation46_spill] sm:$0xff] %v5772_v37  ;;  %v5774_v59 = vpop.xlane.xlu1 %1005  ;;  %vm1152_vm6 = vcmp.eq.f32.partialorder %v5388_v18, %v994_v7  ;;  %v8184_v7 = vld [vmem:[#allocation21_spill] sm:$0xff]  ;;  %v8187_v37 = vld [vmem:[#allocation23_spill] sm:$0xff] }
 0x1ed   :  { %v1216_v27 = vsel %vm1152_vm6, %v5236_v51, 8  ;;  %v1774_v50 = vand.u32 65535, %v8184_v7  ;;  %vm1780_vm9 = vcmp.eq.f32.partialorder %v8187_v37, %v5701_v28 }
 0x1ee   :  { %v5781_v58 = vsel %vm940_vm1, %v1216_v27, 2147483647 }
 0x1ef   :  { %8180 = vst [vmem:[#allocation48_spill] sm:$0xff] %v5781_v58  ;;  %v1520_v41 = vshra.s32 %v5781_v58, 16  ;;  %v8186_v58 = vld [vmem:[#allocation20_spill] sm:$0xff] }
 0x1f0   :  { %1508 = vmin.xlane.f32.xlu0 %v5778_v16  ;;  %vm1765_vm8 = vcmp.eq.f32.partialorder %v8186_v58, %v5680_v47  ;;  %v1245_v16 = vsel %vm1181_vm7, %v5236_v51, 8 }
 0x1f1   :  { %v5785_v13 = vcvt.s32.f32 %v1520_v41  ;;  %v1761_v41 = vcvt.s32.f32 %v1759_v4  ;;  %v5805_v7 = vsel %vm940_vm1, %v1245_v16, 2147483647  ;;  %v1296_v4 = vcvt.s32.f32 %v1294_v11 }
 0x1f2   :  { %8188 = vst [vmem:[#allocation21_spill] sm:$0xff] %v5805_v7  ;;  %v1955_v37 = vshra.s32 %v5805_v7, 16  ;;  %v8195_v7 = vld [vmem:[#allocation27_spill] sm:$0xff] }
 0x1f3   :  { %8181 = vst [vmem:[#allocation49_spill] sm:$0xff] %v5785_v13  ;;  %v5788_v43 = vpop.xlane.xlu2 %1808  ;;  %1523 = vmin.xlane.f32.xlu1 %v5785_v13  ;;  %v5791_v18 = vpop.xlane.xlu0 %1298  ;;  %v1766_v63 = vsel %vm1765_vm8, %v1761_v41, inf  ;;  %v1776_v13 = vcvt.s32.f32 %v1774_v50  ;;  %vm1795_vm14 = vcmp.eq.f32.partialorder %v8195_v7, %v5724_v31 }
 0x1f4   :  { %8183 = vst [vmem:[#allocation18_spill] sm:$0xff] %v5791_v18  ;;  %v5796_v27 = vpop.xlane.xlu1 %1358  ;;  %vm1300_vm10 = vcmp.eq.f32.partialorder %v5417_v10, %v5791_v18  ;;  %v5816_v16 = vcvt.s32.f32 %v1955_v37  ;;  %v1311_v10 = vcvt.s32.f32 %v1309_v52 }
 0x1f5   :  { %v1781_v12 = vsel %vm1780_vm9, %v1776_v13, inf  ;;  %v1301_v50 = vsel %vm1300_vm10, %v1296_v4, inf  ;;  %vm1810_vm10 = vcmp.eq.f32.partialorder %v5419_v46, %v5788_v43 }
 0x1f6   :  { %8189 = vst [vmem:[#allocation22_spill] sm:$0xff] %v5816_v16 }
 0x1f8   :  { %1767 = vmin.xlane.f32.xlu0 %v1766_v63 }
 0x1fb   :  { %v5807_v21 = vpop.xlane.xlu2 %1343  ;;  %1782 = vmin.xlane.f32.xlu1 %v1781_v12  ;;  %v997_v44 = vpop.xlane.xlu0 %996  ;;  %v1399_v12 = vand.u32 65535, %v5483_v32  ;;  %v1414_v32 = vand.u32 65535, %v5513_v20 }
 0x1fc   :  { %v5809_v58 = vpop.xlane.xlu1 %1014  ;;  %vm1153_vm11 = vcmp.eq.f32.partialorder %v5440_v62, %v997_v44  ;;  %v5834_v44 = vld [vmem:[%s8016_s0 + $0x1d0] sm:$0xff]  ;;  %vm1345_vm7 = vcmp.eq.f32.partialorder %v5449_v14, %v5807_v21 }
 0x1fd   :  { %v1217_v13 = vsel %vm1153_vm11, %v5236_v51, 8  ;;  %4292 = vmatmul.msk.f32.gmra.mxu2 %vm148_vm0, %v5834_v44  ;;  %vm1156_vm11 = vcmp.eq.f32.partialorder %v5392_v40, %v5774_v59 }
 0x1fe   :  { %v5829_v9 = vsel %vm940_vm1, %v1217_v13, 2147483647  ;;  %v1401_v13 = vcvt.s32.f32 %v1399_v12  ;;  %v1220_v46 = vsel %vm1156_vm11, %v5236_v51, 8 }
 0x1ff   :  { %8191 = vst [vmem:[#allocation23_spill] sm:$0xff] %v5829_v9  ;;  %v1535_v4 = vshra.s32 %v5829_v9, 16 }
 0x200   :  { %1302 = vmin.xlane.f32.xlu0 %v1301_v50 }
 0x201   :  { %v5844_v52 = vcvt.s32.f32 %v1535_v4 }
 0x203   :  { %v5819_v41 = vpop.xlane.xlu2 %1823  ;;  %1958 = vmin.xlane.f32.xlu1 %v5816_v16  ;;  %v5822_v63 = vpop.xlane.xlu0 %1313  ;;  %8193 = vst [vmem:[#allocation51_spill] sm:$0xff] %v5844_v52 }
 0x204   :  { %8190 = vst [vmem:[#allocation20_spill] sm:$0xff] %v5822_v63  ;;  %v5824_v11 = vpop.xlane.xlu1 %1868  ;;  %vm1315_vm12 = vcmp.eq.f32.partialorder %v5471_v60, %v5822_v63  ;;  %vm1825_vm6 = vcmp.eq.f32.partialorder %v5473_v56, %v5819_v41  ;;  %v801_v56 = vadd.f32 %v5600_v42, %v5755_v33 }
 0x205   :  { %v1316_v62 = vsel %vm1315_vm12, %v1311_v10, inf }
 0x206   :  { %1317 = vmin.xlane.f32.xlu2 %v1316_v62  ;;  %v8194_v62 = vld [vmem:[#allocation24_spill] sm:$0xff] }
 0x207   :  { %v1789_v16 = vand.u32 65535, %v8194_v62  ;;  %v8197_v62 = vld [vmem:[#allocation26_spill] sm:$0xff] }
 0x208   :  { %vm1182_vm3 = vcmp.eq.f32.partialorder %v8197_v62, %v5730_v1 }
 0x209   :  { %v1791_v4 = vcvt.s32.f32 %v1789_v16  ;;  %v709_v16 = vpop.f32.mrf.mxu2 }
 0x20b   :  { %v5840_v37 = vpop.xlane.xlu2 %1008  ;;  %v1000_v60 = vpop.xlane.xlu0 %999 }
 0x20c   :  { %v5842_v50 = vpop.xlane.xlu1 %1403  ;;  %vm1154_vm4 = vcmp.eq.f32.partialorder %v5493_v3, %v1000_v60  ;;  %vm1157_vm12 = vcmp.eq.f32.partialorder %v5496_v39, %v5840_v37  ;;  %v640_v39 = vpop.f32.mrf.mxu0 }
 0x20d   :  { %8192 = vst [vmem:[#allocation50_spill] sm:$0xff] %v5842_v50  ;;  %vm1405_vm13 = vcmp.eq.f32.partialorder %v5505_v26, %v5842_v50  ;;  %v1416_v26 = vcvt.s32.f32 %v1414_v32 }
 0x20e   :  { %1538 = vmin.xlane.f32.xlu2 %v5844_v52  ;;  %v5849_v10 = vsel %vm1405_vm13, %v1401_v13, inf  ;;  %v1796_v13 = vsel %vm1795_vm14, %v1791_v4, inf  ;;  %v8199_v4 = vld [vmem:[#allocation19_spill] sm:$0xff]  ;;  %v1879_v52 = vand.u32 65535, %v5595_v30  ;;  %vm1360_vm13 = vcmp.eq.f32.partialorder %v5422_v17, %v5796_v27 }
 0x20f   :  { %vm1330_vm5 = vcmp.eq.f32.partialorder %v8199_v4, %v5706_v22  ;;  %v5968_v17 = vsel %vm940_vm1, %v1220_v46, 2147483647  ;;  %vm1870_vm14 = vcmp.eq.f32.partialorder %v5476_v29, %v5824_v11 }
 0x210   :  { %v1881_v30 = vcvt.s32.f32 %v1879_v52 }
 0x213   :  { %v5855_v9 = vpop.xlane.xlu2 %1838  ;;  %v1003_v63 = vpop.xlane.xlu0 %1002 }
 0x214   :  { %v5857_v18 = vpop.xlane.xlu1 %1418  ;;  %vm1155_vm15 = vcmp.eq.f32.partialorder %v5523_v6, %v1003_v63  ;;  %v8198_v6 = vld [vmem:[#allocation17_spill] sm:$0xff] }
 0x215   :  { %8196 = vst [vmem:[#allocation24_spill] sm:$0xff] %v5857_v18  ;;  %vm1420_vm2 = vcmp.eq.f32.partialorder %v5540_v0, %v5857_v18  ;;  %v1219_v12 = vsel %vm1155_vm15, %v5236_v51, 8  ;;  %v1324_v63 = vand.u32 65535, %v8198_v6  ;;  %v1246_v0 = vsel %vm1182_vm3, %v5236_v51, 8 }
 0x216   :  { %v5864_v20 = vsel %vm940_vm1, %v1219_v12, 2147483647  ;;  %1797 = vmin.xlane.f32.xlu2 %v1796_v13  ;;  %v5866_v7 = vsel %vm1420_vm2, %v1416_v26, inf  ;;  %v864_v18 = vmul.f32 2.0, %v709_v16  ;;  %v1819_v13 = vand.u32 65535, %v5457_v45 }
 0x217   :  { %v1565_v50 = vshra.s32 %v5864_v20, 16  ;;  %v1326_v12 = vcvt.s32.f32 %v1324_v63  ;;  %v1218_v6 = vsel %vm1154_vm4, %v5236_v51, 8  ;;  %v5887_v3 = vsel %vm940_vm1, %v1246_v0, 2147483647  ;;  %v5902_v0 = vld [vmem:[%s8016_s0 + $0x1d8] sm:$0xff] }
 0x218   :  { %8200 = vst [vmem:[#allocation27_spill] sm:$0xff] %v5887_v3  ;;  %v5894_v63 = vsel %vm940_vm1, %v1218_v6, 2147483647  ;;  %v1821_v4 = vcvt.s32.f32 %v1819_v13  ;;  %4293 = vmatmul.msk.f32.gmra.mxu2 %vm148_vm0, %v5902_v0  ;;  %v143_v29 = vmul.f32 %v5902_v0, %v5902_v0  ;;  %vm1840_vm15 = vcmp.eq.f32.partialorder %v5536_v49, %v5855_v9 }
 0x219   :  { %v5872_v32 = vcvt.s32.f32 %v1565_v50  ;;  %v1331_v16 = vsel %vm1330_vm5, %v1326_v12, inf }
 0x21b   :  { %v5878_v26 = vpop.xlane.xlu2 %1388  ;;  %1568 = vmin.xlane.f32.xlu1 %v5872_v32  ;;  %v307_v1 = vpop.xlane.xlu0 %306 }
 0x21c   :  { %v5882_v62 = vpop.xlane.xlu1 %1092  ;;  %v800_v50 = vadd.f32 %v5600_v42, %v307_v1  ;;  %v1970_v1 = vshra.s32 %v5887_v3, 16 }
 0x21e   :  { %v5889_v60 = vsub.f32 %v800_v50, %v864_v18  ;;  %1332 = vmin.xlane.f32.xlu2 %v1331_v16  ;;  %v712_v18 = vpop.f32.mrf.mxu2  ;;  %v1826_v50 = vsel %vm1825_vm6, %v1821_v4, inf  ;;  %v1550_v16 = vshra.s32 %v5894_v63, 16  ;;  %v1339_v4 = vand.u32 65535, %v5425_v57 }
 0x21f   :  { %v865_v12 = vmul.f32 2.0, %v712_v18  ;;  %v1804_v18 = vand.u32 65535, %v5402_v2 }
 0x220   :  { %8201 = vst [vmem:[#allocation26_spill] sm:$0xff] %v5889_v60  ;;  %v1097_v45 = vsel %vm940_vm1, %v5889_v60, inf  ;;  %v5915_v60 = vcvt.s32.f32 %v1970_v1  ;;  %v5921_v33 = vcvt.s32.f32 %v1550_v16 }
 0x221   :  { %1098 = vmin.xlane.f32.xlu0 %v1097_v45  ;;  %v5917_v45 = vsub.f32 %v801_v56, %v865_v12  ;;  %v1341_v12 = vcvt.s32.f32 %v1339_v4  ;;  %v1806_v52 = vcvt.s32.f32 %v1804_v18  ;;  %v1354_v4 = vand.u32 65535, %v5407_v61 }
 0x222   :  { %v142_v61 = vmul.f32 %v5834_v44, %v5834_v44  ;;  %v8076_v18 = vmov 0.0   ;;  %v1221_v44 = vsel %vm1157_vm12, %v5236_v51, 8 }
 0x223   :  { %v5908_v6 = vpop.xlane.xlu2 %1017  ;;  %1827 = vmin.xlane.f32.xlu1 %v1826_v50  ;;  %v5910_v13 = vpop.xlane.xlu0 %1373  ;;  %v1100_v50 = vsel %vm940_vm1, %v5917_v45, inf  ;;  %v1346_v16 = vsel %vm1345_vm7, %v1341_v12, inf  ;;  %4203 = vst [vmem:[#allocation2] sm:$0x1] %v8076_v18  ;;  %v1356_v12 = vcvt.s32.f32 %v1354_v4 }
 0x224   :  { %v5913_v3 = vpop.xlane.xlu1 %318  ;;  %vm1375_vm4 = vcmp.eq.f32.partialorder %v5589_v48, %v5910_v13  ;;  %v6033_v48 = vld [vmem:[%s8016_s0 + $0x1e0] sm:$0xff] }
 0x225   :  { %v1361_v37 = vsel %vm1360_vm13, %v1356_v12, inf  ;;  %4294 = vmatmul.msk.f32.gmra.mxu2 %vm148_vm0, %v6033_v48 }
 0x226   :  { %1973 = vmin.xlane.f32.xlu2 %v5915_v60 }
 0x229   :  { %1553 = vmin.xlane.f32.xlu0 %v5921_v33 }
 0x22b   :  { %v5930_v1 = vpop.xlane.xlu2 %1883  ;;  %1101 = vmin.xlane.f32.xlu1 %v1100_v50  ;;  %v1012_v56 = vpop.xlane.xlu0 %1011 }
 0x22c   :  { %8202 = vst [vmem:[#allocation17_spill] sm:$0xff] %v5930_v1  ;;  %vm1885_vm8 = vcmp.eq.f32.partialorder %v5617_v5, %v5930_v1  ;;  %v5934_v57 = vpop.xlane.xlu1 %1433  ;;  %vm1158_vm9 = vcmp.eq.f32.partialorder %v5610_v25, %v1012_v56  ;;  %v1811_v5 = vsel %vm1810_vm10, %v1806_v52, inf  ;;  %v5975_v52 = vsel %vm940_vm1, %v1221_v44, 2147483647 }
 0x22d   :  { %v1222_v2 = vsel %vm1158_vm9, %v5236_v51, 8  ;;  %v5940_v14 = vsel %vm1885_vm8, %v1881_v30, inf  ;;  %v1864_v30 = vand.u32 65535, %v5463_v35  ;;  %8205 = vst [vmem:[#allocation53_spill] sm:$0xff] %v5975_v52  ;;  %v1580_v35 = vshra.s32 %v5968_v17, 16 }
 0x22e   :  { %v5943_v50 = vsel %vm940_vm1, %v1222_v2, 2147483647  ;;  %1347 = vmin.xlane.f32.xlu2 %v1346_v16  ;;  %v323_v16 = vsel %vm148_vm0, %v142_v61, 0.0  ;;  %v1595_v12 = vshra.s32 %v5975_v52, 16  ;;  %v1834_v44 = vand.u32 65535, %v5510_v54 }
 0x22f   :  { %8203 = vst [vmem:[#allocation19_spill] sm:$0xff] %v5943_v50  ;;  %v1610_v25 = vshra.s32 %v5943_v50, 16  ;;  %v1866_v4 = vcvt.s32.f32 %v1864_v30  ;;  %v5985_v61 = vcvt.s32.f32 %v1580_v35  ;;  %v643_v30 = vpop.f32.mrf.mxu0  ;;  %v1849_v35 = vand.u32 65535, %v5624_v36 }
 0x230   :  { %v842_v18 = vmul.f32 2.0, %v643_v30  ;;  %v1836_v54 = vcvt.s32.f32 %v1834_v44  ;;  %v1369_v44 = vand.u32 65535, %v5567_v55 }
 0x231   :  { %1812 = vmin.xlane.f32.xlu0 %v1811_v5  ;;  %v5949_v56 = vcvt.s32.f32 %v1610_v25  ;;  %v1871_v25 = vsel %vm1870_vm14, %v1866_v4, inf  ;;  %v5992_v4 = vcvt.s32.f32 %v1595_v12 }
 0x232   :  { %v1841_v36 = vsel %vm1840_vm15, %v1836_v54, inf }
 0x233   :  { %8204 = vst [vmem:[#allocation52_spill] sm:$0xff] %v5949_v56  ;;  %v5959_v40 = vpop.xlane.xlu2 %1095  ;;  %1613 = vmin.xlane.f32.xlu1 %v5949_v56  ;;  %v5962_v59 = vpop.xlane.xlu0 %1853 }
 0x234   :  { %v5965_v2 = vpop.xlane.xlu1 %1023  ;;  %8207 = vst [vmem:[#allocation55_spill] sm:$0xff] %v5992_v4  ;;  %vm1855_vm3 = vcmp.eq.f32.partialorder %v5638_v23, %v5962_v59 }
 0x236   :  { %1362 = vmin.xlane.f32.xlu2 %v1361_v37 }
 0x239   :  { %324 = vadd.xlane.f32.xlu0 %v323_v16  ;;  %v1924_v16 = vand.u32 65535, %v5666_v19  ;;  %v8209_v19 = vld [vmem:[#allocation11_spill] sm:$0xff] }
 0x23a   :  { %v778_v12 = vadd.f32 %v5600_v42, %v8209_v19  ;;  %v1275_v19 = vcvt.f32.s32 %v5645_v53  ;;  %v1429_v53 = vand.u32 65535, %v5606_v38 }
 0x23b   :  { %v5978_v5 = vpop.xlane.xlu2 %321  ;;  %1872 = vmin.xlane.f32.xlu1 %v1871_v25  ;;  %v5980_v46 = vpop.xlane.xlu0 %1089  ;;  %v326_v25 = vsel %vm148_vm0, %v143_v29, 0.0  ;;  %v1926_v56 = vcvt.s32.f32 %v1924_v16  ;;  %v841_v16 = vmul.f32 2.0, %v640_v39 }
 0x23c   :  { %v5983_v37 = vpop.xlane.xlu1 %1913  ;;  %v6013_v30 = vsub.f32 %v778_v12, %v842_v18  ;;  %v1276_v39 = vshll.u32 %v1275_v19, 16  ;;  %vm1184_vm8 = vcmp.eq.f32.partialorder %v5655_v34, %v5980_v46 }
 0x23d   :  { %8206 = vst [vmem:[#allocation54_spill] sm:$0xff] %v5983_v37 }
 0x23e   :  { %1583 = vmin.xlane.f32.xlu2 %v5985_v61  ;;  %8210 = vst [vmem:[#allocation11_spill] sm:$0xff] %v6013_v30  ;;  %v1031_v23 = vsel %vm940_vm1, %v6013_v30, inf }
 0x241   :  { %1598 = vmin.xlane.f32.xlu0 %v5992_v4 }
 0x243   :  { %v5999_v0 = vpop.xlane.xlu2 %1928  ;;  %327 = vadd.xlane.f32.xlu1 %v326_v25  ;;  %v6001_v1 = vpop.xlane.xlu0 %315  ;;  %v1851_v25 = vcvt.s32.f32 %v1849_v35  ;;  %v1371_v35 = vcvt.s32.f32 %v1369_v44  ;;  %v8214_v44 = vld [vmem:[#allocation34_spill] sm:$0xff] }
 0x244   :  { %8208 = vst [vmem:[#allocation56_spill] sm:$0xff] %v5999_v0  ;;  %vm1930_vm2 = vcmp.eq.f32.partialorder %v5686_v8, %v5999_v0  ;;  %v6007_v29 = vpop.xlane.xlu1 %1448  ;;  %v8211_v8 = vld [vmem:[#allocation6_spill] sm:$0xff]  ;;  %vm1435_vm5 = vcmp.eq.f32.partialorder %v8214_v44, %v5934_v57  ;;  %v8219_v44 = vld [vmem:[#allocation37_spill] sm:$0xff] }
 0x245   :  { %v6011_v49 = vsel %vm1930_vm2, %v1926_v56, inf  ;;  %v1856_v50 = vsel %vm1855_vm3, %v1851_v25, inf  ;;  %v777_v0 = vadd.f32 %v5600_v42, %v8211_v8  ;;  %v1376_v12 = vsel %vm1375_vm4, %v1371_v35, inf  ;;  %v8213_v25 = vld [vmem:[#allocation30_spill] sm:$0xff] }
 0x246   :  { %1842 = vmin.xlane.f32.xlu2 %v1841_v36  ;;  %v1384_v8 = vand.u32 65535, %v8213_v25  ;;  %v1939_v25 = vand.u32 65535, %v5743_v15  ;;  %vm1915_vm10 = vcmp.eq.f32.partialorder %v8219_v44, %v5983_v37  ;;  %v8223_v15 = vld [vmem:[#allocation41_spill] sm:$0xff] }
 0x247   :  { %v6025_v55 = vsub.f32 %v777_v0, %v841_v16  ;;  %v1431_v0 = vcvt.s32.f32 %v1429_v53  ;;  %v8215_v16 = vmov 0.0   ;;  %v1894_v46 = vand.u32 65535, %v8223_v15  ;;  %v8228_v15 = vld [vmem:[#allocation12_spill] sm:$0xff] }
 0x249   :  { %1857 = vmin.xlane.f32.xlu0 %v1856_v50  ;;  %v1028_v38 = vsel %vm940_vm1, %v6025_v55, inf }
 0x24b   :  { %v1273_v56 = vpop.xlane.xlu2 %1272  ;;  %1032 = vmin.xlane.f32.xlu1 %v1031_v23  ;;  %v6023_v18 = vpop.xlane.xlu0 %1898  ;;  %v1436_v23 = vsel %vm1435_vm5, %v1431_v0, inf }
 0x24c   :  { %8212 = vst [vmem:[#allocation6_spill] sm:$0xff] %v6023_v18  ;;  %v1274_v50 = vcvt.f32.s32 %v1273_v56  ;;  %v6028_v54 = vpop.xlane.xlu1 %1463  ;;  %v8216_v56 = vld [vmem:[#allocation32_spill] sm:$0xff]  ;;  %vm1900_vm13 = vcmp.eq.f32.partialorder %v8228_v15, %v6023_v18  ;;  %v8231_v15 = vld [vmem:[#allocation33_spill] sm:$0xff] }
 0x24d   :  { %vm1390_vm7 = vcmp.eq.f32.partialorder %v8216_v56, %v5878_v26  ;;  %v8222_v56 = vld [vmem:[#allocation28_spill] sm:$0xff]  ;;  %vm1160_vm15 = vcmp.eq.f32.partialorder %v8231_v15, %v5908_v6  ;;  %v8232_v6 = vld [vmem:[#allocation43_spill] sm:$0xff]  ;;  %v8235_v15 = vld [vmem:[#allocation25_spill] sm:$0xff] }
 0x24e   :  { %v1277_v36 = vadd.s32 %v1276_v39, %v1274_v50  ;;  %1377 = vmin.xlane.f32.xlu2 %v1376_v12  ;;  %v1386_v39 = vcvt.s32.f32 %v1384_v8  ;;  %v1909_v50 = vand.u32 65535, %v5651_v24  ;;  %v8220_v8 = vld [vmem:[#allocation39_spill] sm:$0xff] }
 0x24f   :  { %v1290_v0 = vcvt.f32.s32 %v8220_v8 }
 0x250   :  { %vm2223_vm6 = vcmp.eq.s32.totalorder %v5236_v51, %v1277_v36  ;;  %v1391_v12 = vsel %vm1390_vm7, %v1386_v39, inf  ;;  %v8218_v36 = vld [vmem:[#allocation29_spill] sm:$0xff]  ;;  %v1911_v24 = vcvt.s32.f32 %v1909_v50 }
 0x251   :  { %1029 = vmin.xlane.f32.xlu0 %v1028_v38  ;;  %v4298_v19 = vsel %vm2223_vm6, 1.0, %v8215_v16  ;;  %vm1159_vm9 = vcmp.eq.f32.partialorder %v8218_v36, %v5809_v58  ;;  %v1248_v38 = vsel %vm1184_vm8, %v5236_v51, 8  ;;  %v6070_v58 = vld [vmem:[%s8016_s0 + $0x1e8] sm:$0xff]  ;;  %v1941_v36 = vcvt.s32.f32 %v1939_v25 }
 0x252   :  { %4362 = vmatmul.msk.f32.vlgmr.msra.gmra.mxu1 %vm940_vm1, %v4298_v19  ;;  %2880 = vst.msk [vmem:[%s8020_s4] sm:$0xff] %vm940_vm1, %v4298_v19  ;;  %v1223_v34 = vsel %vm1159_vm9, %v5236_v51, 8  ;;  %v6074_v39 = vsel %vm940_vm1, %v1248_v38, 2147483647  ;;  %4295 = vmatmul.msk.f32.gmra.mxu2 %vm148_vm0, %v6070_v58  ;;  %v1291_v44 = vshll.u32 %v1290_v0, 16  ;;  %v715_v38 = vpop.f32.mrf.mxu2  ;;  %v1896_v25 = vcvt.s32.f32 %v1894_v46 }
 0x253   :  { %1437 = vmin.xlane.f32.xlu1 %v1436_v23  ;;  %v1021_v35 = vpop.xlane.xlu0 %1020  ;;  %v8221_v23 = vld [vmem:[#allocation14_spill] sm:$0xff]  ;;  %8224 = vst [vmem:[#allocation34_spill] sm:$0xff] %v6074_v39  ;;  %v6082_v8 = vsel %vm940_vm1, %v1223_v34, 2147483647 }
 0x254   :  { %v6054_v53 = vpop.xlane.xlu1 %1478  ;;  %vm1183_vm11 = vcmp.eq.f32.partialorder %v8222_v56, %v8221_v23  ;;  %8226 = vst [vmem:[#allocation29_spill] sm:$0xff] %v6082_v8  ;;  %v8227_v56 = vld [vmem:[#allocation9_spill] sm:$0xff]  ;;  %v1901_v52 = vsel %vm1900_vm13, %v1896_v25, inf  ;;  %v1625_v37 = vshra.s32 %v6082_v8, 16 }
 0x255   :  { %8217 = vst [vmem:[#allocation30_spill] sm:$0xff] %v6054_v53  ;;  %vm1480_vm3 = vcmp.eq.f32.partialorder %v8235_v15, %v6054_v53  ;;  %v866_v53 = vmul.f32 2.0, %v715_v38 }
 0x256   :  { %1392 = vmin.xlane.f32.xlu2 %v1391_v12  ;;  %v1916_v12 = vsel %vm1915_vm10, %v1911_v24, inf  ;;  %v2000_v24 = vshra.s32 %v6074_v39, 16  ;;  %v8237_v39 = vld [vmem:[#allocation46_spill] sm:$0xff] }
 0x259   :  { %1422 = vmin.xlane.f32.xlu0 %v5866_v7  ;;  %v1247_v7 = vsel %vm1183_vm11, %v5236_v51, 8 }
 0x25a   :  { %v6093_v34 = vsel %vm940_vm1, %v1247_v7, 2147483647  ;;  %v1474_v7 = vand.u32 65535, %v8232_v6  ;;  %v718_v25 = vpop.f32.mrf.mxu2 }
 0x25b   :  { %1917 = vmin.xlane.f32.xlu1 %v1916_v12  ;;  %v6078_v50 = vpop.xlane.xlu0 %1943  ;;  %8229 = vst [vmem:[#allocation37_spill] sm:$0xff] %v6093_v34 }
 0x25c   :  { %8225 = vst [vmem:[#allocation32_spill] sm:$0xff] %v6078_v50  ;;  %v1288_v23 = vpop.xlane.xlu1 %1287  ;;  %vm1945_vm12 = vcmp.eq.f32.partialorder %v8227_v56, %v6078_v50  ;;  %v6097_v56 = vcvt.s32.f32 %v2000_v24  ;;  %v6117_v24 = vcvt.s32.f32 %v1625_v37  ;;  %v6126_v50 = vpop.xlane.xlu2 %1493 }
 0x25d   :  { %v1289_v12 = vcvt.f32.s32 %v1288_v23  ;;  %v6089_v4 = vsel %vm1945_vm12, %v1941_v36, inf  ;;  %v8233_v23 = vld [vmem:[#allocation7_spill] sm:$0xff] }
 0x25e   :  { %1407 = vmin.xlane.f32.xlu2 %v5849_v10  ;;  %8230 = vst [vmem:[#allocation39_spill] sm:$0xff] %v6097_v56  ;;  %v3870_v10 = vsel %vm940_vm1, %v4298_v19, 0.0  ;;  %vm1161_vm2 = vcmp.eq.f32.partialorder %v8233_v23, %v1021_v35  ;;  %v1770_v35 = vcvt.f32.s32 %v5680_v47  ;;  %v1785_v47 = vcvt.f32.s32 %v5701_v28 }
 0x25f   :  { %v1292_v0 = vadd.s32 %v1291_v44, %v1289_v12  ;;  %v1985_v44 = vshra.s32 %v6093_v34, 16  ;;  %8234 = vst [vmem:[#allocation14_spill] sm:$0xff] %v6117_v24  ;;  %v1224_v12 = vsel %vm1160_vm15, %v5236_v51, 8  ;;  %v802_v34 = vadd.f32 %v5600_v42, %v8237_v39 }
 0x260   :  { %v6132_v37 = vsel %vm940_vm1, %v1224_v12, 2147483647  ;;  %v1771_v15 = vshll.u32 %v1770_v35, 16 }
 0x261   :  { %1902 = vmin.xlane.f32.xlu0 %v1901_v52  ;;  %vm2224_vm14 = vcmp.eq.s32.totalorder %v5236_v51, %v1292_v0  ;;  %v6128_v6 = vcvt.s32.f32 %v1985_v44  ;;  %v6155_v35 = vsub.f32 %v802_v34, %v866_v53 }
 0x262   :  { %v4299_v36 = vsel %vm2224_vm14, 1.0, %v8215_v16 }
 0x263   :  { %4363 = vmatmul.msk.f32.gmra.mxu1 %vm940_vm1, %v4299_v36  ;;  %2881 = vst.msk [vmem:[%s8020_s4 + $0x8] sm:$0xff] %vm940_vm1, %v4299_v36  ;;  %v3871_v52 = vsel %vm940_vm1, %v4299_v36, 0.0  ;;  %2003 = vmin.xlane.f32.xlu1 %v6097_v56  ;;  %v6110_v46 = vpop.xlane.xlu0 %1508  ;;  %v1225_v36 = vsel %vm1161_vm2, %v5236_v51, 8 }
 0x264   :  { %v6115_v19 = vadd.f32 %v3871_v52, %v3870_v10  ;;  %8236 = vst [vmem:[#allocation28_spill] sm:$0xff] %v6128_v6  ;;  %v1476_v10 = vcvt.s32.f32 %v1474_v7  ;;  %v6137_v52 = vld [vmem:[%s8016_s0 + $0x1f0] sm:$0xff]  ;;  %v6143_v23 = vsel %vm940_vm1, %v1225_v36, 2147483647  ;;  %v1640_v7 = vshra.s32 %v6132_v37, 16 }
 0x265   :  { %4296 = vmatmul.msk.f32.gmra.mxu2 %vm148_vm0, %v6137_v52  ;;  %v1786_v36 = vshll.u32 %v1785_v47, 16  ;;  %v804_v47 = vadd.f32 %v5600_v42, %v5913_v3  ;;  %v8243_v3 = vld [vmem:[#allocation13_spill] sm:$0xff] }
 0x266   :  { %v6120_v0 = vpop.xlane.xlu1 %1523  ;;  %1628 = vmin.xlane.f32.xlu2 %v6117_v24  ;;  %v1481_v44 = vsel %vm1480_vm3, %v1476_v10, inf  ;;  %v721_v10 = vpop.f32.mrf.mxu2  ;;  %v6151_v28 = vcvt.s32.f32 %v1640_v7  ;;  %vm1465_vm6 = vcmp.eq.f32.partialorder %v8243_v3, %v6028_v54 }
 0x267   :  { %v868_v7 = vmul.f32 2.0, %v721_v10 }
 0x269   :  { %1988 = vmin.xlane.f32.xlu0 %v6128_v6  ;;  %v1655_v6 = vshra.s32 %v6143_v23, 16  ;;  %v6190_v10 = vsub.f32 %v804_v47, %v868_v7 }
 0x26b   :  { %1482 = vmin.xlane.f32.xlu1 %v1481_v44  ;;  %v1768_v12 = vpop.xlane.xlu0 %1767  ;;  %v8238_v44 = vld [vmem:[#allocation18_spill] sm:$0xff] }
 0x26c   :  { %v1769_v56 = vcvt.f32.s32 %v1768_v12  ;;  %v1305_v30 = vcvt.f32.s32 %v8238_v44  ;;  %v6157_v12 = vpop.xlane.xlu2 %1026 }
 0x26e   :  { %v1772_v24 = vadd.s32 %v1771_v15, %v1769_v56  ;;  %v1783_v8 = vpop.xlane.xlu1 %1782  ;;  %1887 = vmin.xlane.f32.xlu2 %v5940_v14  ;;  %v6163_v14 = vcvt.s32.f32 %v1655_v6  ;;  %v8241_v56 = vld [vmem:[#allocation42_spill] sm:$0xff]  ;;  %v1306_v53 = vshll.u32 %v1305_v30, 16  ;;  %v1103_v6 = vsel %vm940_vm1, %v6155_v35, inf  ;;  %v8244_v15 = vld [vmem:[#allocation20_spill] sm:$0xff] }
 0x26f   :  { %v1784_v18 = vcvt.f32.s32 %v1783_v8  ;;  %v1459_v8 = vand.u32 65535, %v8241_v56  ;;  %v867_v56 = vmul.f32 2.0, %v718_v25 }
 0x270   :  { %vm2256_vm4 = vcmp.eq.s32.totalorder %v5236_v51, %v1772_v24  ;;  %8240 = vst [vmem:[#allocation9_spill] sm:$0xff] %v6163_v14 }
 0x271   :  { %v1787_v39 = vadd.s32 %v1786_v36, %v1784_v18  ;;  %1643 = vmin.xlane.f32.xlu0 %v6151_v28  ;;  %v6161_v38 = vsel %vm2256_vm4, 1.0, %v8215_v16  ;;  %v1320_v36 = vcvt.f32.s32 %v8244_v15  ;;  %v1461_v44 = vcvt.s32.f32 %v1459_v8 }
 0x272   :  { %8239 = vst [vmem:[#allocation41_spill] sm:$0xff] %v6161_v38  ;;  %4395 = vmatmul.msk.f32.vlgmr.msra.gmra.mxu3 %vm940_vm1, %v6161_v38 }
 0x273   :  { %2913 = vst.msk [vmem:[%s8020_s4 + $0x108] sm:$0xff] %vm940_vm1, %v6161_v38  ;;  %1658 = vmin.xlane.f32.xlu1 %v6163_v14  ;;  %v1303_v18 = vpop.xlane.xlu0 %1302  ;;  %vm2257_vm5 = vcmp.eq.s32.totalorder %v5236_v51, %v1787_v39  ;;  %v144_v39 = vmul.f32 %v6033_v48, %v6033_v48  ;;  %v1466_v3 = vsel %vm1465_vm6, %v1461_v44, inf  ;;  %v1321_v15 = vshll.u32 %v1320_v36, 16 }
 0x274   :  { %v1304_v34 = vcvt.f32.s32 %v1303_v18  ;;  %v6178_v24 = vsel %vm2257_vm5, 1.0, %v8215_v16  ;;  %v803_v18 = vadd.f32 %v5600_v42, %v6001_v1  ;;  %v1109_v42 = vsel %vm940_vm1, %v6190_v10, inf }
 0x275   :  { %8242 = vst [vmem:[#allocation12_spill] sm:$0xff] %v6178_v24  ;;  %v329_v25 = vsel %vm148_vm0, %v144_v39, 0.0 }
 0x276   :  { %2914 = vst.msk [vmem:[%s8020_s4 + $0x110] sm:$0xff] %vm940_vm1, %v6178_v24  ;;  %v1307_v30 = vadd.s32 %v1306_v53, %v1304_v34  ;;  %1104 = vmin.xlane.f32.xlu2 %v1103_v6  ;;  %v6211_v7 = vsub.f32 %v803_v18, %v867_v56  ;;  %v8247_v6 = vld [vmem:[#allocation49_spill] sm:$0xff]  ;;  %v646_v18 = vpop.f32.mrf.mxu0 }
 0x277   :  { %vm1525_vm9 = vcmp.eq.f32.partialorder %v8247_v6, %v6120_v0  ;;  %v724_v6 = vpop.f32.mrf.mxu2 }
 0x278   :  { %vm2225_vm7 = vcmp.eq.s32.totalorder %v5236_v51, %v1307_v30 }
 0x279   :  { %v1318_v38 = vpop.xlane.xlu2 %1317  ;;  %1467 = vmin.xlane.f32.xlu0 %v1466_v3  ;;  %v4300_v14 = vsel %vm2225_vm7, 1.0, %v8215_v16  ;;  %v8248_v3 = vld [vmem:[#allocation40_spill] sm:$0xff] }
 0x27a   :  { %v1319_v47 = vcvt.f32.s32 %v1318_v38  ;;  %4364 = vmatmul.msk.f32.gmra.mxu1 %vm940_vm1, %v4300_v14  ;;  %2882 = vst.msk [vmem:[%s8020_s4 + $0x10] sm:$0xff] %vm940_vm1, %v4300_v14  ;;  %v3873_v48 = vsel %vm940_vm1, %v4300_v14, 0.0  ;;  %4396 = vmatmul.msk.f32.gmra.mxu3 %vm940_vm1, %v6178_v24  ;;  %v8245_v38 = vld [vmem:[#allocation48_spill] sm:$0xff]  ;;  %v8246_v14 = vld [vmem:[#allocation38_spill] sm:$0xff]  ;;  %vm1450_vm10 = vcmp.eq.f32.partialorder %v8248_v3, %v6007_v29 }
 0x27b   :  { %v3874_v1 = vadd.f32 %v3873_v48, %v6115_v19  ;;  %1110 = vmin.xlane.f32.xlu1 %v1109_v42  ;;  %v1519_v8 = vand.u32 65535, %v8245_v38  ;;  %v1444_v34 = vand.u32 65535, %v8246_v14  ;;  %v1106_v19 = vsel %vm940_vm1, %v6211_v7, inf  ;;  %v6237_v42 = vld [vmem:[%s8016_s0 + $0x1f8] sm:$0xff]  ;;  %v6250_v14 = vld [vmem:[%s8018_s2] ss:$0 sm:$0xff] }
 0x27c   :  { %v1322_v53 = vadd.s32 %v1321_v15, %v1319_v47  ;;  %v145_v47 = vmul.f32 %v6070_v58, %v6070_v58  ;;  %4297 = vmatmul.msk.f32.gmra.mxu2 %vm148_vm0, %v6237_v42  ;;  %v1800_v38 = vcvt.f32.s32 %v5724_v31  ;;  %v805_v3 = vadd.f32 %v6250_v14, %v5978_v5 }
 0x27d   :  { %v1521_v44 = vcvt.s32.f32 %v1519_v8  ;;  %v1446_v48 = vcvt.s32.f32 %v1444_v34  ;;  %v8249_v34 = vld [vmem:[#allocation8_spill] sm:$0xff] }
 0x27e   :  { %330 = vadd.xlane.f32.xlu2 %v329_v25  ;;  %vm2226_vm8 = vcmp.eq.s32.totalorder %v5236_v51, %v1322_v53  ;;  %v843_v25 = vmul.f32 2.0, %v646_v18  ;;  %v6244_v53 = vpop.xlane.xlu1 %1958  ;;  %v332_v58 = vsel %vm148_vm0, %v145_v47, 0.0  ;;  %v1801_v31 = vshll.u32 %v1800_v38, 16 }
 0x27f   :  { %v4301_v36 = vsel %vm2226_vm8, 1.0, %v8215_v16  ;;  %v1526_v15 = vsel %vm1525_vm9, %v1521_v44, inf  ;;  %v1451_v8 = vsel %vm1450_vm10, %v1446_v48, inf  ;;  %v8250_v44 = vld [vmem:[#allocation45_spill] sm:$0xff] }
 0x280   :  { %2883 = vst.msk [vmem:[%s8020_s4 + $0x18] sm:$0xff] %vm940_vm1, %v4301_v36  ;;  %v3875_v30 = vsel %vm940_vm1, %v4301_v36, 0.0  ;;  %v1504_v18 = vand.u32 65535, %v8250_v44 }
 0x281   :  { %v6225_v39 = vpop.xlane.xlu2 %1538  ;;  %1107 = vmin.xlane.f32.xlu0 %v1106_v19  ;;  %v6227_v56 = vadd.f32 %v3875_v30, %v3874_v1  ;;  %v146_v1 = vmul.f32 %v6137_v52, %v6137_v52  ;;  %v779_v52 = vadd.f32 %v6250_v14, %v8249_v34 }
 0x282   :  { %4365 = vmatmul.msk.f32.gmra.mxu1 %vm940_vm1, %v4301_v36  ;;  %v1506_v5 = vcvt.s32.f32 %v1504_v18  ;;  %v1830_v18 = vcvt.f32.s32 %v5819_v41  ;;  %v8256_v41 = vld [vmem:[#allocation31_spill] sm:$0xff] }
 0x283   :  { %1527 = vmin.xlane.f32.xlu1 %v1526_v15  ;;  %v335_v36 = vsel %vm148_vm0, %v146_v1, 0.0  ;;  %v6255_v19 = vsub.f32 %v779_v52, %v843_v25  ;;  %v869_v15 = vmul.f32 2.0, %v724_v6  ;;  %v1335_v25 = vcvt.f32.s32 %v5706_v22  ;;  %v8253_v52 = vld [vmem:[#allocation10_spill] sm:$0xff] }
 0x284   :  { %v780_v6 = vadd.f32 %v6250_v14, %v8253_v52  ;;  %vm1185_vm14 = vcmp.eq.f32.partialorder %v8256_v41, %v5882_v62 }
 0x285   :  { %v1034_v1 = vsel %vm940_vm1, %v6255_v19, inf  ;;  %v6265_v38 = vsub.f32 %v805_v3, %v869_v15  ;;  %v1336_v44 = vshll.u32 %v1335_v25, 16 }
 0x286   :  { %1452 = vmin.xlane.f32.xlu2 %v1451_v8  ;;  %v8251_v8 = vld [vmem:[#allocation47_spill] sm:$0xff] }
 0x287   :  { %vm1510_vm11 = vcmp.eq.f32.partialorder %v8251_v8, %v6110_v46  ;;  %v1112_v15 = vsel %vm940_vm1, %v6265_v38, inf }
 0x288   :  { %v1511_v22 = vsel %vm1510_vm11, %v1506_v5, inf  ;;  %v8255_v5 = vld [vmem:[#allocation16_spill] sm:$0xff] }
 0x289   :  { %v1798_v30 = vpop.xlane.xlu2 %1797  ;;  %333 = vadd.xlane.f32.xlu0 %v332_v58  ;;  %v1489_v52 = vand.u32 65535, %v8255_v5  ;;  %v1350_v5 = vcvt.f32.s32 %v5807_v21 }
 0x28a   :  { %v1799_v47 = vcvt.f32.s32 %v1798_v30 }
 0x28b   :  { %336 = vadd.xlane.f32.xlu1 %v335_v36  ;;  %v8254_v36 = vld [vmem:[#allocation5_spill] sm:$0xff] }
 0x28c   :  { %v1802_v48 = vadd.s32 %v1801_v31, %v1799_v47  ;;  %v844_v31 = vmul.f32 2.0, %v8254_v36  ;;  %v1831_v36 = vshll.u32 %v1830_v18, 16  ;;  %v1491_v18 = vcvt.s32.f32 %v1489_v52 }
 0x28e   :  { %v6267_v58 = vpop.xlane.xlu1 %1568  ;;  %1035 = vmin.xlane.f32.xlu2 %v1034_v1  ;;  %vm2258_vm12 = vcmp.eq.s32.totalorder %v5236_v51, %v1802_v48  ;;  %v6288_v8 = vsub.f32 %v780_v6, %v844_v31  ;;  %v1564_v1 = vand.u32 65535, %v5864_v20 }
 0x28f   :  { %v6271_v34 = vsel %vm2258_vm12, 1.0, %v8215_v16  ;;  %vm1570_vm15 = vcmp.eq.f32.partialorder %v5872_v32, %v6267_v58 }
 0x290   :  { %8252 = vst [vmem:[#allocation33_spill] sm:$0xff] %v6271_v34  ;;  %4397 = vmatmul.msk.f32.gmra.mxu3 %vm940_vm1, %v6271_v34 }
 0x291   :  { %2915 = vst.msk [vmem:[%s8020_s4 + $0x118] sm:$0xff] %vm940_vm1, %v6271_v34  ;;  %v1333_v30 = vpop.xlane.xlu2 %1332  ;;  %1512 = vmin.xlane.f32.xlu0 %v1511_v22  ;;  %v1566_v22 = vcvt.s32.f32 %v1564_v1 }
 0x292   :  { %v1334_v3 = vcvt.f32.s32 %v1333_v30  ;;  %v8257_v30 = vld [vmem:[#allocation44_spill] sm:$0xff] }
 0x293   :  { %1113 = vmin.xlane.f32.xlu1 %v1112_v15  ;;  %vm1495_vm2 = vcmp.eq.f32.partialorder %v8257_v30, %v6126_v50  ;;  %v147_v15 = vmul.f32 %v6237_v42, %v6237_v42  ;;  %v8259_v42 = vld [vmem:[#allocation36_spill] sm:$0xff] }
 0x294   :  { %v1337_v47 = vadd.s32 %v1336_v44, %v1334_v3  ;;  %v6286_v48 = vpop.xlane.xlu0 %1098  ;;  %v1571_v44 = vsel %vm1570_vm15, %v1566_v22, inf  ;;  %v1496_v1 = vsel %vm1495_vm2, %v1491_v18, inf  ;;  %vm1162_vm4 = vcmp.eq.f32.partialorder %v8259_v42, %v5965_v2 }
 0x295   :  { %v338_v41 = vsel %vm148_vm0, %v147_v15, 0.0  ;;  %v1226_v21 = vsel %vm1162_vm4, %v5236_v51, 8  ;;  %v1365_v2 = vcvt.f32.s32 %v5796_v27 }
 0x296   :  { %v1828_v34 = vpop.xlane.xlu1 %1827  ;;  %1932 = vmin.xlane.f32.xlu2 %v6011_v49  ;;  %vm2227_vm13 = vcmp.eq.s32.totalorder %v5236_v51, %v1337_v47  ;;  %v1037_v49 = vsel %vm940_vm1, %v6288_v8, inf }
 0x297   :  { %v1829_v25 = vcvt.f32.s32 %v1828_v34  ;;  %v4302_v6 = vsel %vm2227_vm13, 1.0, %v8215_v16  ;;  %v1249_v34 = vsel %vm1185_vm14, %v5236_v51, 8 }
 0x298   :  { %4366 = vmatmul.msk.f32.gmra.mxu1 %vm940_vm1, %v4302_v6  ;;  %2884 = vst.msk [vmem:[%s8020_s4 + $0x20] sm:$0xff] %vm940_vm1, %v4302_v6  ;;  %v3877_v20 = vsel %vm940_vm1, %v4302_v6, 0.0  ;;  %v6322_v47 = vsel %vm940_vm1, %v1249_v34, 2147483647  ;;  %v8260_v6 = vld [vmem:[#allocation35_spill] sm:$0xff] }
 0x299   :  { %v1832_v62 = vadd.s32 %v1831_v36, %v1829_v25  ;;  %v3878_v31 = vadd.f32 %v3877_v20, %v6227_v56  ;;  %v6308_v32 = vpop.xlane.xlu2 %1973  ;;  %1038 = vmin.xlane.f32.xlu0 %v1037_v49  ;;  %v2015_v36 = vshra.s32 %v6322_v47, 16  ;;  %v1815_v25 = vcvt.f32.s32 %v5788_v43 }
 0x29a   :  { %vm1186_vm5 = vcmp.eq.f32.partialorder %v8260_v6, %v5959_v40  ;;  %v1351_v49 = vshll.u32 %v1350_v5, 16  ;;  %v6347_v40 = vsel %vm940_vm1, %v1226_v21, 2147483647  ;;  %vm1975_vm4 = vcmp.eq.f32.partialorder %v5915_v60, %v6308_v32 }
 0x29b   :  { %1572 = vmin.xlane.f32.xlu1 %v1571_v44  ;;  %vm2260_vm3 = vcmp.eq.s32.totalorder %v5236_v51, %v1832_v62  ;;  %v1549_v62 = vand.u32 65535, %v5894_v63  ;;  %v1250_v34 = vsel %vm1186_vm5, %v5236_v51, 8  ;;  %v6344_v43 = vcvt.s32.f32 %v2015_v36 }
 0x29c   :  { %v6314_v3 = vpop.xlane.xlu0 %1553  ;;  %v6319_v56 = vsel %vm2260_vm3, 1.0, %v8215_v16  ;;  %v1816_v18 = vshll.u32 %v1815_v25, 16  ;;  %v6356_v15 = vsel %vm940_vm1, %v1250_v34, 2147483647  ;;  %v1670_v42 = vshra.s32 %v6347_v40, 16 }
 0x29d   :  { %8258 = vst [vmem:[#allocation43_spill] sm:$0xff] %v6319_v56  ;;  %vm1555_vm6 = vcmp.eq.f32.partialorder %v5921_v33, %v6314_v3  ;;  %v1551_v27 = vcvt.s32.f32 %v1549_v62  ;;  %v1366_v25 = vshll.u32 %v1365_v2, 16  ;;  %v2030_v21 = vshra.s32 %v6356_v15, 16 }
 0x29e   :  { %2917 = vst.msk [vmem:[%s8020_s4 + $0x128] sm:$0xff] %vm940_vm1, %v6319_v56  ;;  %v6330_v52 = vpop.xlane.xlu1 %1101  ;;  %1497 = vmin.xlane.f32.xlu2 %v1496_v1 }
 0x29f   :  { %v1556_v36 = vsel %vm1555_vm6, %v1551_v27, inf  ;;  %vm1188_vm15 = vcmp.eq.f32.partialorder %v5917_v45, %v6330_v52 }
 0x2a1   :  { %v1348_v20 = vpop.xlane.xlu2 %1347  ;;  %1947 = vmin.xlane.f32.xlu0 %v6089_v4 }
 0x2a2   :  { %v1349_v22 = vcvt.f32.s32 %v1348_v20 }
 0x2a3   :  { %339 = vadd.xlane.f32.xlu1 %v338_v41  ;;  %v727_v41 = vpop.f32.mrf.mxu2 }
 0x2a4   :  { %v1352_v30 = vadd.s32 %v1351_v49, %v1349_v22  ;;  %v1813_v44 = vpop.xlane.xlu0 %1812  ;;  %v1875_v49 = vcvt.f32.s32 %v5824_v11 }
 0x2a5   :  { %v1814_v4 = vcvt.f32.s32 %v1813_v44 }
 0x2a6   :  { %2018 = vmin.xlane.f32.xlu2 %v6344_v43  ;;  %v6352_v63 = vpop.xlane.xlu1 %1613  ;;  %vm2228_vm7 = vcmp.eq.s32.totalorder %v5236_v51, %v1352_v30  ;;  %v6379_v30 = vcvt.s32.f32 %v1670_v42  ;;  %v1876_v44 = vshll.u32 %v1875_v49, 16 }
 0x2a7   :  { %8261 = vst [vmem:[#allocation7_spill] sm:$0xff] %v6352_v63  ;;  %v1817_v1 = vadd.s32 %v1816_v18, %v1814_v4  ;;  %v4303_v5 = vsel %vm2228_vm7, 1.0, %v8215_v16  ;;  %v8263_v18 = vld [vmem:[#allocation23_spill] sm:$0xff] }
 0x2a8   :  { %4367 = vmatmul.msk.f32.gmra.mxu1 %vm940_vm1, %v4303_v5  ;;  %2885 = vst.msk [vmem:[%s8020_s4 + $0x28] sm:$0xff] %vm940_vm1, %v4303_v5  ;;  %v3879_v33 = vsel %vm940_vm1, %v4303_v5, 0.0  ;;  %v1534_v4 = vand.u32 65535, %v8263_v18  ;;  %v8264_v5 = vld [vmem:[#allocation15_spill] sm:$0xff] }
 0x2a9   :  { %v3880_v6 = vadd.f32 %v3879_v33, %v3878_v31  ;;  %v1363_v20 = vpop.xlane.xlu2 %1362  ;;  %1557 = vmin.xlane.f32.xlu0 %v1556_v36  ;;  %vm2259_vm8 = vcmp.eq.s32.totalorder %v5236_v51, %v1817_v1  ;;  %v870_v31 = vmul.f32 2.0, %v727_v41  ;;  %v6385_v1 = vcvt.s32.f32 %v2030_v21 }
 0x2aa   :  { %v1364_v22 = vcvt.f32.s32 %v1363_v20  ;;  %v6370_v62 = vsel %vm2259_vm8, 1.0, %v8215_v16  ;;  %vm1163_vm10 = vcmp.eq.f32.partialorder %v8264_v5, %v6157_v12 }
 0x2ab   :  { %8262 = vst [vmem:[#allocation25_spill] sm:$0xff] %v6370_v62  ;;  %4398 = vmatmul.msk.f32.gmra.mxu3 %vm940_vm1, %v6370_v62  ;;  %v1227_v21 = vsel %vm1163_vm10, %v5236_v51, 8 }
 0x2ac   :  { %2916 = vst.msk [vmem:[%s8020_s4 + $0x120] sm:$0xff] %vm940_vm1, %v6370_v62  ;;  %v1367_v2 = vadd.s32 %v1366_v25, %v1364_v22  ;;  %v325_v34 = vpop.xlane.xlu0 %324  ;;  %v8265_v22 = vld [vmem:[#allocation51_spill] sm:$0xff]  ;;  %v6420_v18 = vsel %vm940_vm1, %v1227_v21, 2147483647  ;;  %v1860_v21 = vcvt.f32.s32 %v5962_v59 }
 0x2ad   :  { %v806_v11 = vadd.f32 %v6250_v14, %v325_v34  ;;  %vm1540_vm11 = vcmp.eq.f32.partialorder %v8265_v22, %v6225_v39 }
 0x2ae   :  { %1673 = vmin.xlane.f32.xlu2 %v6379_v30  ;;  %v1873_v27 = vpop.xlane.xlu1 %1872  ;;  %vm2229_vm9 = vcmp.eq.s32.totalorder %v5236_v51, %v1367_v2  ;;  %v8267_v2 = vld [vmem:[#allocation21_spill] sm:$0xff]  ;;  %v1861_v45 = vshll.u32 %v1860_v21, 16 }
 0x2af   :  { %v6389_v33 = vsub.f32 %v806_v11, %v870_v31  ;;  %v1874_v36 = vcvt.f32.s32 %v1873_v27  ;;  %v4304_v42 = vsel %vm2229_vm9, 1.0, %v8215_v16  ;;  %v8266_v31 = vld [vmem:[#allocation26_spill] sm:$0xff]  ;;  %v1954_v34 = vand.u32 65535, %v8267_v2 }
 0x2b0   :  { %4368 = vmatmul.msk.f32.gmra.mxu1 %vm940_vm1, %v4304_v42  ;;  %2886 = vst.msk [vmem:[%s8020_s4 + $0x30] sm:$0xff] %vm940_vm1, %v4304_v42  ;;  %v3881_v41 = vsel %vm940_vm1, %v4304_v42, 0.0  ;;  %vm1187_vm12 = vcmp.eq.f32.partialorder %v8266_v31, %v6286_v48  ;;  %v8269_v27 = vld [vmem:[#allocation22_spill] sm:$0xff]  ;;  %v1252_v2 = vsel %vm1188_vm15, %v5236_v51, 8 }
 0x2b1   :  { %v1877_v25 = vadd.s32 %v1876_v44, %v1874_v36  ;;  %v6398_v20 = vadd.f32 %v3881_v41, %v3880_v6  ;;  %v6400_v49 = vpop.xlane.xlu2 %1583  ;;  %2033 = vmin.xlane.f32.xlu0 %v6385_v1  ;;  %v1115_v12 = vsel %vm940_vm1, %v6389_v33, inf  ;;  %v1536_v6 = vcvt.s32.f32 %v1534_v4 }
 0x2b2   :  { %1116 = vmin.xlane.f32.xlu1 %v1115_v12  ;;  %vm1960_vm14 = vcmp.eq.f32.partialorder %v8269_v27, %v6244_v53  ;;  %v1251_v48 = vsel %vm1187_vm12, %v5236_v51, 8  ;;  %v1845_v4 = vcvt.f32.s32 %v5855_v9  ;;  %v1956_v42 = vcvt.s32.f32 %v1954_v34 }
 0x2b3   :  { %4399 = vmatmul.msk.f32.gmra.mxu3 %vm940_vm1, %v6319_v56  ;;  %vm2263_vm13 = vcmp.eq.s32.totalorder %v5236_v51, %v1877_v25  ;;  %v1541_v5 = vsel %vm1540_vm11, %v1536_v6, inf  ;;  %v1685_v41 = vshra.s32 %v6420_v18, 16  ;;  %v6435_v25 = vsel %vm940_vm1, %v1251_v48, 2147483647 }
 0x2b4   :  { %v6414_v11 = vpop.xlane.xlu0 %1598  ;;  %v6417_v44 = vsel %vm2263_vm13, 1.0, %v8215_v16  ;;  %v1961_v12 = vsel %vm1960_vm14, %v1956_v42, inf  ;;  %v1846_v31 = vshll.u32 %v1845_v4, 16  ;;  %v2045_v6 = vshra.s32 %v6435_v25, 16 }
 0x2b5   :  { %8268 = vst [vmem:[#allocation46_spill] sm:$0xff] %v6417_v44  ;;  %v6443_v52 = vsel %vm940_vm1, %v1252_v2, 2147483647  ;;  %v1380_v42 = vcvt.f32.s32 %v5910_v13  ;;  %v8271_v13 = vld [vmem:[#allocation27_spill] sm:$0xff]  ;;  %v1579_v56 = vand.u32 65535, %v5968_v17  ;;  %vm1585_vm7 = vcmp.eq.f32.partialorder %v5985_v61, %v6400_v49 }
 0x2b6   :  { %2920 = vst.msk [vmem:[%s8020_s4 + $0x140] sm:$0xff] %vm940_vm1, %v6417_v44  ;;  %1542 = vmin.xlane.f32.xlu2 %v1541_v5  ;;  %v328_v36 = vpop.xlane.xlu1 %327  ;;  %v6440_v5 = vcvt.s32.f32 %v1685_v41  ;;  %v2060_v41 = vshra.s32 %v6443_v52, 16  ;;  %v1969_v21 = vand.u32 65535, %v8271_v13 }
 0x2b7   :  { %v1381_v2 = vshll.u32 %v1380_v42, 16  ;;  %v1395_v42 = vcvt.f32.s32 %v5878_v26 }
 0x2b9   :  { %v1843_v22 = vpop.xlane.xlu2 %1842  ;;  %1962 = vmin.xlane.f32.xlu0 %v1961_v12 }
 0x2ba   :  { %v1844_v9 = vcvt.f32.s32 %v1843_v22  ;;  %v6451_v22 = vcvt.s32.f32 %v2045_v6 }
 0x2bc   :  { %v1847_v34 = vadd.s32 %v1846_v31, %v1844_v9  ;;  %v1858_v27 = vpop.xlane.xlu0 %1857  ;;  %v1440_v9 = vcvt.f32.s32 %v5934_v57  ;;  %v730_v57 = vpop.f32.mrf.mxu2 }
 0x2bd   :  { %v1859_v48 = vcvt.f32.s32 %v1858_v27 }
 0x2be   :  { %1688 = vmin.xlane.f32.xlu2 %v6440_v5  ;;  %v1033_v59 = vpop.xlane.xlu1 %1032  ;;  %vm2261_vm2 = vcmp.eq.s32.totalorder %v5236_v51, %v1847_v34  ;;  %v1441_v13 = vshll.u32 %v1440_v9, 16 }
 0x2bf   :  { %v1862_v4 = vadd.s32 %v1861_v45, %v1859_v48  ;;  %v6449_v12 = vsel %vm2261_vm2, 1.0, %v8215_v16  ;;  %v6475_v48 = vcvt.s32.f32 %v2060_v41 }
 0x2c0   :  { %8270 = vst [vmem:[#allocation18_spill] sm:$0xff] %v6449_v12  ;;  %4400 = vmatmul.msk.f32.gmra.mxu3 %vm940_vm1, %v6449_v12 }
 0x2c1   :  { %2918 = vst.msk [vmem:[%s8020_s4 + $0x130] sm:$0xff] %vm940_vm1, %v6449_v12  ;;  %v1378_v31 = vpop.xlane.xlu2 %1377  ;;  %2048 = vmin.xlane.f32.xlu0 %v6451_v22  ;;  %vm2262_vm3 = vcmp.eq.s32.totalorder %v5236_v51, %v1862_v4  ;;  %v1971_v4 = vcvt.s32.f32 %v1969_v21  ;;  %v807_v21 = vadd.f32 %v6250_v14, %v328_v36 }
 0x2c2   :  { %v1379_v6 = vcvt.f32.s32 %v1378_v31  ;;  %v6466_v34 = vsel %vm2262_vm3, 1.0, %v8215_v16  ;;  %8273 = vst [vmem:[#allocation13_spill] sm:$0xff] %v6475_v48 }
 0x2c3   :  { %8272 = vst [vmem:[#allocation42_spill] sm:$0xff] %v6466_v34 }
 0x2c4   :  { %2919 = vst.msk [vmem:[%s8020_s4 + $0x138] sm:$0xff] %vm940_vm1, %v6466_v34  ;;  %v1382_v27 = vadd.s32 %v1381_v2, %v1379_v6  ;;  %v1030_v45 = vpop.xlane.xlu0 %1029  ;;  %v871_v6 = vmul.f32 2.0, %v730_v57  ;;  %v8275_v57 = vld [vmem:[#allocation11_spill] sm:$0xff] }
 0x2c5   :  { %vm1164_vm5 = vcmp.eq.f32.partialorder %v6025_v55, %v1030_v45  ;;  %v1976_v55 = vsel %vm1975_vm4, %v1971_v4, inf  ;;  %vm1165_vm8 = vcmp.eq.f32.partialorder %v8275_v57, %v1033_v59 }
 0x2c6   :  { %v1228_v31 = vsel %vm1164_vm5, %v5236_v51, 8  ;;  %2063 = vmin.xlane.f32.xlu2 %v6475_v48  ;;  %v1438_v12 = vpop.xlane.xlu1 %1437  ;;  %vm2230_vm6 = vcmp.eq.s32.totalorder %v5236_v51, %v1382_v27  ;;  %v1396_v27 = vshll.u32 %v1395_v42, 16  ;;  %v1581_v48 = vcvt.s32.f32 %v1579_v56  ;;  %v8277_v56 = vld [vmem:[#allocation50_spill] sm:$0xff] }
 0x2c7   :  { %v6484_v2 = vsel %vm940_vm1, %v1228_v31, 2147483647  ;;  %v1439_v41 = vcvt.f32.s32 %v1438_v12  ;;  %v4305_v26 = vsel %vm2230_vm6, 1.0, %v8215_v16  ;;  %v8274_v12 = vld [vmem:[#allocation24_spill] sm:$0xff]  ;;  %v1229_v59 = vsel %vm1165_vm8, %v5236_v51, 8 }
 0x2c8   :  { %v1700_v9 = vshra.s32 %v6484_v2, 16  ;;  %4369 = vmatmul.msk.f32.gmra.mxu1 %vm940_vm1, %v4305_v26  ;;  %2887 = vst.msk [vmem:[%s8020_s4 + $0x38] sm:$0xff] %vm940_vm1, %v4305_v26  ;;  %v3883_v17 = vsel %vm940_vm1, %v4305_v26, 0.0  ;;  %4401 = vmatmul.msk.f32.gmra.mxu3 %vm940_vm1, %v6466_v34  ;;  %v1425_v60 = vcvt.f32.s32 %v8274_v12  ;;  %v8276_v26 = vld [vmem:[#allocation54_spill] sm:$0xff]  ;;  %v6509_v12 = vsub.f32 %v807_v21, %v871_v6  ;;  %v8278_v6 = vld [vmem:[#allocation53_spill] sm:$0xff] }
 0x2c9   :  { %v1442_v45 = vadd.s32 %v1441_v13, %v1439_v41  ;;  %v3884_v36 = vadd.f32 %v3883_v17, %v6398_v20  ;;  %v1393_v4 = vpop.xlane.xlu2 %1392  ;;  %1977 = vmin.xlane.f32.xlu0 %v1976_v55  ;;  %v1920_v24 = vcvt.f32.s32 %v8276_v26  ;;  %v1586_v55 = vsel %vm1585_vm7, %v1581_v48, inf  ;;  %v8279_v26 = vld [vmem:[#allocation6_spill] sm:$0xff] }
 0x2ca   :  { %v1394_v31 = vcvt.f32.s32 %v1393_v4  ;;  %v6505_v62 = vcvt.s32.f32 %v1700_v9  ;;  %v1426_v61 = vshll.u32 %v1425_v60, 16  ;;  %v1410_v21 = vcvt.f32.s32 %v8277_v56 }
 0x2cb   :  { %vm2234_vm9 = vcmp.eq.s32.totalorder %v5236_v51, %v1442_v45  ;;  %v1594_v17 = vand.u32 65535, %v8278_v6  ;;  %v6528_v57 = vsel %vm940_vm1, %v1229_v59, 2147483647 }
 0x2cc   :  { %v1397_v42 = vadd.s32 %v1396_v27, %v1394_v31  ;;  %1703 = vmin.xlane.f32.xlu1 %v6505_v62  ;;  %v1423_v20 = vpop.xlane.xlu0 %1422  ;;  %v6513_v13 = vsel %vm2234_vm9, 1.0, %v8215_v16  ;;  %v1921_v27 = vshll.u32 %v1920_v24, 16  ;;  %v1118_v24 = vsel %vm940_vm1, %v6509_v12, inf }
 0x2cd   :  { %v1424_v41 = vcvt.f32.s32 %v1423_v20  ;;  %2891 = vst.msk [vmem:[%s8020_s4 + $0x58] sm:$0xff] %vm940_vm1, %v6513_v13  ;;  %v1715_v6 = vshra.s32 %v6528_v57, 16 }
 0x2ce   :  { %1587 = vmin.xlane.f32.xlu2 %v1586_v55  ;;  %v1918_v9 = vpop.xlane.xlu1 %1917  ;;  %vm2231_vm10 = vcmp.eq.s32.totalorder %v5236_v51, %v1397_v42  ;;  %v1905_v42 = vcvt.f32.s32 %v8279_v26  ;;  %v8280_v55 = vld [vmem:[#allocation55_spill] sm:$0xff] }
 0x2cf   :  { %v1427_v60 = vadd.s32 %v1426_v61, %v1424_v41  ;;  %v1919_v45 = vcvt.f32.s32 %v1918_v9  ;;  %v6524_v4 = vpop.f32.mrf.mxu1  ;;  %v4306_v48 = vsel %vm2231_vm10, 1.0, %v8215_v16  ;;  %v1411_v41 = vshll.u32 %v1410_v21, 16 }
 0x2d0   :  { %2816 = vst.msk [vmem:[%s8019_s3] sm:$0xff] %vm148_vm0, %v6524_v4  ;;  %4370 = vmatmul.msk.f32.gmra.mxu1 %vm940_vm1, %v4306_v48  ;;  %v3885_v31 = vsel %vm940_vm1, %v4306_v48, 0.0  ;;  %4402 = vmatmul.msk.f32.gmra.mxu3 %vm940_vm1, %v6417_v44  ;;  %vm1600_vm12 = vcmp.eq.f32.partialorder %v8280_v55, %v6414_v11  ;;  %v6570_v55 = vcvt.s32.f32 %v1715_v6  ;;  %v8285_v6 = vld [vmem:[#allocation52_spill] sm:$0xff]  ;;  %v8289_v44 = vld [vmem:[#allocation17_spill] sm:$0xff] }
 0x2d1   :  { %v1922_v20 = vadd.s32 %v1921_v27, %v1919_v45  ;;  %2888 = vst.msk [vmem:[%s8020_s4 + $0x40] sm:$0xff] %vm940_vm1, %v4306_v48  ;;  %v3886_v61 = vadd.f32 %v3885_v31, %v3884_v36  ;;  %v1408_v59 = vpop.xlane.xlu2 %1407  ;;  %1119 = vmin.xlane.f32.xlu0 %v1118_v24  ;;  %vm2233_vm11 = vcmp.eq.s32.totalorder %v5236_v51, %v1427_v60  ;;  %v1596_v27 = vcvt.s32.f32 %v1594_v17  ;;  %v8282_v24 = vld [vmem:[#allocation29_spill] sm:$0xff] }
 0x2d2   :  { %v1409_v56 = vcvt.f32.s32 %v1408_v59  ;;  %v4308_v9 = vsel %vm2233_vm11, 1.0, %v8215_v16  ;;  %v1906_v60 = vshll.u32 %v1905_v42, 16  ;;  %v1624_v26 = vand.u32 65535, %v8282_v24  ;;  %8284 = vst [vmem:[#allocation48_spill] sm:$0xff] %v6570_v55  ;;  %v8288_v24 = vld [vmem:[#allocation30_spill] sm:$0xff] }
 0x2d3   :  { %2890 = vst.msk [vmem:[%s8020_s4 + $0x50] sm:$0xff] %vm940_vm1, %v4308_v9  ;;  %vm2266_vm13 = vcmp.eq.s32.totalorder %v5236_v51, %v1922_v20  ;;  %v1601_v31 = vsel %vm1600_vm12, %v1596_v27, inf  ;;  %v8283_v20 = vld [vmem:[#allocation19_spill] sm:$0xff]  ;;  %vm1615_vm2 = vcmp.eq.f32.partialorder %v8285_v6, %v6352_v63 }
 0x2d4   :  { %v1412_v36 = vadd.s32 %v1411_v41, %v1409_v56  ;;  %v1903_v45 = vpop.xlane.xlu0 %1902  ;;  %v6557_v21 = vsel %vm2266_vm13, 1.0, %v8215_v16  ;;  %v1609_v59 = vand.u32 65535, %v8283_v20 }
 0x2d5   :  { %8281 = vst [vmem:[#allocation20_spill] sm:$0xff] %v6557_v21  ;;  %v1904_v48 = vcvt.f32.s32 %v1903_v45 }
 0x2d6   :  { %2923 = vst.msk [vmem:[%s8020_s4 + $0x158] sm:$0xff] %vm940_vm1, %v6557_v21  ;;  %v6565_v17 = vpop.xlane.xlu1 %2003  ;;  %1602 = vmin.xlane.f32.xlu2 %v1601_v31  ;;  %vm2232_vm14 = vcmp.eq.s32.totalorder %v5236_v51, %v1412_v36  ;;  %v1626_v36 = vcvt.s32.f32 %v1624_v26 }
 0x2d7   :  { %v1907_v41 = vadd.s32 %v1906_v60, %v1904_v48  ;;  %v4307_v42 = vsel %vm2232_vm14, 1.0, %v8215_v16  ;;  %v8286_v60 = vld [vmem:[#allocation14_spill] sm:$0xff]  ;;  %v3889_v48 = vsel %vm940_vm1, %v4308_v9, 0.0 }
 0x2d8   :  { %4371 = vmatmul.msk.f32.gmra.mxu1 %vm940_vm1, %v4307_v42  ;;  %2889 = vst.msk [vmem:[%s8020_s4 + $0x48] sm:$0xff] %vm940_vm1, %v4307_v42  ;;  %v3887_v56 = vsel %vm940_vm1, %v4307_v42, 0.0  ;;  %v1611_v42 = vcvt.s32.f32 %v1609_v59 }
 0x2d9   :  { %v3888_v27 = vadd.f32 %v3887_v56, %v3886_v61  ;;  %v6578_v45 = vpop.xlane.xlu2 %1628  ;;  %1718 = vmin.xlane.f32.xlu0 %v6570_v55  ;;  %vm2265_vm15 = vcmp.eq.s32.totalorder %v5236_v51, %v1907_v41  ;;  %v1485_v61 = vcvt.f32.s32 %v8288_v24  ;;  %v3891_v41 = vsel %vm940_vm1, %v6513_v13, 0.0 }
 0x2da   :  { %vm1630_vm3 = vcmp.eq.f32.partialorder %v8286_v60, %v6578_v45  ;;  %v6588_v31 = vsel %vm2265_vm15, 1.0, %v8215_v16  ;;  %v1616_v6 = vsel %vm1615_vm2, %v1611_v42, inf  ;;  %v1890_v24 = vcvt.f32.s32 %v8289_v44 }
 0x2db   :  { %8287 = vst [vmem:[#allocation38_spill] sm:$0xff] %v6588_v31  ;;  %v1631_v20 = vsel %vm1630_vm3, %v1626_v36, inf  ;;  %v3890_v56 = vadd.f32 %v3889_v48, %v3888_v27  ;;  %v1486_v59 = vshll.u32 %v1485_v61, 16  ;;  %v8290_v48 = vld [vmem:[#allocation37_spill] sm:$0xff]  ;;  %v8291_v61 = vld [vmem:[#allocation28_spill] sm:$0xff] }
 0x2dc   :  { %2922 = vst.msk [vmem:[%s8020_s4 + $0x150] sm:$0xff] %vm940_vm1, %v6588_v31  ;;  %1632 = vmin.xlane.f32.xlu1 %v1631_v20  ;;  %v6596_v26 = vpop.xlane.xlu0 %1988  ;;  %v1984_v34 = vand.u32 65535, %v8290_v48  ;;  %v1639_v20 = vand.u32 65535, %v6132_v37  ;;  %v1891_v42 = vshll.u32 %v1890_v24, 16 }
 0x2dd   :  { %v6600_v60 = vadd.f32 %v3891_v41, %v3890_v56  ;;  %vm1990_vm4 = vcmp.eq.f32.partialorder %v8291_v61, %v6596_v26 }
 0x2de   :  { %v1483_v36 = vpop.xlane.xlu1 %1482  ;;  %1617 = vmin.xlane.f32.xlu2 %v1616_v6  ;;  %v1986_v41 = vcvt.s32.f32 %v1984_v34  ;;  %v1641_v37 = vcvt.s32.f32 %v1639_v20 }
 0x2df   :  { %v1484_v27 = vcvt.f32.s32 %v1483_v36 }
 0x2e0   :  { %v6604_v55 = vpop.f32.mrf.mxu1  ;;  %4372 = vmatmul.msk.f32.gmra.mxu1 %vm940_vm1, %v4308_v9 }
 0x2e1   :  { %v1487_v63 = vadd.s32 %v1486_v59, %v1484_v27  ;;  %2817 = vst.msk [vmem:[%s8019_s3 + $0x8] sm:$0xff] %vm148_vm0, %v6604_v55  ;;  %v1888_v44 = vpop.xlane.xlu2 %1887  ;;  %v1991_v59 = vsel %vm1990_vm4, %v1986_v41, inf }
 0x2e2   :  { %v1889_v56 = vcvt.f32.s32 %v1888_v44 }
 0x2e3   :  { %vm2237_vm5 = vcmp.eq.s32.totalorder %v5236_v51, %v1487_v63 }
 0x2e4   :  { %v1892_v6 = vadd.s32 %v1891_v42, %v1889_v56  ;;  %v6616_v9 = vpop.xlane.xlu0 %1643  ;;  %v6619_v36 = vsel %vm2237_vm5, 1.0, %v8215_v16  ;;  %v733_v56 = vpop.f32.mrf.mxu2 }
 0x2e5   :  { %vm1645_vm6 = vcmp.eq.f32.partialorder %v6151_v28, %v6616_v9  ;;  %2894 = vst.msk [vmem:[%s8020_s4 + $0x70] sm:$0xff] %vm940_vm1, %v6619_v36  ;;  %v1470_v28 = vcvt.f32.s32 %v6028_v54  ;;  %v872_v54 = vmul.f32 2.0, %v733_v56  ;;  %v1455_v56 = vcvt.f32.s32 %v6007_v29 }
 0x2e6   :  { %v6628_v34 = vpop.xlane.xlu1 %1658  ;;  %1992 = vmin.xlane.f32.xlu2 %v1991_v59  ;;  %v1646_v63 = vsel %vm1645_vm6, %v1641_v37, inf  ;;  %vm2264_vm7 = vcmp.eq.s32.totalorder %v5236_v51, %v1892_v6  ;;  %v8293_v59 = vld [vmem:[#allocation34_spill] sm:$0xff] }
 0x2e7   :  { %1647 = vmin.xlane.f32.xlu0 %v1646_v63  ;;  %v6632_v24 = vsel %vm2264_vm7, 1.0, %v8215_v16  ;;  %v1471_v44 = vshll.u32 %v1470_v28, 16  ;;  %v1999_v63 = vand.u32 65535, %v8293_v59 }
 0x2e8   :  { %8292 = vst [vmem:[#allocation49_spill] sm:$0xff] %v6632_v24  ;;  %4373 = vmatmul.msk.f32.gmra.mxu1 %vm940_vm1, %v6513_v13  ;;  %4403 = vmatmul.msk.f32.gmra.mxu3 %vm940_vm1, %v6632_v24 }
 0x2e9   :  { %2921 = vst.msk [vmem:[%s8020_s4 + $0x148] sm:$0xff] %vm940_vm1, %v6632_v24  ;;  %v1105_v27 = vpop.xlane.xlu2 %1104 }
 0x2ea   :  { %vm1189_vm8 = vcmp.eq.f32.partialorder %v6155_v35, %v1105_v27 }
 0x2eb   :  { %v1253_v48 = vsel %vm1189_vm8, %v5236_v51, 8 }
 0x2ec   :  { %v6647_v20 = vsel %vm940_vm1, %v1253_v48, 2147483647  ;;  %v1468_v13 = vpop.xlane.xlu0 %1467  ;;  %v1530_v48 = vcvt.f32.s32 %v6120_v0 }
 0x2ed   :  { %v2075_v42 = vshra.s32 %v6647_v20, 16  ;;  %v1469_v61 = vcvt.f32.s32 %v1468_v13 }
 0x2ee   :  { %v6650_v41 = vpop.xlane.xlu1 %1110  ;;  %v1531_v59 = vshll.u32 %v1530_v48, 16  ;;  %v736_v48 = vpop.f32.mrf.mxu2 }
 0x2ef   :  { %v1472_v6 = vadd.s32 %v1471_v44, %v1469_v61  ;;  %v6652_v37 = vcvt.s32.f32 %v2075_v42  ;;  %v8295_v42 = vld [vmem:[#allocation39_spill] sm:$0xff]  ;;  %v873_v24 = vmul.f32 2.0, %v736_v48  ;;  %vm1191_vm2 = vcmp.eq.f32.partialorder %v6190_v10, %v6650_v41 }
 0x2f0   :  { %4404 = vmatmul.msk.f32.gmra.mxu3 %vm940_vm1, %v6588_v31  ;;  %vm2005_vm10 = vcmp.eq.f32.partialorder %v8295_v42, %v6565_v17  ;;  %v1500_v10 = vcvt.f32.s32 %v6126_v50 }
 0x2f1   :  { %v331_v35 = vpop.xlane.xlu2 %330  ;;  %2078 = vmin.xlane.f32.xlu1 %v6652_v37  ;;  %vm2236_vm9 = vcmp.eq.s32.totalorder %v5236_v51, %v1472_v6 }
 0x2f2   :  { %v808_v28 = vadd.f32 %v6250_v14, %v331_v35  ;;  %v6661_v27 = vsel %vm2236_vm9, 1.0, %v8215_v16  ;;  %v2001_v35 = vcvt.s32.f32 %v1999_v63 }
 0x2f3   :  { %2893 = vst.msk [vmem:[%s8020_s4 + $0x68] sm:$0xff] %vm940_vm1, %v6661_v27  ;;  %v3895_v48 = vsel %vm940_vm1, %v6661_v27, 0.0 }
 0x2f4   :  { %v6669_v13 = vsub.f32 %v808_v28, %v872_v54  ;;  %v1108_v44 = vpop.xlane.xlu0 %1107  ;;  %v2006_v63 = vsel %vm2005_vm10, %v2001_v35, inf }
 0x2f5   :  { %vm1190_vm11 = vcmp.eq.f32.partialorder %v6211_v7, %v1108_v44  ;;  %v6674_v61 = vpop.f32.mrf.mxu3 }
 0x2f6   :  { %8294 = vst [vmem:[#allocation40_spill] sm:$0xff] %v6669_v13  ;;  %v1254_v0 = vsel %vm1190_vm11, %v5236_v51, 8  ;;  %v1528_v6 = vpop.xlane.xlu1 %1527  ;;  %v1121_v54 = vsel %vm940_vm1, %v6669_v13, inf }
 0x2f7   :  { %8296 = vst [vmem:[#allocation8_spill] sm:$0xff] %v6674_v61  ;;  %v6686_v7 = vsel %vm940_vm1, %v1254_v0, 2147483647  ;;  %v1529_v28 = vcvt.f32.s32 %v1528_v6  ;;  %v6688_v44 = vpop.f32.mrf.mxu1  ;;  %1122 = vmin.xlane.f32.xlu2 %v1121_v54  ;;  %v1456_v54 = vshll.u32 %v1455_v56, 16 }
 0x2f8   :  { %2849 = vst.msk [vmem:[%s8019_s3 + $0x108] sm:$0xff] %vm148_vm0, %v6674_v61  ;;  %v2090_v29 = vshra.s32 %v6686_v7, 16  ;;  %4405 = vmatmul.msk.f32.gmra.mxu3 %vm940_vm1, %v6557_v21 }
 0x2f9   :  { %8297 = vst [vmem:[#allocation45_spill] sm:$0xff] %v6686_v7  ;;  %v1532_v0 = vadd.s32 %v1531_v59, %v1529_v28  ;;  %v1453_v6 = vpop.xlane.xlu2 %1452  ;;  %2007 = vmin.xlane.f32.xlu1 %v2006_v63 }
 0x2fa   :  { %2818 = vst.msk [vmem:[%s8019_s3 + $0x10] sm:$0xff] %vm148_vm0, %v6688_v44  ;;  %v1454_v61 = vcvt.f32.s32 %v1453_v6  ;;  %v6701_v31 = vcvt.s32.f32 %v2090_v29  ;;  %v1515_v29 = vcvt.f32.s32 %v6110_v46  ;;  %v8301_v6 = vld [vmem:[#allocation56_spill] sm:$0xff] }
 0x2fb   :  { %vm2240_vm12 = vcmp.eq.s32.totalorder %v5236_v51, %v1532_v0 }
 0x2fc   :  { %8298 = vst [vmem:[#allocation47_spill] sm:$0xff] %v6701_v31  ;;  %v1457_v13 = vadd.s32 %v1456_v54, %v1454_v61  ;;  %2093 = vmin.xlane.f32.xlu0 %v6701_v31  ;;  %v334_v7 = vpop.xlane.xlu0 %333  ;;  %v6706_v21 = vsel %vm2240_vm12, 1.0, %v8215_v16  ;;  %v1935_v54 = vcvt.f32.s32 %v8301_v6 }
 0x2fd   :  { %v809_v42 = vadd.f32 %v6250_v14, %v334_v7  ;;  %v6709_v35 = vpop.f32.mrf.mxu3  ;;  %2897 = vst.msk [vmem:[%s8020_s4 + $0x88] sm:$0xff] %vm940_vm1, %v6706_v21 }
 0x2fe   :  { %8299 = vst [vmem:[#allocation10_spill] sm:$0xff] %v6709_v35  ;;  %v6721_v61 = vpop.xlane.xlu1 %336  ;;  %vm2235_vm13 = vcmp.eq.s32.totalorder %v5236_v51, %v1457_v13 }
 0x2ff   :  { %2850 = vst.msk [vmem:[%s8019_s3 + $0x110] sm:$0xff] %vm148_vm0, %v6709_v35  ;;  %v6724_v56 = vsub.f32 %v809_v42, %v873_v24  ;;  %v6726_v59 = vpop.f32.mrf.mxu1  ;;  %v4310_v7 = vsel %vm2235_vm13, 1.0, %v8215_v16 }
 0x300   :  { %2819 = vst.msk [vmem:[%s8019_s3 + $0x18] sm:$0xff] %vm148_vm0, %v6726_v59  ;;  %4374 = vmatmul.msk.f32.gmra.mxu1 %vm940_vm1, %v4310_v7  ;;  %v3893_v28 = vsel %vm940_vm1, %v4310_v7, 0.0 }
 0x301   :  { %8300 = vst [vmem:[#allocation5_spill] sm:$0xff] %v6724_v56  ;;  %v3894_v24 = vadd.f32 %v3893_v28, %v6600_v60  ;;  %v1036_v13 = vpop.xlane.xlu2 %1035  ;;  %v1124_v63 = vsel %vm940_vm1, %v6724_v56, inf  ;;  %v1516_v60 = vshll.u32 %v1515_v29, 16  ;;  %v1654_v29 = vand.u32 65535, %v6143_v23 }
 0x302   :  { %2892 = vst.msk [vmem:[%s8020_s4 + $0x60] sm:$0xff] %vm940_vm1, %v4310_v7  ;;  %vm1166_vm14 = vcmp.eq.f32.partialorder %v6255_v19, %v1036_v13  ;;  %1125 = vmin.xlane.f32.xlu1 %v1124_v63  ;;  %v3897_v19 = vsel %vm940_vm1, %v6619_v36, 0.0  ;;  %v1255_v23 = vsel %vm1191_vm2, %v5236_v51, 8 }
 0x303   :  { %v1230_v0 = vsel %vm1166_vm14, %v5236_v51, 8  ;;  %v3896_v46 = vadd.f32 %v3895_v48, %v3894_v24  ;;  %v1936_v24 = vshll.u32 %v1935_v54, 16  ;;  %v1656_v54 = vcvt.s32.f32 %v1654_v29 }
 0x304   :  { %v6750_v42 = vsel %vm940_vm1, %v1230_v0, 2147483647  ;;  %v1513_v7 = vpop.xlane.xlu0 %1512 }
 0x305   :  { %v1730_v28 = vshra.s32 %v6750_v42, 16  ;;  %v1514_v35 = vcvt.f32.s32 %v1513_v7  ;;  %v6757_v63 = vadd.f32 %v3897_v19, %v3896_v46 }
 0x306   :  { %v6755_v13 = vpop.xlane.xlu1 %1113 }
 0x307   :  { %v1517_v56 = vadd.s32 %v1516_v60, %v1514_v35  ;;  %v6759_v31 = vcvt.s32.f32 %v1730_v28  ;;  %v1575_v35 = vcvt.f32.s32 %v6267_v58  ;;  %vm1192_vm10 = vcmp.eq.f32.partialorder %v6265_v38, %v6755_v13 }
 0x308   :  { %4375 = vmatmul.msk.f32.gmra.mxu1 %vm940_vm1, %v6661_v27 }
 0x309   :  { %v1933_v48 = vpop.xlane.xlu2 %1932  ;;  %1733 = vmin.xlane.f32.xlu2 %v6759_v31  ;;  %vm2239_vm15 = vcmp.eq.s32.totalorder %v5236_v51, %v1517_v56  ;;  %v8302_v56 = vld [vmem:[#allocation9_spill] sm:$0xff]  ;;  %v1576_v7 = vshll.u32 %v1575_v35, 16 }
 0x30a   :  { %v1934_v0 = vcvt.f32.s32 %v1933_v48  ;;  %v6769_v46 = vsel %vm2239_vm15, 1.0, %v8215_v16  ;;  %vm1660_vm3 = vcmp.eq.f32.partialorder %v8302_v56, %v6628_v34  ;;  %v8303_v48 = vld [vmem:[#allocation32_spill] sm:$0xff] }
 0x30b   :  { %2896 = vst.msk [vmem:[%s8020_s4 + $0x80] sm:$0xff] %vm940_vm1, %v6769_v46  ;;  %v1661_v50 = vsel %vm1660_vm3, %v1656_v54, inf  ;;  %v1950_v29 = vcvt.f32.s32 %v8303_v48  ;;  %v2014_v54 = vand.u32 65535, %v6322_v47 }
 0x30c   :  { %v1937_v27 = vadd.s32 %v1936_v24, %v1934_v0  ;;  %v1039_v6 = vpop.xlane.xlu0 %1038  ;;  %v6791_v24 = vsel %vm940_vm1, %v1255_v23, 2147483647 }
 0x30d   :  { %vm1167_vm4 = vcmp.eq.f32.partialorder %v6288_v8, %v1039_v6  ;;  %v2105_v23 = vshra.s32 %v6791_v24, 16 }
 0x30e   :  { %v1231_v41 = vsel %vm1167_vm4, %v5236_v51, 8  ;;  %v1573_v58 = vpop.xlane.xlu1 %1572  ;;  %vm2267_vm5 = vcmp.eq.s32.totalorder %v5236_v51, %v1937_v27  ;;  %v1501_v27 = vshll.u32 %v1500_v10, 16 }
 0x30f   :  { %v6785_v60 = vsel %vm940_vm1, %v1231_v41, 2147483647  ;;  %v1574_v28 = vcvt.f32.s32 %v1573_v58  ;;  %v6788_v19 = vsel %vm2267_vm5, 1.0, %v8215_v16 }
 0x310   :  { %v1745_v8 = vshra.s32 %v6785_v60, 16  ;;  %4376 = vmatmul.msk.f32.gmra.mxu1 %vm940_vm1, %v6619_v36  ;;  %4406 = vmatmul.msk.f32.gmra.mxu3 %vm940_vm1, %v6788_v19  ;;  %2924 = vst.msk [vmem:[%s8020_s4 + $0x160] sm:$0xff] %vm940_vm1, %v6788_v19 }
 0x311   :  { %v1577_v0 = vadd.s32 %v1576_v7, %v1574_v28  ;;  %v1498_v35 = vpop.xlane.xlu2 %1497  ;;  %1662 = vmin.xlane.f32.xlu2 %v1661_v50  ;;  %v1951_v7 = vshll.u32 %v1950_v29, 16  ;;  %v739_v50 = vpop.f32.mrf.mxu2  ;;  %v6837_v29 = vcvt.s32.f32 %v2105_v23  ;;  %v2016_v23 = vcvt.s32.f32 %v2014_v54 }
 0x312   :  { %v1499_v36 = vcvt.f32.s32 %v1498_v35  ;;  %v6807_v6 = vcvt.s32.f32 %v1745_v8  ;;  %v1560_v35 = vcvt.f32.s32 %v6314_v3  ;;  %v810_v3 = vadd.f32 %v6250_v14, %v6721_v61 }
 0x313   :  { %v6810_v41 = vpop.f32.mrf.mxu3  ;;  %vm2243_vm6 = vcmp.eq.s32.totalorder %v5236_v51, %v1577_v0  ;;  %v3903_v14 = vsel %vm940_vm1, %v6706_v21, 0.0 }
 0x314   :  { %8304 = vst [vmem:[#allocation16_spill] sm:$0xff] %v6810_v41  ;;  %v1502_v58 = vadd.s32 %v1501_v27, %v1499_v36  ;;  %1748 = vmin.xlane.f32.xlu1 %v6807_v6  ;;  %v1948_v56 = vpop.xlane.xlu0 %1947  ;;  %v6820_v10 = vsel %vm2243_vm6, 1.0, %v8215_v16  ;;  %v1561_v61 = vshll.u32 %v1560_v35, 16 }
 0x315   :  { %2851 = vst.msk [vmem:[%s8019_s3 + $0x118] sm:$0xff] %vm148_vm0, %v6810_v41  ;;  %v1949_v28 = vcvt.f32.s32 %v1948_v56  ;;  %v6823_v8 = vpop.f32.mrf.mxu1  ;;  %v3901_v56 = vsel %vm940_vm1, %v6769_v46, 0.0 }
 0x316   :  { %2900 = vst.msk [vmem:[%s8020_s4 + $0xa0] sm:$0xff] %vm940_vm1, %v6820_v10  ;;  %vm2238_vm7 = vcmp.eq.s32.totalorder %v5236_v51, %v1502_v58  ;;  %v340_v54 = vpop.xlane.xlu1 %339 }
 0x317   :  { %2820 = vst.msk [vmem:[%s8019_s3 + $0x20] sm:$0xff] %vm148_vm0, %v6823_v8  ;;  %v1952_v47 = vadd.s32 %v1951_v7, %v1949_v28  ;;  %v4313_v48 = vsel %vm2238_vm7, 1.0, %v8215_v16  ;;  %v1669_v28 = vand.u32 65535, %v6347_v40  ;;  %v4435_v40 = vld [vmem:[%s8018_s2] ss:$0 sm:$0xff] }
 0x318   :  { %4377 = vmatmul.msk.f32.gmra.mxu1 %vm940_vm1, %v4313_v48  ;;  %2895 = vst.msk [vmem:[%s8020_s4 + $0x78] sm:$0xff] %vm940_vm1, %v4313_v48  ;;  %v3899_v0 = vsel %vm940_vm1, %v4313_v48, 0.0  ;;  %v811_v35 = vadd.f32 %v4435_v40, %v340_v54 }
 0x319   :  { %v3900_v27 = vadd.f32 %v3899_v0, %v6757_v63  ;;  %v6847_v36 = vpop.xlane.xlu2 %2018  ;;  %2108 = vmin.xlane.f32.xlu2 %v6837_v29  ;;  %vm2268_vm8 = vcmp.eq.s32.totalorder %v5236_v51, %v1952_v47  ;;  %v874_v63 = vmul.f32 2.0, %v739_v50  ;;  %v742_v0 = vpop.f32.mrf.mxu2  ;;  %v1671_v38 = vcvt.s32.f32 %v1669_v28 }
 0x31a   :  { %vm2020_vm9 = vcmp.eq.f32.partialorder %v6344_v43, %v6847_v36  ;;  %v6854_v58 = vsel %vm2268_vm8, 1.0, %v8215_v16  ;;  %v875_v13 = vmul.f32 2.0, %v742_v0  ;;  %v1545_v28 = vcvt.f32.s32 %v6225_v39 }
 0x31b   :  { %8305 = vst [vmem:[#allocation31_spill] sm:$0xff] %v6854_v58  ;;  %4407 = vmatmul.msk.f32.gmra.mxu3 %vm940_vm1, %v6854_v58  ;;  %v2021_v43 = vsel %vm2020_vm9, %v2016_v23, inf  ;;  %v3902_v7 = vadd.f32 %v3901_v56, %v3900_v27  ;;  %v6872_v41 = vsub.f32 %v810_v3, %v874_v63  ;;  %v2029_v23 = vand.u32 65535, %v6356_v15 }
 0x31c   :  { %2925 = vst.msk [vmem:[%s8020_s4 + $0x168] sm:$0xff] %vm940_vm1, %v6854_v58  ;;  %2022 = vmin.xlane.f32.xlu0 %v2021_v43  ;;  %v1558_v47 = vpop.xlane.xlu0 %1557  ;;  %v1256_v27 = vsel %vm1192_vm10, %v5236_v51, 8  ;;  %v1546_v0 = vshll.u32 %v1545_v28, 16 }
 0x31d   :  { %v1559_v50 = vcvt.f32.s32 %v1558_v47  ;;  %v3904_v48 = vadd.f32 %v3903_v14, %v3902_v7  ;;  %v6890_v3 = vsel %vm940_vm1, %v1256_v27, 2147483647  ;;  %v6905_v7 = vsub.f32 %v811_v35, %v875_v13 }
 0x31e   :  { %v2120_v47 = vshra.s32 %v6890_v3, 16 }
 0x31f   :  { %v1562_v58 = vadd.s32 %v1561_v61, %v1559_v50  ;;  %v1965_v61 = vcvt.f32.s32 %v6244_v53  ;;  %v1130_v50 = vsel %vm940_vm1, %v6905_v7, inf }
 0x320   :  { %4378 = vmatmul.msk.f32.gmra.mxu1 %vm940_vm1, %v6769_v46  ;;  %v1127_v46 = vsel %vm940_vm1, %v6872_v41, inf  ;;  %v6921_v27 = vcvt.s32.f32 %v2120_v47 }
 0x321   :  { %v6881_v56 = vpop.xlane.xlu2 %1673  ;;  %vm2242_vm11 = vcmp.eq.s32.totalorder %v5236_v51, %v1562_v58 }
 0x322   :  { %vm1675_vm12 = vcmp.eq.f32.partialorder %v6379_v30, %v6881_v56  ;;  %v6887_v15 = vsel %vm2242_vm11, 1.0, %v8215_v16  ;;  %v2031_v30 = vcvt.s32.f32 %v2029_v23 }
 0x323   :  { %v1676_v63 = vsel %vm1675_vm12, %v1671_v38, inf  ;;  %2899 = vst.msk [vmem:[%s8020_s4 + $0x98] sm:$0xff] %vm940_vm1, %v6887_v15  ;;  %v1966_v38 = vshll.u32 %v1965_v61, 16 }
 0x324   :  { %1128 = vmin.xlane.f32.xlu0 %v1127_v46  ;;  %1677 = vmin.xlane.f32.xlu1 %v1676_v63  ;;  %v6899_v58 = vpop.xlane.xlu0 %2033 }
 0x325   :  { %vm2035_vm13 = vcmp.eq.f32.partialorder %v6385_v1, %v6899_v58  ;;  %v6903_v43 = vpop.f32.mrf.mxu1  ;;  %v1117_v54 = vpop.xlane.xlu1 %1116 }
 0x326   :  { %2821 = vst.msk [vmem:[%s8019_s3 + $0x28] sm:$0xff] %vm148_vm0, %v6903_v43  ;;  %vm1193_vm14 = vcmp.eq.f32.partialorder %v6389_v33, %v1117_v54  ;;  %v2036_v14 = vsel %vm2035_vm13, %v2031_v30, inf  ;;  %v2044_v54 = vand.u32 65535, %v6435_v25 }
 0x327   :  { %2037 = vmin.xlane.f32.xlu2 %v2036_v14  ;;  %v1257_v1 = vsel %vm1193_vm14, %v5236_v51, 8 }
 0x328   :  { %4379 = vmatmul.msk.f32.gmra.mxu1 %vm940_vm1, %v6706_v21  ;;  %v6924_v40 = vsel %vm940_vm1, %v1257_v1, 2147483647  ;;  %v1684_v21 = vand.u32 65535, %v6420_v18 }
 0x329   :  { %v1543_v39 = vpop.xlane.xlu2 %1542  ;;  %v2135_v46 = vshra.s32 %v6924_v40, 16 }
 0x32a   :  { %v1544_v23 = vcvt.f32.s32 %v1543_v39  ;;  %v1686_v1 = vcvt.s32.f32 %v1684_v21  ;;  %v3907_v39 = vsel %vm940_vm1, %v6887_v15, 0.0 }
 0x32b   :  { %v6960_v61 = vcvt.s32.f32 %v2135_v46  ;;  %v1699_v46 = vand.u32 65535, %v6484_v2 }
 0x32c   :  { %v1547_v33 = vadd.s32 %v1546_v0, %v1544_v23  ;;  %2123 = vmin.xlane.f32.xlu0 %v6921_v27  ;;  %1131 = vmin.xlane.f32.xlu1 %v1130_v50  ;;  %v1963_v35 = vpop.xlane.xlu0 %1962  ;;  %v2046_v50 = vcvt.s32.f32 %v2044_v54  ;;  %v3909_v23 = vsel %vm940_vm1, %v6820_v10, 0.0 }
 0x32d   :  { %v1964_v53 = vcvt.f32.s32 %v1963_v35  ;;  %v6928_v13 = vpop.f32.mrf.mxu1 }
 0x32e   :  { %2822 = vst.msk [vmem:[%s8019_s3 + $0x30] sm:$0xff] %vm148_vm0, %v6928_v13  ;;  %v6936_v63 = vpop.f32.mrf.mxu3  ;;  %vm2241_vm15 = vcmp.eq.s32.totalorder %v5236_v51, %v1547_v33 }
 0x32f   :  { %v1967_v30 = vadd.s32 %v1966_v38, %v1964_v53  ;;  %2852 = vst.msk [vmem:[%s8019_s3 + $0x120] sm:$0xff] %vm148_vm0, %v6936_v63  ;;  %v4316_v18 = vsel %vm2241_vm15, 1.0, %v8215_v16  ;;  %v2059_v38 = vand.u32 65535, %v6443_v52 }
 0x330   :  { %4380 = vmatmul.msk.f32.gmra.mxu1 %vm940_vm1, %v4316_v18  ;;  %2898 = vst.msk [vmem:[%s8020_s4 + $0x90] sm:$0xff] %vm940_vm1, %v4316_v18  ;;  %v3905_v28 = vsel %vm940_vm1, %v4316_v18, 0.0 }
 0x331   :  { %v3906_v47 = vadd.f32 %v3905_v28, %v3904_v48  ;;  %v6952_v14 = vpop.xlane.xlu2 %1688  ;;  %vm2269_vm2 = vcmp.eq.s32.totalorder %v5236_v51, %v1967_v30  ;;  %v8306_v30 = vld [vmem:[#allocation13_spill] sm:$0xff]  ;;  %v2061_v54 = vcvt.s32.f32 %v2059_v38 }
 0x332   :  { %vm1690_vm3 = vcmp.eq.f32.partialorder %v6440_v5, %v6952_v14  ;;  %v6958_v25 = vsel %vm2269_vm2, 1.0, %v8215_v16 }
 0x333   :  { %4408 = vmatmul.msk.f32.gmra.mxu3 %vm940_vm1, %v6958_v25  ;;  %2926 = vst.msk [vmem:[%s8020_s4 + $0x170] sm:$0xff] %vm940_vm1, %v6958_v25  ;;  %v1691_v48 = vsel %vm1690_vm3, %v1686_v1, inf  ;;  %v3908_v0 = vadd.f32 %v3907_v39, %v3906_v47  ;;  %v1590_v1 = vcvt.f32.s32 %v6400_v49 }
 0x334   :  { %2138 = vmin.xlane.f32.xlu1 %v6960_v61  ;;  %1692 = vmin.xlane.f32.xlu2 %v1691_v48  ;;  %v6972_v5 = vpop.xlane.xlu0 %2048 }
 0x335   :  { %vm2050_vm4 = vcmp.eq.f32.partialorder %v6451_v22, %v6972_v5  ;;  %v3910_v21 = vadd.f32 %v3909_v23, %v3908_v0  ;;  %v1980_v22 = vcvt.f32.s32 %v6308_v32 }
 0x336   :  { %v6978_v33 = vpop.f32.mrf.mxu3  ;;  %v2051_v35 = vsel %vm2050_vm4, %v2046_v50, inf  ;;  %v1591_v50 = vshll.u32 %v1590_v1, 16 }
 0x337   :  { %2853 = vst.msk [vmem:[%s8019_s3 + $0x128] sm:$0xff] %vm148_vm0, %v6978_v33  ;;  %2052 = vmin.xlane.f32.xlu0 %v2051_v35  ;;  %v1981_v28 = vshll.u32 %v1980_v22, 16  ;;  %v1605_v35 = vcvt.f32.s32 %v6414_v11  ;;  %v4436_v22 = vld [vmem:[%s8016_s0 + $0x8] sm:$0xff]  ;;  %v4437_v11 = vld [vmem:[%s8016_s0] sm:$0xff] }
 0x338   :  { %4381 = vmatmul.msk.f32.gmra.mxu1 %vm940_vm1, %v6887_v15  ;;  %v1701_v15 = vcvt.s32.f32 %v1699_v46  ;;  %v3679_v46 = vsub.f32 %v6604_v55, %v4436_v22 }
 0x339   :  { %v6989_v53 = vpop.xlane.xlu2 %2063 }
 0x33a   :  { %vm2065_vm5 = vcmp.eq.f32.partialorder %v8306_v30, %v6989_v53 }
 0x33b   :  { %v2066_v48 = vsel %vm2065_vm5, %v2061_v54, inf  ;;  %v1714_v54 = vand.u32 65535, %v6528_v57  ;;  %v4439_v57 = vld [vmem:[%s8016_s0 + $0x18] sm:$0xff] }
 0x33c   :  { %v1978_v18 = vpop.xlane.xlu0 %1977 }
 0x33d   :  { %v1979_v47 = vcvt.f32.s32 %v1978_v18 }
 0x33f   :  { %v1982_v52 = vadd.s32 %v1981_v28, %v1979_v47  ;;  %v6995_v39 = vpop.xlane.xlu1 %1703  ;;  %2067 = vmin.xlane.f32.xlu0 %v2066_v48  ;;  %v4438_v28 = vld [vmem:[%s8016_s0 + $0x10] sm:$0xff]  ;;  %v3681_v48 = vsub.f32 %v6726_v59, %v4439_v57 }
 0x340   :  { %vm1705_vm6 = vcmp.eq.f32.partialorder %v6505_v62, %v6995_v39  ;;  %4382 = vmatmul.msk.f32.gmra.mxu1 %vm940_vm1, %v6820_v10  ;;  %v3680_v47 = vsub.f32 %v6688_v44, %v4438_v28  ;;  %v4004_v44 = vmul.f32 %v3679_v46, %v3679_v46  ;;  %v8308_v46 = vld [vmem:[#allocation7_spill] sm:$0xff] }
 0x341   :  { %v1588_v32 = vpop.xlane.xlu2 %1587  ;;  %v1706_v2 = vsel %vm1705_vm6, %v1701_v15, inf  ;;  %vm2270_vm7 = vcmp.eq.s32.totalorder %v5236_v51, %v1982_v52 }
 0x342   :  { %v1589_v0 = vcvt.f32.s32 %v1588_v32  ;;  %1707 = vmin.xlane.f32.xlu2 %v1706_v2  ;;  %v7003_v49 = vsel %vm2270_vm7, 1.0, %v8215_v16  ;;  %v4005_v59 = vmul.f32 %v3680_v47, %v3680_v47  ;;  %v4068_v28 = vsel %vm148_vm0, %v4004_v44, 0.0  ;;  %v4441_v47 = vld [vmem:[%s8016_s0 + $0x28] sm:$0xff] }
 0x343   :  { %v7005_v23 = vpop.f32.mrf.mxu3  ;;  %4409 = vmatmul.msk.f32.gmra.mxu3 %vm940_vm1, %v7003_v49  ;;  %2927 = vst.msk [vmem:[%s8020_s4 + $0x178] sm:$0xff] %vm940_vm1, %v7003_v49 }
 0x344   :  { %v1592_v62 = vadd.s32 %v1591_v50, %v1589_v0  ;;  %2854 = vst.msk [vmem:[%s8019_s3 + $0x130] sm:$0xff] %vm148_vm0, %v7005_v23  ;;  %v1120_v10 = vpop.xlane.xlu0 %1119  ;;  %v4070_v44 = vsel %vm148_vm0, %v4005_v59, 0.0 }
 0x345   :  { %vm1194_vm8 = vcmp.eq.f32.partialorder %v6509_v12, %v1120_v10  ;;  %v7021_v38 = vpop.f32.mrf.mxu1  ;;  %v3678_v12 = vsub.f32 %v6524_v4, %v4437_v11  ;;  %v1606_v4 = vshll.u32 %v1605_v35, 16  ;;  %v4440_v10 = vld [vmem:[%s8016_s0 + $0x20] sm:$0xff]  ;;  %v1620_v11 = vcvt.f32.s32 %v8308_v46 }
 0x346   :  { %v1258_v30 = vsel %vm1194_vm8, %v5236_v51, 8  ;;  %2823 = vst.msk [vmem:[%s8019_s3 + $0x38] sm:$0xff] %vm148_vm0, %v7021_v38  ;;  %vm2244_vm9 = vcmp.eq.s32.totalorder %v5236_v51, %v1592_v62  ;;  %v1635_v62 = vcvt.f32.s32 %v6578_v45  ;;  %v3682_v35 = vsub.f32 %v6823_v8, %v4440_v10  ;;  %v8309_v8 = vld [vmem:[#allocation48_spill] sm:$0xff] }
 0x347   :  { %v7039_v18 = vsel %vm940_vm1, %v1258_v30, 2147483647  ;;  %v4319_v55 = vsel %vm2244_vm9, 1.0, %v8215_v16  ;;  %v4003_v0 = vmul.f32 %v3678_v12, %v3678_v12  ;;  %v1716_v45 = vcvt.s32.f32 %v1714_v54 }
 0x348   :  { %v2150_v1 = vshra.s32 %v7039_v18, 16  ;;  %4383 = vmatmul.msk.f32.gmra.mxu1 %vm940_vm1, %v4319_v55  ;;  %2901 = vst.msk [vmem:[%s8020_s4 + $0xa8] sm:$0xff] %vm940_vm1, %v4319_v55  ;;  %v3911_v52 = vsel %vm940_vm1, %v4319_v55, 0.0  ;;  %v4006_v12 = vmul.f32 %v3681_v48, %v3681_v48  ;;  %v1636_v57 = vshll.u32 %v1635_v62, 16 }
 0x349   :  { %v1603_v15 = vpop.xlane.xlu2 %1602  ;;  %v3912_v32 = vadd.f32 %v3911_v52, %v3910_v21  ;;  %v4007_v48 = vmul.f32 %v3682_v35, %v3682_v35  ;;  %v1621_v62 = vshll.u32 %v1620_v11, 16 }
 0x34a   :  { %v1604_v2 = vcvt.f32.s32 %v1603_v15  ;;  %v7058_v50 = vcvt.s32.f32 %v2150_v1  ;;  %v3683_v1 = vsub.f32 %v6903_v43, %v4441_v47  ;;  %v4442_v43 = vld [vmem:[%s8016_s0 + $0x30] sm:$0xff]  ;;  %v4072_v59 = vsel %vm148_vm0, %v4006_v12, 0.0 }
 0x34b   :  { %v7065_v22 = vpop.f32.mrf.mxu3 }
 0x34c   :  { %8307 = vst [vmem:[#allocation44_spill] sm:$0xff] %v7065_v22  ;;  %v1607_v30 = vadd.s32 %v1606_v4, %v1604_v2  ;;  %2153 = vmin.xlane.f32.xlu1 %v7058_v50  ;;  %v7073_v21 = vpop.xlane.xlu0 %1718  ;;  %v4067_v4 = vsel %vm148_vm0, %v4003_v0, 0.0  ;;  %v3684_v2 = vsub.f32 %v6928_v13, %v4442_v43  ;;  %v4008_v46 = vmul.f32 %v3683_v1, %v3683_v1  ;;  %v4443_v13 = vld [vmem:[%s8016_s0 + $0x38] sm:$0xff] }
 0x34d   :  { %2855 = vst.msk [vmem:[%s8019_s3 + $0x138] sm:$0xff] %vm148_vm0, %v7065_v22  ;;  %vm1720_vm10 = vcmp.eq.f32.partialorder %v8309_v8, %v7073_v21  ;;  %v2648_v55 = vpop.f32.mrf.mxu1  ;;  %v4069_v35 = vadd.f32 %v4068_v28, %v4067_v4  ;;  %v3685_v8 = vsub.f32 %v7021_v38, %v4443_v13  ;;  %v4074_v43 = vsel %vm148_vm0, %v4007_v48, 0.0 }
 0x34e   :  { %2824 = vst.msk [vmem:[%s8019_s3 + $0x40] sm:$0xff] %vm148_vm0, %v2648_v55  ;;  %v1721_v54 = vsel %vm1720_vm10, %v1716_v45, inf  ;;  %vm2245_vm11 = vcmp.eq.s32.totalorder %v5236_v51, %v1607_v30  ;;  %v4009_v11 = vmul.f32 %v3684_v2, %v3684_v2  ;;  %v1995_v38 = vcvt.f32.s32 %v6596_v26 }
 0x34f   :  { %v1633_v52 = vpop.xlane.xlu1 %1632  ;;  %1722 = vmin.xlane.f32.xlu2 %v1721_v54  ;;  %v4320_v15 = vsel %vm2245_vm11, 1.0, %v8215_v16  ;;  %v4076_v48 = vsel %vm148_vm0, %v4008_v46, 0.0  ;;  %v1650_v26 = vcvt.f32.s32 %v6616_v9 }
 0x350   :  { %v1634_v10 = vcvt.f32.s32 %v1633_v52  ;;  %4384 = vmatmul.msk.f32.gmra.mxu1 %vm940_vm1, %v4320_v15  ;;  %2902 = vst.msk [vmem:[%s8020_s4 + $0xb0] sm:$0xff] %vm940_vm1, %v4320_v15  ;;  %v3913_v0 = vsel %vm940_vm1, %v4320_v15, 0.0  ;;  %v4071_v52 = vadd.f32 %v4070_v44, %v4069_v35  ;;  %v4010_v15 = vmul.f32 %v3685_v8, %v3685_v8 }
 0x351   :  { %v3914_v30 = vadd.f32 %v3913_v0, %v3912_v32  ;;  %v1618_v45 = vpop.xlane.xlu2 %1617  ;;  %v4444_v32 = vld [vmem:[%s8016_s0 + $0x40] sm:$0xff]  ;;  %v4078_v0 = vsel %vm148_vm0, %v4009_v11, 0.0  ;;  %v1996_v35 = vshll.u32 %v1995_v38, 16 }
 0x352   :  { %v1637_v47 = vadd.s32 %v1636_v57, %v1634_v10  ;;  %v1619_v54 = vcvt.f32.s32 %v1618_v45  ;;  %v3686_v12 = vsub.f32 %v2648_v55, %v4444_v32  ;;  %v4073_v1 = vadd.f32 %v4072_v59, %v4071_v52  ;;  %v4445_v55 = vld [vmem:[%s8016_s0 + $0x48] sm:$0xff] }
 0x353   :  { %v7107_v22 = vpop.f32.mrf.mxu3  ;;  %v4080_v13 = vsel %vm148_vm0, %v4010_v15, 0.0 }
 0x354   :  { %v1622_v28 = vadd.s32 %v1621_v62, %v1619_v54  ;;  %2856 = vst.msk [vmem:[%s8019_s3 + $0x140] sm:$0xff] %vm148_vm0, %v7107_v22  ;;  %vm2247_vm12 = vcmp.eq.s32.totalorder %v5236_v51, %v1637_v47  ;;  %v4075_v2 = vadd.f32 %v4074_v43, %v4073_v1  ;;  %v4011_v62 = vmul.f32 %v3686_v12, %v3686_v12 }
 0x355   :  { %v2651_v4 = vpop.f32.mrf.mxu1  ;;  %v4322_v57 = vsel %vm2247_vm12, 1.0, %v8215_v16  ;;  %v1651_v43 = vshll.u32 %v1650_v26, 16 }
 0x356   :  { %2825 = vst.msk [vmem:[%s8019_s3 + $0x48] sm:$0xff] %vm148_vm0, %v2651_v4  ;;  %v3687_v44 = vsub.f32 %v2651_v4, %v4445_v55  ;;  %vm2246_vm13 = vcmp.eq.s32.totalorder %v5236_v51, %v1622_v28  ;;  %v4077_v59 = vadd.f32 %v4076_v48, %v4075_v2  ;;  %v3917_v52 = vsel %vm940_vm1, %v4322_v57, 0.0  ;;  %v4446_v48 = vld [vmem:[%s8016_s0 + $0x50] sm:$0xff] }
 0x357   :  { %v4321_v10 = vsel %vm2246_vm13, 1.0, %v8215_v16  ;;  %2904 = vst.msk [vmem:[%s8020_s4 + $0xc0] sm:$0xff] %vm940_vm1, %v4322_v57  ;;  %v4082_v28 = vsel %vm148_vm0, %v4011_v62, 0.0  ;;  %v2074_v2 = vand.u32 65535, %v6647_v20 }
 0x358   :  { %4385 = vmatmul.msk.f32.gmra.mxu1 %vm940_vm1, %v4321_v10  ;;  %2903 = vst.msk [vmem:[%s8020_s4 + $0xb8] sm:$0xff] %vm940_vm1, %v4321_v10  ;;  %v3915_v9 = vsel %vm940_vm1, %v4321_v10, 0.0  ;;  %v4012_v8 = vmul.f32 %v3687_v44, %v3687_v44  ;;  %v4079_v11 = vadd.f32 %v4078_v0, %v4077_v59 }
 0x359   :  { %v3916_v45 = vadd.f32 %v3915_v9, %v3914_v30  ;;  %v1993_v46 = vpop.xlane.xlu2 %1992 }
 0x35a   :  { %v1994_v47 = vcvt.f32.s32 %v1993_v46  ;;  %v1648_v54 = vpop.xlane.xlu0 %1647  ;;  %v4081_v4 = vadd.f32 %v4080_v13, %v4079_v11  ;;  %v4084_v30 = vsel %vm148_vm0, %v4012_v8, 0.0  ;;  %v4447_v13 = vld [vmem:[%s8016_s0 + $0x58] sm:$0xff]  ;;  %v8310_v11 = vld [vmem:[#allocation45_spill] sm:$0xff] }
 0x35b   :  { %v1649_v32 = vcvt.f32.s32 %v1648_v54  ;;  %v3918_v12 = vadd.f32 %v3917_v52, %v3916_v45  ;;  %v2076_v45 = vcvt.s32.f32 %v2074_v2  ;;  %v2010_v52 = vcvt.f32.s32 %v6565_v17 }
 0x35c   :  { %v1997_v1 = vadd.s32 %v1996_v35, %v1994_v47  ;;  %v4083_v44 = vadd.f32 %v4082_v28, %v4081_v4  ;;  %v8311_v28 = vld [vmem:[#allocation40_spill] sm:$0xff] }
 0x35d   :  { %v1652_v55 = vadd.s32 %v1651_v43, %v1649_v32  ;;  %v2654_v38 = vpop.f32.mrf.mxu1  ;;  %v2089_v32 = vand.u32 65535, %v8310_v11  ;;  %v2011_v17 = vshll.u32 %v2010_v52, 16  ;;  %v4448_v11 = vld [vmem:[%s8016_s0 + $0x60] sm:$0xff] }
 0x35e   :  { %2826 = vst.msk [vmem:[%s8019_s3 + $0x50] sm:$0xff] %vm148_vm0, %v2654_v38  ;;  %v3688_v15 = vsub.f32 %v2654_v38, %v4446_v48  ;;  %vm2271_vm14 = vcmp.eq.s32.totalorder %v5236_v51, %v1997_v1  ;;  %v4085_v62 = vadd.f32 %v4084_v30, %v4083_v44 }
 0x35f   :  { %v7155_v26 = vsel %vm2271_vm14, 1.0, %v8215_v16  ;;  %vm2248_vm15 = vcmp.eq.s32.totalorder %v5236_v51, %v1652_v55  ;;  %v2091_v2 = vcvt.s32.f32 %v2089_v32 }
 0x360   :  { %v4013_v10 = vmul.f32 %v3688_v15, %v3688_v15  ;;  %4386 = vmatmul.msk.f32.gmra.mxu1 %vm940_vm1, %v4322_v57  ;;  %4410 = vmatmul.msk.f32.gmra.mxu3 %vm940_vm1, %v7155_v26  ;;  %2928 = vst.msk [vmem:[%s8020_s4 + $0x180] sm:$0xff] %vm940_vm1, %v7155_v26  ;;  %v4323_v0 = vsel %vm2248_vm15, 1.0, %v8215_v16 }
 0x361   :  { %2905 = vst.msk [vmem:[%s8020_s4 + $0xc8] sm:$0xff] %vm940_vm1, %v4323_v0  ;;  %v3919_v20 = vsel %vm940_vm1, %v4323_v0, 0.0 }
 0x362   :  { %v4086_v57 = vsel %vm148_vm0, %v4013_v10, 0.0  ;;  %v7174_v9 = vadd.f32 %v3919_v20, %v3918_v12  ;;  %v8312_v10 = vld [vmem:[#allocation47_spill] sm:$0xff] }
 0x363   :  { %v4087_v35 = vadd.f32 %v4086_v57, %v4085_v62 }
 0x364   :  { %v7176_v59 = vpop.xlane.xlu1 %2078 }
 0x365   :  { %vm2080_vm2 = vcmp.eq.f32.partialorder %v6652_v37, %v7176_v59  ;;  %v2657_v46 = vpop.f32.mrf.mxu1 }
 0x366   :  { %2827 = vst.msk [vmem:[%s8019_s3 + $0x58] sm:$0xff] %vm148_vm0, %v2657_v46  ;;  %v3689_v8 = vsub.f32 %v2657_v46, %v4447_v13  ;;  %v2081_v47 = vsel %vm2080_vm2, %v2076_v45, inf  ;;  %v8313_v45 = vld [vmem:[#allocation5_spill] sm:$0xff]  ;;  %v1729_v13 = vand.u32 65535, %v6750_v42 }
 0x367   :  { %2082 = vmin.xlane.f32.xlu0 %v2081_v47 }
 0x368   :  { %v4014_v54 = vmul.f32 %v3689_v8, %v3689_v8  ;;  %4387 = vmatmul.msk.f32.gmra.mxu1 %vm940_vm1, %v4323_v0 }
 0x36a   :  { %v4088_v37 = vsel %vm148_vm0, %v4014_v54, 0.0  ;;  %v1123_v43 = vpop.xlane.xlu2 %1122 }
 0x36b   :  { %v4089_v12 = vadd.f32 %v4088_v37, %v4087_v35  ;;  %vm1195_vm3 = vcmp.eq.f32.partialorder %v8311_v28, %v1123_v43  ;;  %v7192_v1 = vpop.f32.mrf.mxu3  ;;  %v1731_v43 = vcvt.s32.f32 %v1729_v13 }
 0x36c   :  { %v1259_v4 = vsel %vm1195_vm3, %v5236_v51, 8  ;;  %2857 = vst.msk [vmem:[%s8019_s3 + $0x148] sm:$0xff] %vm148_vm0, %v7192_v1  ;;  %v2008_v55 = vpop.xlane.xlu1 %2007 }
 0x36d   :  { %v7201_v38 = vsel %vm940_vm1, %v1259_v4, 2147483647  ;;  %v2009_v30 = vcvt.f32.s32 %v2008_v55  ;;  %v1665_v55 = vcvt.f32.s32 %v6628_v34 }
 0x36e   :  { %v2165_v48 = vshra.s32 %v7201_v38, 16 }
 0x36f   :  { %v2012_v15 = vadd.s32 %v2011_v17, %v2009_v30  ;;  %v7204_v44 = vpop.xlane.xlu0 %2093  ;;  %v1744_v17 = vand.u32 65535, %v6785_v60  ;;  %v2104_v60 = vand.u32 65535, %v6791_v24 }
 0x370   :  { %vm2095_vm4 = vcmp.eq.f32.partialorder %v8312_v10, %v7204_v44  ;;  %v7208_v0 = vcvt.s32.f32 %v2165_v48 }
 0x371   :  { %v2096_v62 = vsel %vm2095_vm4, %v2091_v2, inf  ;;  %vm2272_vm5 = vcmp.eq.s32.totalorder %v5236_v51, %v2012_v15  ;;  %v1666_v15 = vshll.u32 %v1665_v55, 16  ;;  %v4450_v55 = vld [vmem:[%s8016_s0 + $0x70] sm:$0xff] }
 0x372   :  { %2168 = vmin.xlane.f32.xlu1 %v7208_v0  ;;  %2097 = vmin.xlane.f32.xlu0 %v2096_v62  ;;  %v7213_v20 = vsel %vm2272_vm5, 1.0, %v8215_v16  ;;  %v4449_v62 = vld [vmem:[%s8016_s0 + $0x68] sm:$0xff] }
 0x373   :  { %v7215_v57 = vpop.f32.mrf.mxu3  ;;  %4411 = vmatmul.msk.f32.gmra.mxu3 %vm940_vm1, %v7213_v20  ;;  %2929 = vst.msk [vmem:[%s8020_s4 + $0x188] sm:$0xff] %vm940_vm1, %v7213_v20 }
 0x374   :  { %2858 = vst.msk [vmem:[%s8019_s3 + $0x150] sm:$0xff] %vm148_vm0, %v7215_v57 }
 0x375   :  { %v1126_v35 = vpop.xlane.xlu1 %1125 }
 0x376   :  { %vm1196_vm6 = vcmp.eq.f32.partialorder %v8313_v45, %v1126_v35 }
 0x377   :  { %v1260_v46 = vsel %vm1196_vm6, %v5236_v51, 8 }
 0x378   :  { %v7233_v8 = vsel %vm940_vm1, %v1260_v46, 2147483647  ;;  %v1746_v46 = vcvt.s32.f32 %v1744_v17 }
 0x379   :  { %v2180_v47 = vshra.s32 %v7233_v8, 16 }
 0x37b   :  { %v7236_v54 = vpop.f32.mrf.mxu3  ;;  %v7238_v52 = vcvt.s32.f32 %v2180_v47 }
 0x37c   :  { %2859 = vst.msk [vmem:[%s8019_s3 + $0x158] sm:$0xff] %vm148_vm0, %v7236_v54  ;;  %v7245_v37 = vpop.xlane.xlu2 %1733 }
 0x37d   :  { %vm1735_vm7 = vcmp.eq.f32.partialorder %v6759_v31, %v7245_v37  ;;  %v2660_v42 = vpop.f32.mrf.mxu1  ;;  %2183 = vmin.xlane.f32.xlu1 %v7238_v52 }
 0x37e   :  { %2828 = vst.msk [vmem:[%s8019_s3 + $0x60] sm:$0xff] %vm148_vm0, %v2660_v42  ;;  %v3690_v32 = vsub.f32 %v2660_v42, %v4448_v11  ;;  %v1736_v28 = vsel %vm1735_vm7, %v1731_v43, inf }
 0x37f   :  { %1737 = vmin.xlane.f32.xlu2 %v1736_v28  ;;  %v2106_v28 = vcvt.s32.f32 %v2104_v60  ;;  %v2040_v60 = vcvt.f32.s32 %v6899_v58 }
 0x380   :  { %v4015_v4 = vmul.f32 %v3690_v32, %v3690_v32 }
 0x382   :  { %v4090_v31 = vsel %vm148_vm0, %v4015_v4, 0.0 }
 0x383   :  { %v4091_v30 = vadd.f32 %v4090_v31, %v4089_v12 }
 0x384   :  { %v1663_v48 = vpop.xlane.xlu2 %1662 }
 0x385   :  { %v1664_v2 = vcvt.f32.s32 %v1663_v48  ;;  %v2663_v10 = vpop.f32.mrf.mxu1 }
 0x386   :  { %2829 = vst.msk [vmem:[%s8019_s3 + $0x68] sm:$0xff] %vm148_vm0, %v2663_v10  ;;  %v3691_v35 = vsub.f32 %v2663_v10, %v4449_v62  ;;  %v1680_v62 = vcvt.f32.s32 %v6881_v56  ;;  %v4451_v56 = vld [vmem:[%s8016_s0 + $0x78] sm:$0xff] }
 0x387   :  { %v1667_v34 = vadd.s32 %v1666_v15, %v1664_v2  ;;  %v7267_v45 = vpop.xlane.xlu1 %1748 }
 0x388   :  { %v4016_v12 = vmul.f32 %v3691_v35, %v3691_v35  ;;  %vm1750_vm8 = vcmp.eq.f32.partialorder %v6807_v6, %v7267_v45  ;;  %v2025_v6 = vcvt.f32.s32 %v6847_v36 }
 0x389   :  { %v1751_v13 = vsel %vm1750_vm8, %v1746_v46, inf  ;;  %vm2249_vm9 = vcmp.eq.s32.totalorder %v5236_v51, %v1667_v34 }
 0x38a   :  { %v4092_v47 = vsel %vm148_vm0, %v4016_v12, 0.0  ;;  %1752 = vmin.xlane.f32.xlu2 %v1751_v13  ;;  %v4324_v43 = vsel %vm2249_vm9, 1.0, %v8215_v16  ;;  %v2026_v17 = vshll.u32 %v2025_v6, 16  ;;  %v2119_v6 = vand.u32 65535, %v6890_v3  ;;  %v4452_v3 = vld [vmem:[%s8016_s0 + $0x80] sm:$0xff] }
 0x38b   :  { %v4093_v42 = vadd.f32 %v4092_v47, %v4091_v30  ;;  %4388 = vmatmul.msk.f32.gmra.mxu1 %vm940_vm1, %v4324_v43  ;;  %2906 = vst.msk [vmem:[%s8020_s4 + $0xd0] sm:$0xff] %vm940_vm1, %v4324_v43  ;;  %v3921_v24 = vsel %vm940_vm1, %v4324_v43, 0.0  ;;  %v1681_v47 = vshll.u32 %v1680_v62, 16 }
 0x38c   :  { %v3922_v11 = vadd.f32 %v3921_v24, %v7174_v9  ;;  %v7283_v32 = vpop.xlane.xlu2 %2108 }
 0x38d   :  { %vm2110_vm10 = vcmp.eq.f32.partialorder %v6837_v29, %v7283_v32  ;;  %v2666_v4 = vpop.f32.mrf.mxu1 }
 0x38e   :  { %2830 = vst.msk [vmem:[%s8019_s3 + $0x70] sm:$0xff] %vm148_vm0, %v2666_v4  ;;  %v3692_v31 = vsub.f32 %v2666_v4, %v4450_v55  ;;  %v2111_v36 = vsel %vm2110_vm10, %v2106_v28, inf }
 0x38f   :  { %2112 = vmin.xlane.f32.xlu0 %v2111_v36  ;;  %v2023_v9 = vpop.xlane.xlu0 %2022 }
 0x390   :  { %v4017_v30 = vmul.f32 %v3692_v31, %v3692_v31  ;;  %v2024_v48 = vcvt.f32.s32 %v2023_v9  ;;  %v2041_v31 = vshll.u32 %v2040_v60, 16  ;;  %v2121_v60 = vcvt.s32.f32 %v2119_v6 }
 0x391   :  { %v1695_v6 = vcvt.f32.s32 %v6952_v14 }
 0x392   :  { %v4094_v15 = vsel %vm148_vm0, %v4017_v30, 0.0  ;;  %v2027_v29 = vadd.s32 %v2026_v17, %v2024_v48 }
 0x393   :  { %v4095_v2 = vadd.f32 %v4094_v15, %v4093_v42  ;;  %v7295_v10 = vpop.f32.mrf.mxu3 }
 0x394   :  { %2860 = vst.msk [vmem:[%s8019_s3 + $0x160] sm:$0xff] %vm148_vm0, %v7295_v10  ;;  %vm2273_vm11 = vcmp.eq.s32.totalorder %v5236_v51, %v2027_v29 }
 0x395   :  { %v2669_v35 = vpop.f32.mrf.mxu1  ;;  %v7305_v34 = vsel %vm2273_vm11, 1.0, %v8215_v16 }
 0x396   :  { %2831 = vst.msk [vmem:[%s8019_s3 + $0x78] sm:$0xff] %vm148_vm0, %v2669_v35  ;;  %v3693_v46 = vsub.f32 %v2669_v35, %v4451_v56  ;;  %4412 = vmatmul.msk.f32.gmra.mxu3 %vm940_vm1, %v7305_v34 }
 0x397   :  { %2930 = vst.msk [vmem:[%s8020_s4 + $0x190] sm:$0xff] %vm940_vm1, %v7305_v34  ;;  %v1678_v12 = vpop.xlane.xlu1 %1677  ;;  %v1129_v13 = vpop.xlane.xlu0 %1128 }
 0x398   :  { %v4018_v43 = vmul.f32 %v3693_v46, %v3693_v46  ;;  %v1679_v42 = vcvt.f32.s32 %v1678_v12  ;;  %vm1197_vm12 = vcmp.eq.f32.partialorder %v6872_v41, %v1129_v13 }
 0x399   :  { %v1261_v24 = vsel %vm1197_vm12, %v5236_v51, 8 }
 0x39a   :  { %v4096_v28 = vsel %vm148_vm0, %v4018_v43, 0.0  ;;  %v1682_v58 = vadd.s32 %v1681_v47, %v1679_v42  ;;  %v7327_v4 = vsel %vm940_vm1, %v1261_v24, 2147483647  ;;  %v2038_v55 = vpop.xlane.xlu2 %2037 }
 0x39b   :  { %v4097_v36 = vadd.f32 %v4096_v28, %v4095_v2  ;;  %v2195_v9 = vshra.s32 %v7327_v4, 16  ;;  %v2039_v17 = vcvt.f32.s32 %v2038_v55  ;;  %v4453_v55 = vld [vmem:[%s8016_s0 + $0x88] sm:$0xff] }
 0x39c   :  { %vm2250_vm13 = vcmp.eq.s32.totalorder %v5236_v51, %v1682_v58 }
 0x39d   :  { %v2042_v30 = vadd.s32 %v2041_v31, %v2039_v17  ;;  %v2672_v41 = vpop.f32.mrf.mxu1  ;;  %v4325_v48 = vsel %vm2250_vm13, 1.0, %v8215_v16  ;;  %v7332_v15 = vcvt.s32.f32 %v2195_v9  ;;  %v1696_v17 = vshll.u32 %v1695_v6, 16 }
 0x39e   :  { %2832 = vst.msk [vmem:[%s8019_s3 + $0x80] sm:$0xff] %vm148_vm0, %v2672_v41  ;;  %v3694_v29 = vsub.f32 %v2672_v41, %v4452_v3  ;;  %4389 = vmatmul.msk.f32.gmra.mxu1 %vm940_vm1, %v4325_v48  ;;  %v3923_v2 = vsel %vm940_vm1, %v4325_v48, 0.0  ;;  %v7343_v62 = vpop.f32.mrf.mxu3 }
 0x39f   :  { %2907 = vst.msk [vmem:[%s8020_s4 + $0xd8] sm:$0xff] %vm940_vm1, %v4325_v48  ;;  %v3924_v35 = vadd.f32 %v3923_v2, %v3922_v11  ;;  %v1132_v56 = vpop.xlane.xlu1 %1131  ;;  %2198 = vmin.xlane.f32.xlu1 %v7332_v15  ;;  %v7350_v46 = vpop.xlane.xlu0 %2123  ;;  %vm2274_vm14 = vcmp.eq.s32.totalorder %v5236_v51, %v2042_v30 }
 0x3a0   :  { %v4019_v12 = vmul.f32 %v3694_v29, %v3694_v29  ;;  %2861 = vst.msk [vmem:[%s8019_s3 + $0x168] sm:$0xff] %vm148_vm0, %v7343_v62  ;;  %vm1198_vm15 = vcmp.eq.f32.partialorder %v6905_v7, %v1132_v56  ;;  %vm2125_vm2 = vcmp.eq.f32.partialorder %v6921_v27, %v7350_v46  ;;  %v7363_v13 = vsel %vm2274_vm14, 1.0, %v8215_v16 }
 0x3a1   :  { %v1262_v11 = vsel %vm1198_vm15, %v5236_v51, 8  ;;  %v2126_v47 = vsel %vm2125_vm2, %v2121_v60, inf  ;;  %4413 = vmatmul.msk.f32.gmra.mxu3 %vm940_vm1, %v7363_v13  ;;  %2931 = vst.msk [vmem:[%s8020_s4 + $0x198] sm:$0xff] %vm940_vm1, %v7363_v13  ;;  %v2134_v7 = vand.u32 65535, %v6924_v40  ;;  %v2055_v40 = vcvt.f32.s32 %v6972_v5 }
 0x3a2   :  { %v4098_v43 = vsel %vm148_vm0, %v4019_v12, 0.0  ;;  %v7367_v42 = vsel %vm940_vm1, %v1262_v11, 2147483647  ;;  %2127 = vmin.xlane.f32.xlu2 %v2126_v47 }
 0x3a3   :  { %v4099_v27 = vadd.f32 %v4098_v43, %v4097_v36  ;;  %v2210_v24 = vshra.s32 %v7367_v42, 16  ;;  %v2136_v14 = vcvt.s32.f32 %v2134_v7  ;;  %v2056_v56 = vshll.u32 %v2055_v40, 16 }
 0x3a5   :  { %v2675_v28 = vpop.f32.mrf.mxu1  ;;  %v7379_v58 = vcvt.s32.f32 %v2210_v24 }
 0x3a6   :  { %2833 = vst.msk [vmem:[%s8019_s3 + $0x88] sm:$0xff] %vm148_vm0, %v2675_v28  ;;  %v3695_v31 = vsub.f32 %v2675_v28, %v4453_v55 }
 0x3a7   :  { %v7389_v36 = vpop.xlane.xlu1 %2138  ;;  %v1693_v9 = vpop.xlane.xlu2 %1692  ;;  %2213 = vmin.xlane.f32.xlu0 %v7379_v58 }
 0x3a8   :  { %v4020_v30 = vmul.f32 %v3695_v31, %v3695_v31  ;;  %vm2140_vm3 = vcmp.eq.f32.partialorder %v6960_v61, %v7389_v36  ;;  %v1694_v41 = vcvt.f32.s32 %v1693_v9  ;;  %v4454_v61 = vld [vmem:[%s8016_s0 + $0x90] sm:$0xff] }
 0x3a9   :  { %v2141_v48 = vsel %vm2140_vm3, %v2136_v14, inf }
 0x3aa   :  { %v4100_v3 = vsel %vm148_vm0, %v4020_v30, 0.0  ;;  %v1697_v29 = vadd.s32 %v1696_v17, %v1694_v41  ;;  %2142 = vmin.xlane.f32.xlu1 %v2141_v48  ;;  %v2053_v2 = vpop.xlane.xlu0 %2052  ;;  %v4455_v48 = vld [vmem:[%s8016_s0 + $0x98] sm:$0xff] }
 0x3ab   :  { %v4101_v5 = vadd.f32 %v4100_v3, %v4099_v27  ;;  %v2054_v60 = vcvt.f32.s32 %v2053_v2  ;;  %v2070_v27 = vcvt.f32.s32 %v6989_v53  ;;  %v1710_v53 = vcvt.f32.s32 %v6995_v39 }
 0x3ac   :  { %vm2251_vm4 = vcmp.eq.s32.totalorder %v5236_v51, %v1697_v29 }
 0x3ad   :  { %v2057_v12 = vadd.s32 %v2056_v56, %v2054_v60  ;;  %v2678_v11 = vpop.f32.mrf.mxu1  ;;  %v4326_v47 = vsel %vm2251_vm4, 1.0, %v8215_v16  ;;  %v2071_v31 = vshll.u32 %v2070_v27, 16  ;;  %v1711_v41 = vshll.u32 %v1710_v53, 16 }
 0x3ae   :  { %2834 = vst.msk [vmem:[%s8019_s3 + $0x90] sm:$0xff] %vm148_vm0, %v2678_v11  ;;  %v3696_v43 = vsub.f32 %v2678_v11, %v4454_v61  ;;  %4390 = vmatmul.msk.f32.gmra.mxu1 %vm940_vm1, %v4326_v47  ;;  %v3925_v7 = vsel %vm940_vm1, %v4326_v47, 0.0 }
 0x3af   :  { %2908 = vst.msk [vmem:[%s8020_s4 + $0xe0] sm:$0xff] %vm940_vm1, %v4326_v47  ;;  %v3926_v24 = vadd.f32 %v3925_v7, %v3924_v35  ;;  %vm2275_vm5 = vcmp.eq.s32.totalorder %v5236_v51, %v2057_v12  ;;  %v2149_v12 = vand.u32 65535, %v7039_v18  ;;  %v4456_v18 = vld [vmem:[%s8016_s0 + $0xa0] sm:$0xff] }
 0x3b0   :  { %v4021_v6 = vmul.f32 %v3696_v43, %v3696_v43  ;;  %v7413_v28 = vsel %vm2275_vm5, 1.0, %v8215_v16 }
 0x3b1   :  { %4414 = vmatmul.msk.f32.gmra.mxu3 %vm940_vm1, %v7413_v28  ;;  %2932 = vst.msk [vmem:[%s8020_s4 + $0x1a0] sm:$0xff] %vm940_vm1, %v7413_v28 }
 0x3b2   :  { %v4102_v55 = vsel %vm148_vm0, %v4021_v6, 0.0  ;;  %v2068_v35 = vpop.xlane.xlu0 %2067  ;;  %v1725_v6 = vcvt.f32.s32 %v7073_v21  ;;  %v4457_v21 = vld [vmem:[%s8016_s0 + $0xa8] sm:$0xff] }
 0x3b3   :  { %v4103_v40 = vadd.f32 %v4102_v55, %v4101_v5  ;;  %v2069_v9 = vcvt.f32.s32 %v2068_v35  ;;  %v2151_v55 = vcvt.s32.f32 %v2149_v12 }
 0x3b5   :  { %v2072_v14 = vadd.s32 %v2071_v31, %v2069_v9  ;;  %v2681_v17 = vpop.f32.mrf.mxu1  ;;  %v1708_v30 = vpop.xlane.xlu2 %1707  ;;  %v1726_v9 = vshll.u32 %v1725_v6, 16 }
 0x3b6   :  { %2835 = vst.msk [vmem:[%s8019_s3 + $0x98] sm:$0xff] %vm148_vm0, %v2681_v17  ;;  %v3697_v39 = vsub.f32 %v2681_v17, %v4455_v48  ;;  %v1709_v3 = vcvt.f32.s32 %v1708_v30  ;;  %v7431_v29 = vpop.f32.mrf.mxu3 }
 0x3b7   :  { %2862 = vst.msk [vmem:[%s8019_s3 + $0x170] sm:$0xff] %vm148_vm0, %v7431_v29  ;;  %vm2276_vm6 = vcmp.eq.s32.totalorder %v5236_v51, %v2072_v14 }
 0x3b8   :  { %v4022_v2 = vmul.f32 %v3697_v39, %v3697_v39  ;;  %v1712_v56 = vadd.s32 %v1711_v41, %v1709_v3  ;;  %v7440_v5 = vsel %vm2276_vm6, 1.0, %v8215_v16 }
 0x3b9   :  { %4415 = vmatmul.msk.f32.gmra.mxu3 %vm940_vm1, %v7440_v5  ;;  %2933 = vst.msk [vmem:[%s8020_s4 + $0x1a8] sm:$0xff] %vm940_vm1, %v7440_v5 }
 0x3ba   :  { %v4104_v60 = vsel %vm148_vm0, %v4022_v2, 0.0  ;;  %vm2252_vm7 = vcmp.eq.s32.totalorder %v5236_v51, %v1712_v56 }
 0x3bb   :  { %v4105_v11 = vadd.f32 %v4104_v60, %v4103_v40  ;;  %v4327_v47 = vsel %vm2252_vm7, 1.0, %v8215_v16 }
 0x3bc   :  { %4391 = vmatmul.msk.f32.gmra.mxu1 %vm940_vm1, %v4327_v47  ;;  %2909 = vst.msk [vmem:[%s8020_s4 + $0xe8] sm:$0xff] %vm940_vm1, %v4327_v47  ;;  %v3927_v61 = vsel %vm940_vm1, %v4327_v47, 0.0  ;;  %v4458_v47 = vld [vmem:[%s8016_s0 + $0xb0] sm:$0xff] }
 0x3bd   :  { %v3928_v43 = vadd.f32 %v3927_v61, %v3926_v24  ;;  %v2684_v7 = vpop.f32.mrf.mxu1 }
 0x3be   :  { %2836 = vst.msk [vmem:[%s8019_s3 + $0xa0] sm:$0xff] %vm148_vm0, %v2684_v7  ;;  %v3698_v27 = vsub.f32 %v2684_v7, %v4456_v18 }
 0x3bf   :  { %v7467_v53 = vpop.xlane.xlu1 %2153 }
 0x3c0   :  { %v4023_v35 = vmul.f32 %v3698_v27, %v3698_v27  ;;  %vm2155_vm8 = vcmp.eq.f32.partialorder %v7058_v50, %v7467_v53 }
 0x3c1   :  { %v2156_v24 = vsel %vm2155_vm8, %v2151_v55, inf }
 0x3c2   :  { %v4106_v31 = vsel %vm148_vm0, %v4023_v35, 0.0  ;;  %v1723_v40 = vpop.xlane.xlu2 %1722  ;;  %2157 = vmin.xlane.f32.xlu2 %v2156_v24  ;;  %v2085_v35 = vcvt.f32.s32 %v7176_v59 }
 0x3c3   :  { %v4107_v14 = vadd.f32 %v4106_v31, %v4105_v11  ;;  %v1724_v17 = vcvt.f32.s32 %v1723_v40 }
 0x3c5   :  { %v1727_v30 = vadd.s32 %v1726_v9, %v1724_v17  ;;  %v2687_v41 = vpop.f32.mrf.mxu1  ;;  %v2086_v9 = vshll.u32 %v2085_v35, 16 }
 0x3c6   :  { %2837 = vst.msk [vmem:[%s8019_s3 + $0xa8] sm:$0xff] %vm148_vm0, %v2687_v41  ;;  %v3699_v50 = vsub.f32 %v2687_v41, %v4457_v21  ;;  %v7479_v48 = vpop.f32.mrf.mxu3  ;;  %v4460_v21 = vld [vmem:[%s8016_s0 + $0xc0] sm:$0xff] }
 0x3c7   :  { %2863 = vst.msk [vmem:[%s8019_s3 + $0x178] sm:$0xff] %vm148_vm0, %v7479_v48  ;;  %vm2253_vm9 = vcmp.eq.s32.totalorder %v5236_v51, %v1727_v30 }
 0x3c8   :  { %v4024_v39 = vmul.f32 %v3699_v50, %v3699_v50  ;;  %v4328_v3 = vsel %vm2253_vm9, 1.0, %v8215_v16 }
 0x3c9   :  { %4392 = vmatmul.msk.f32.gmra.mxu1 %vm940_vm1, %v4328_v3  ;;  %2910 = vst.msk [vmem:[%s8020_s4 + $0xf0] sm:$0xff] %vm940_vm1, %v4328_v3  ;;  %v3929_v2 = vsel %vm940_vm1, %v4328_v3, 0.0  ;;  %v2164_v3 = vand.u32 65535, %v7201_v38 }
 0x3ca   :  { %v4108_v56 = vsel %vm148_vm0, %v4024_v39, 0.0  ;;  %v7495_v60 = vadd.f32 %v3929_v2, %v3928_v43  ;;  %v4459_v43 = vld [vmem:[%s8016_s0 + $0xb8] sm:$0xff] }
 0x3cb   :  { %v4109_v12 = vadd.f32 %v4108_v56, %v4107_v14  ;;  %v2100_v56 = vcvt.f32.s32 %v7204_v44  ;;  %v4461_v44 = vld [vmem:[%s8016_s0 + $0xc8] sm:$0xff] }
 0x3cd   :  { %v2690_v11 = vpop.f32.mrf.mxu1 }
 0x3ce   :  { %2838 = vst.msk [vmem:[%s8019_s3 + $0xb0] sm:$0xff] %vm148_vm0, %v2690_v11  ;;  %v3700_v61 = vsub.f32 %v2690_v11, %v4458_v47 }
 0x3d0   :  { %v4025_v7 = vmul.f32 %v3700_v61, %v3700_v61  ;;  %v2166_v61 = vcvt.s32.f32 %v2164_v3  ;;  %v1755_v3 = vcvt.f32.s32 %v7267_v45 }
 0x3d2   :  { %v4110_v18 = vsel %vm148_vm0, %v4025_v7, 0.0 }
 0x3d3   :  { %v4111_v27 = vadd.f32 %v4110_v18, %v4109_v12 }
 0x3d5   :  { %v2693_v6 = vpop.f32.mrf.mxu1 }
 0x3d6   :  { %2839 = vst.msk [vmem:[%s8019_s3 + $0xb8] sm:$0xff] %vm148_vm0, %v2693_v6  ;;  %v3701_v55 = vsub.f32 %v2693_v6, %v4459_v43 }
 0x3d8   :  { %v4026_v24 = vmul.f32 %v3701_v55, %v3701_v55 }
 0x3da   :  { %v4112_v31 = vsel %vm148_vm0, %v4026_v24, 0.0  ;;  %v2083_v40 = vpop.xlane.xlu0 %2082 }
 0x3db   :  { %v4113_v14 = vadd.f32 %v4112_v31, %v4111_v27  ;;  %v2084_v17 = vcvt.f32.s32 %v2083_v40  ;;  %v2101_v27 = vshll.u32 %v2100_v56, 16  ;;  %v2179_v31 = vand.u32 65535, %v7233_v8 }
 0x3dd   :  { %v2087_v30 = vadd.s32 %v2086_v9, %v2084_v17  ;;  %v2696_v41 = vpop.f32.mrf.mxu1  ;;  %v1740_v9 = vcvt.f32.s32 %v7245_v37  ;;  %v2181_v17 = vcvt.s32.f32 %v2179_v31 }
 0x3de   :  { %2840 = vst.msk [vmem:[%s8019_s3 + $0xc0] sm:$0xff] %vm148_vm0, %v2696_v41  ;;  %v3702_v50 = vsub.f32 %v2696_v41, %v4460_v21 }
 0x3df   :  { %vm2277_vm10 = vcmp.eq.s32.totalorder %v5236_v51, %v2087_v30  ;;  %v1741_v41 = vshll.u32 %v1740_v9, 16 }
 0x3e0   :  { %v4027_v59 = vmul.f32 %v3702_v50, %v3702_v50  ;;  %v7523_v39 = vsel %vm2277_vm10, 1.0, %v8215_v16 }
 0x3e1   :  { %4416 = vmatmul.msk.f32.gmra.mxu3 %vm940_vm1, %v7523_v39  ;;  %2934 = vst.msk [vmem:[%s8020_s4 + $0x1b0] sm:$0xff] %vm940_vm1, %v7523_v39 }
 0x3e2   :  { %v4114_v2 = vsel %vm148_vm0, %v4027_v59, 0.0 }
 0x3e3   :  { %v4115_v12 = vadd.f32 %v4114_v2, %v4113_v14  ;;  %v7535_v11 = vpop.f32.mrf.mxu3 }
 0x3e4   :  { %2864 = vst.msk [vmem:[%s8019_s3 + $0x180] sm:$0xff] %vm148_vm0, %v7535_v11 }
 0x3e5   :  { %v7542_v38 = vpop.xlane.xlu1 %2168  ;;  %v2699_v47 = vpop.f32.mrf.mxu1 }
 0x3e6   :  { %vm2170_vm11 = vcmp.eq.f32.partialorder %v7208_v0, %v7542_v38  ;;  %2841 = vst.msk [vmem:[%s8019_s3 + $0xc8] sm:$0xff] %vm148_vm0, %v2699_v47  ;;  %v3703_v7 = vsub.f32 %v2699_v47, %v4461_v44  ;;  %v2098_v18 = vpop.xlane.xlu0 %2097 }
 0x3e7   :  { %v2099_v6 = vcvt.f32.s32 %v2098_v18  ;;  %v2171_v43 = vsel %vm2170_vm11, %v2166_v61, inf  ;;  %v2115_v61 = vcvt.f32.s32 %v7283_v32  ;;  %v8314_v32 = vld [vmem:[#allocation41_spill] sm:$0xff] }
 0x3e8   :  { %v4028_v55 = vmul.f32 %v3703_v7, %v3703_v7  ;;  %2172 = vmin.xlane.f32.xlu0 %v2171_v43 }
 0x3e9   :  { %v2102_v35 = vadd.s32 %v2101_v27, %v2099_v6  ;;  %v2116_v18 = vshll.u32 %v2115_v61, 16 }
 0x3ea   :  { %v4116_v24 = vsel %vm148_vm0, %v4028_v55, 0.0  ;;  %v3935_v55 = vsel %vm940_vm1, %v8314_v32, 0.0  ;;  %v2130_v32 = vcvt.f32.s32 %v7350_v46 }
 0x3eb   :  { %v4117_v0 = vadd.f32 %v4116_v24, %v4115_v12  ;;  %vm2278_vm12 = vcmp.eq.s32.totalorder %v5236_v51, %v2102_v35  ;;  %v1756_v12 = vshll.u32 %v1755_v3, 16  ;;  %v8315_v24 = vld [vmem:[#allocation12_spill] sm:$0xff]  ;;  %v8317_v3 = vld [vmem:[#allocation25_spill] sm:$0xff] }
 0x3ec   :  { %v7557_v40 = vsel %vm2278_vm12, 1.0, %v8215_v16  ;;  %v3937_v31 = vsel %vm940_vm1, %v8315_v24, 0.0  ;;  %v2131_v46 = vshll.u32 %v2130_v32, 16  ;;  %v8325_v32 = vld [vmem:[#allocation31_spill] sm:$0xff]  ;;  %vm4207_vm12 = vcmask 65600  }
 0x3ed   :  { %4417 = vmatmul.msk.f32.gmra.mxu3 %vm940_vm1, %v7557_v40  ;;  %2935 = vst.msk [vmem:[%s8020_s4 + $0x1b8] sm:$0xff] %vm940_vm1, %v7557_v40 }
 0x3f0   :  { %v7567_v14 = vpop.xlane.xlu1 %2183 }
 0x3f1   :  { %vm2185_vm13 = vcmp.eq.f32.partialorder %v7238_v52, %v7567_v14 }
 0x3f2   :  { %v1738_v8 = vpop.xlane.xlu2 %1737  ;;  %v2186_v30 = vsel %vm2185_vm13, %v2181_v17, inf }
 0x3f3   :  { %v1739_v21 = vcvt.f32.s32 %v1738_v8  ;;  %2187 = vmin.xlane.f32.xlu1 %v2186_v30  ;;  %v4462_v30 = vld [vmem:[%s8016_s0 + $0xd0] sm:$0xff] }
 0x3f5   :  { %v1742_v50 = vadd.s32 %v1741_v41, %v1739_v21  ;;  %v8316_v21 = vld [vmem:[#allocation33_spill] sm:$0xff] }
 0x3f6   :  { %v7571_v59 = vpop.f32.mrf.mxu3 }
 0x3f7   :  { %2865 = vst.msk [vmem:[%s8019_s3 + $0x188] sm:$0xff] %vm148_vm0, %v7571_v59  ;;  %vm2254_vm14 = vcmp.eq.s32.totalorder %v5236_v51, %v1742_v50  ;;  %v3939_v50 = vsel %vm940_vm1, %v8316_v21, 0.0  ;;  %v2209_v21 = vand.u32 65535, %v7367_v42 }
 0x3f8   :  { %v4329_v37 = vsel %vm2254_vm14, 1.0, %v8215_v16 }
 0x3f9   :  { %4393 = vmatmul.msk.f32.gmra.mxu1 %vm940_vm1, %v4329_v37  ;;  %2911 = vst.msk [vmem:[%s8020_s4 + $0xf8] sm:$0xff] %vm940_vm1, %v4329_v37  ;;  %v3931_v52 = vsel %vm940_vm1, %v4329_v37, 0.0 }
 0x3fa   :  { %v3932_v2 = vadd.f32 %v3931_v52, %v7495_v60 }
 0x3fd   :  { %v1753_v56 = vpop.xlane.xlu2 %1752 }
 0x3fe   :  { %v1754_v47 = vcvt.f32.s32 %v1753_v56 }
 0x400   :  { %v1757_v44 = vadd.s32 %v1756_v12, %v1754_v47  ;;  %v8318_v47 = vld [vmem:[#allocation43_spill] sm:$0xff] }
 0x401   :  { %v3943_v61 = vsel %vm940_vm1, %v8318_v47, 0.0 }
 0x402   :  { %v2113_v7 = vpop.xlane.xlu0 %2112  ;;  %vm2255_vm15 = vcmp.eq.s32.totalorder %v5236_v51, %v1757_v44  ;;  %v2194_v44 = vand.u32 65535, %v7327_v4 }
 0x403   :  { %v2114_v27 = vcvt.f32.s32 %v2113_v7  ;;  %v4330_v6 = vsel %vm2255_vm15, 1.0, %v8215_v16 }
 0x404   :  { %4394 = vmatmul.msk.f32.gmra.mxu1 %vm940_vm1, %v4330_v6  ;;  %2912 = vst.msk [vmem:[%s8020_s4 + $0x100] sm:$0xff] %vm940_vm1, %v4330_v6  ;;  %v3933_v45 = vsel %vm940_vm1, %v4330_v6, 0.0 }
 0x405   :  { %v2117_v60 = vadd.s32 %v2116_v18, %v2114_v27  ;;  %v3934_v43 = vadd.f32 %v3933_v45, %v3932_v2  ;;  %v3941_v2 = vsel %vm940_vm1, %v8317_v3, 0.0  ;;  %v8319_v27 = vld [vmem:[#allocation18_spill] sm:$0xff] }
 0x406   :  { %v3945_v6 = vsel %vm940_vm1, %v8319_v27, 0.0 }
 0x407   :  { %v3936_v35 = vadd.f32 %v3935_v55, %v3934_v43  ;;  %vm2279_vm2 = vcmp.eq.s32.totalorder %v5236_v51, %v2117_v60  ;;  %v8320_v60 = vld [vmem:[#allocation42_spill] sm:$0xff] }
 0x408   :  { %v2702_v9 = vpop.f32.mrf.mxu1  ;;  %v7603_v17 = vsel %vm2279_vm2, 1.0, %v8215_v16  ;;  %v3947_v43 = vsel %vm940_vm1, %v8320_v60, 0.0 }
 0x409   :  { %v3938_v8 = vadd.f32 %v3937_v31, %v3936_v35  ;;  %2842 = vst.msk [vmem:[%s8019_s3 + $0xd0] sm:$0xff] %vm148_vm0, %v2702_v9  ;;  %v3704_v41 = vsub.f32 %v2702_v9, %v4462_v30  ;;  %4418 = vmatmul.msk.f32.gmra.mxu3 %vm940_vm1, %v7603_v17  ;;  %v2196_v35 = vcvt.s32.f32 %v2194_v44  ;;  %v8321_v31 = vld [vmem:[#allocation46_spill] sm:$0xff]  ;;  %v8322_v30 = vld [vmem:[#allocation49_spill] sm:$0xff]  ;;  %v2211_v44 = vcvt.s32.f32 %v2209_v21 }
 0x40a   :  { %2936 = vst.msk [vmem:[%s8020_s4 + $0x1c0] sm:$0xff] %vm940_vm1, %v7603_v17  ;;  %v3949_v4 = vsel %vm940_vm1, %v8321_v31, 0.0 }
 0x40b   :  { %v3940_v37 = vadd.f32 %v3939_v50, %v3938_v8  ;;  %v4029_v52 = vmul.f32 %v3704_v41, %v3704_v41  ;;  %v3951_v41 = vsel %vm940_vm1, %v8322_v30, 0.0 }
 0x40d   :  { %v3942_v56 = vadd.f32 %v3941_v2, %v3940_v37  ;;  %v4118_v12 = vsel %vm148_vm0, %v4029_v52, 0.0  ;;  %v8323_v52 = vld [vmem:[#allocation38_spill] sm:$0xff] }
 0x40e   :  { %v4119_v7 = vadd.f32 %v4118_v12, %v4117_v0  ;;  %v3953_v3 = vsel %vm940_vm1, %v8323_v52, 0.0  ;;  %v8324_v12 = vld [vmem:[#allocation20_spill] sm:$0xff]  ;;  %v3965_v52 = vsel %vm940_vm1, %v7155_v26, 0.0 }
 0x40f   :  { %v3944_v18 = vadd.f32 %v3943_v61, %v3942_v56  ;;  %v3955_v47 = vsel %vm940_vm1, %v8324_v12, 0.0  ;;  %v2145_v61 = vcvt.f32.s32 %v7389_v36  ;;  %v3957_v36 = vsel %vm940_vm1, %v6788_v19, 0.0 }
 0x411   :  { %v3946_v45 = vadd.f32 %v3945_v6, %v3944_v18 }
 0x412   :  { %v7632_v55 = vpop.xlane.xlu1 %2198 }
 0x413   :  { %v3948_v24 = vadd.f32 %v3947_v43, %v3946_v45  ;;  %vm2200_vm3 = vcmp.eq.f32.partialorder %v7332_v15, %v7632_v55  ;;  %v4463_v45 = vld [vmem:[%s8016_s0 + $0xd8] sm:$0xff] }
 0x414   :  { %v2201_v0 = vsel %vm2200_vm3, %v2196_v35, inf  ;;  %v3959_v35 = vsel %vm940_vm1, %v8325_v32, 0.0  ;;  %v3981_v32 = vsel %vm940_vm1, %v7603_v17, 0.0 }
 0x415   :  { %v3950_v9 = vadd.f32 %v3949_v4, %v3948_v24  ;;  %2202 = vmin.xlane.f32.xlu2 %v2201_v0  ;;  %v2128_v8 = vpop.xlane.xlu2 %2127  ;;  %v2146_v24 = vshll.u32 %v2145_v61, 16  ;;  %v3973_v61 = vsel %vm940_vm1, %v7413_v28, 0.0 }
 0x416   :  { %v2129_v50 = vcvt.f32.s32 %v2128_v8 }
 0x417   :  { %v3952_v37 = vadd.f32 %v3951_v41, %v3950_v9  ;;  %v3961_v9 = vsel %vm940_vm1, %v6958_v25, 0.0 }
 0x418   :  { %v2132_v2 = vadd.s32 %v2131_v46, %v2129_v50  ;;  %v3963_v46 = vsel %vm940_vm1, %v7003_v49, 0.0  ;;  %v3967_v49 = vsel %vm940_vm1, %v7213_v20, 0.0  ;;  %v4464_v20 = vld [vmem:[%s8016_s0 + $0xe0] sm:$0xff] }
 0x419   :  { %v3954_v15 = vadd.f32 %v3953_v3, %v3952_v37  ;;  %v7643_v56 = vpop.f32.mrf.mxu3  ;;  %v3969_v3 = vsel %vm940_vm1, %v7305_v34, 0.0 }
 0x41a   :  { %2866 = vst.msk [vmem:[%s8019_s3 + $0x190] sm:$0xff] %vm148_vm0, %v7643_v56  ;;  %v7653_v42 = vpop.xlane.xlu0 %2213  ;;  %vm2280_vm4 = vcmp.eq.s32.totalorder %v5236_v51, %v2132_v2 }
 0x41b   :  { %v3956_v18 = vadd.f32 %v3955_v47, %v3954_v15  ;;  %vm2215_vm5 = vcmp.eq.f32.partialorder %v7379_v58, %v7653_v42  ;;  %v2705_v27 = vpop.f32.mrf.mxu1  ;;  %v4355_v6 = vsel %vm2280_vm4, 1.0, %v8215_v16  ;;  %v3971_v15 = vsel %vm940_vm1, %v7363_v13, 0.0 }
 0x41c   :  { %2843 = vst.msk [vmem:[%s8019_s3 + $0xd8] sm:$0xff] %vm148_vm0, %v2705_v27  ;;  %v3705_v60 = vsub.f32 %v2705_v27, %v4463_v45  ;;  %4419 = vmatmul.msk.f32.gmra.mxu3 %vm940_vm1, %v4355_v6  ;;  %v2216_v43 = vsel %vm2215_vm5, %v2211_v44, inf }
 0x41d   :  { %v3958_v58 = vadd.f32 %v3957_v36, %v3956_v18  ;;  %2937 = vst.msk [vmem:[%s8020_s4 + $0x1c8] sm:$0xff] %vm940_vm1, %v4355_v6  ;;  %v2143_v19 = vpop.xlane.xlu1 %2142  ;;  %2217 = vmin.xlane.f32.xlu0 %v2216_v43  ;;  %v3975_v18 = vsel %vm940_vm1, %v7440_v5, 0.0  ;;  %v3977_v36 = vsel %vm940_vm1, %v7523_v39, 0.0  ;;  %v2160_v43 = vcvt.f32.s32 %v7467_v53 }
 0x41e   :  { %v4030_v31 = vmul.f32 %v3705_v60, %v3705_v60  ;;  %v2144_v4 = vcvt.f32.s32 %v2143_v19  ;;  %v3983_v53 = vsel %vm940_vm1, %v4355_v6, 0.0 }
 0x41f   :  { %v3960_v0 = vadd.f32 %v3959_v35, %v3958_v58  ;;  %v3979_v58 = vsel %vm940_vm1, %v7557_v40, 0.0 }
 0x420   :  { %v4120_v8 = vsel %vm148_vm0, %v4030_v31, 0.0  ;;  %v2147_v30 = vadd.s32 %v2146_v24, %v2144_v4  ;;  %v2161_v24 = vshll.u32 %v2160_v43, 16 }
 0x421   :  { %v3962_v41 = vadd.f32 %v3961_v9, %v3960_v0  ;;  %v4121_v21 = vadd.f32 %v4120_v8, %v4119_v7  ;;  %v4465_v8 = vld [vmem:[%s8016_s0 + $0xe8] sm:$0xff] }
 0x422   :  { %vm2281_vm6 = vcmp.eq.s32.totalorder %v5236_v51, %v2147_v30 }
 0x423   :  { %v3964_v50 = vadd.f32 %v3963_v46, %v3962_v41  ;;  %v4356_v37 = vsel %vm2281_vm6, 1.0, %v8215_v16 }
 0x424   :  { %4420 = vmatmul.msk.f32.gmra.mxu3 %vm940_vm1, %v4356_v37  ;;  %2938 = vst.msk [vmem:[%s8020_s4 + $0x1d0] sm:$0xff] %vm940_vm1, %v4356_v37  ;;  %v7689_v7 = vpop.f32.mrf.mxu3  ;;  %v3985_v40 = vsel %vm940_vm1, %v4356_v37, 0.0 }
 0x425   :  { %v3966_v25 = vadd.f32 %v3965_v52, %v3964_v50  ;;  %2867 = vst.msk [vmem:[%s8019_s3 + $0x198] sm:$0xff] %vm148_vm0, %v7689_v7 }
 0x427   :  { %v3968_v26 = vadd.f32 %v3967_v49, %v3966_v25  ;;  %v4466_v49 = vld [vmem:[%s8016_s0 + $0xf0] sm:$0xff] }
 0x429   :  { %v3970_v2 = vadd.f32 %v3969_v3, %v3968_v26 }
 0x42b   :  { %v3972_v12 = vadd.f32 %v3971_v15, %v3970_v2  ;;  %v2708_v47 = vpop.f32.mrf.mxu1 }
 0x42c   :  { %2844 = vst.msk [vmem:[%s8019_s3 + $0xe0] sm:$0xff] %vm148_vm0, %v2708_v47  ;;  %v3706_v44 = vsub.f32 %v2708_v47, %v4464_v20 }
 0x42d   :  { %v3974_v34 = vadd.f32 %v3973_v61, %v3972_v12  ;;  %v2175_v12 = vcvt.f32.s32 %v7542_v38 }
 0x42e   :  { %v4031_v13 = vmul.f32 %v3706_v44, %v3706_v44 }
 0x42f   :  { %v3976_v27 = vadd.f32 %v3975_v18, %v3974_v34  ;;  %v2176_v61 = vshll.u32 %v2175_v12, 16 }
 0x430   :  { %v4122_v28 = vsel %vm148_vm0, %v4031_v13, 0.0  ;;  %v2190_v13 = vcvt.f32.s32 %v7567_v14 }
 0x431   :  { %v3978_v45 = vadd.f32 %v3977_v36, %v3976_v27  ;;  %v4123_v60 = vadd.f32 %v4122_v28, %v4121_v21 }
 0x432   :  { %v2191_v28 = vshll.u32 %v2190_v13, 16 }
 0x433   :  { %v3980_v19 = vadd.f32 %v3979_v58, %v3978_v45 }
 0x434   :  { %v7721_v35 = vpop.f32.mrf.mxu3 }
 0x435   :  { %v3982_v5 = vadd.f32 %v3981_v32, %v3980_v19  ;;  %2868 = vst.msk [vmem:[%s8019_s3 + $0x1a0] sm:$0xff] %vm148_vm0, %v7721_v35  ;;  %v2158_v39 = vpop.xlane.xlu2 %2157 }
 0x436   :  { %v2159_v31 = vcvt.f32.s32 %v2158_v39 }
 0x437   :  { %v3984_v4 = vadd.f32 %v3983_v53, %v3982_v5  ;;  %v4467_v5 = vld [vmem:[%s8016_s0 + $0xf8] sm:$0xff] }
 0x438   :  { %v2162_v0 = vadd.s32 %v2161_v24, %v2159_v31 }
 0x439   :  { %v3986_v9 = vadd.f32 %v3985_v40, %v3984_v4  ;;  %v2711_v17 = vpop.f32.mrf.mxu1  ;;  %v4468_v4 = vld [vmem:[%s8016_s0 + $0x108] sm:$0xff]  ;;  %v8326_v40 = vld [vmem:[#allocation8_spill] sm:$0xff] }
 0x43a   :  { %2845 = vst.msk [vmem:[%s8019_s3 + $0xe8] sm:$0xff] %vm148_vm0, %v2711_v17  ;;  %v3707_v30 = vsub.f32 %v2711_v17, %v4465_v8  ;;  %vm2282_vm7 = vcmp.eq.s32.totalorder %v5236_v51, %v2162_v0  ;;  %v3711_v0 = vsub.f32 %v8326_v40, %v4468_v4  ;;  %v4469_v17 = vld [vmem:[%s8016_s0 + $0x110] sm:$0xff]  ;;  %v4476_v4 = vld [vmem:[%s8016_s0 + $0x140] sm:$0xff] }
 0x43b   :  { %v4357_v6 = vsel %vm2282_vm7, 1.0, %v8215_v16  ;;  %v8327_v8 = vld [vmem:[#allocation10_spill] sm:$0xff]  ;;  %v3718_v40 = vsub.f32 %v7107_v22, %v4476_v4 }
 0x43c   :  { %v4032_v41 = vmul.f32 %v3707_v30, %v3707_v30  ;;  %v7739_v21 = vpop.f32.mrf.mxu3  ;;  %4421 = vmatmul.msk.f32.gmra.mxu3 %vm940_vm1, %v4357_v6  ;;  %2939 = vst.msk [vmem:[%s8020_s4 + $0x1d8] sm:$0xff] %vm940_vm1, %v4357_v6  ;;  %v3987_v46 = vsel %vm940_vm1, %v4357_v6, 0.0  ;;  %v3712_v30 = vsub.f32 %v8327_v8, %v4469_v17  ;;  %v4470_v6 = vld [vmem:[%s8016_s0 + $0x100] sm:$0xff] }
 0x43d   :  { %2869 = vst.msk [vmem:[%s8019_s3 + $0x1a8] sm:$0xff] %vm148_vm0, %v7739_v21  ;;  %v3988_v50 = vadd.f32 %v3987_v46, %v3986_v9  ;;  %v4036_v46 = vmul.f32 %v3711_v0, %v3711_v0 }
 0x43e   :  { %v4124_v37 = vsel %vm148_vm0, %v4032_v41, 0.0 }
 0x43f   :  { %v4125_v52 = vadd.f32 %v4124_v37, %v4123_v60  ;;  %v8328_v37 = vld [vmem:[#allocation16_spill] sm:$0xff] }
 0x446   :  { %v2714_v25 = vpop.f32.mrf.mxu1 }
 0x447   :  { %2846 = vst.msk [vmem:[%s8019_s3 + $0xf0] sm:$0xff] %vm148_vm0, %v2714_v25  ;;  %v3708_v26 = vsub.f32 %v2714_v25, %v4466_v49  ;;  %v2205_v49 = vcvt.f32.s32 %v7632_v55 }
 0x449   :  { %v4033_v3 = vmul.f32 %v3708_v26, %v3708_v26  ;;  %v4037_v26 = vmul.f32 %v3712_v30, %v3712_v30  ;;  %v4477_v30 = vld [vmem:[%s8016_s0 + $0x148] sm:$0xff] }
 0x44a   :  { %v3719_v22 = vsub.f32 %v7192_v1, %v4477_v30 }
 0x44b   :  { %v4126_v2 = vsel %vm148_vm0, %v4033_v3, 0.0  ;;  %v4472_v3 = vld [vmem:[%s8016_s0 + $0x120] sm:$0xff] }
 0x44c   :  { %v4127_v15 = vadd.f32 %v4126_v2, %v4125_v52  ;;  %v3714_v2 = vsub.f32 %v6936_v63, %v4472_v3  ;;  %v4474_v63 = vld [vmem:[%s8016_s0 + $0x130] sm:$0xff]  ;;  %v4044_v1 = vmul.f32 %v3719_v22, %v3719_v22 }
 0x45b   :  { %v2173_v47 = vpop.xlane.xlu0 %2172 }
 0x45c   :  { %v2174_v20 = vcvt.f32.s32 %v2173_v47  ;;  %v4132_v47 = vsel %vm148_vm0, %v4036_v46, 0.0 }
 0x45e   :  { %v2177_v44 = vadd.s32 %v2176_v61, %v2174_v20  ;;  %v4473_v20 = vld [vmem:[%s8016_s0 + $0x128] sm:$0xff] }
 0x460   :  { %vm2283_vm8 = vcmp.eq.s32.totalorder %v5236_v51, %v2177_v44  ;;  %v3715_v44 = vsub.f32 %v6978_v33, %v4473_v20  ;;  %v4475_v33 = vld [vmem:[%s8016_s0 + $0x138] sm:$0xff] }
 0x461   :  { %v4358_v34 = vsel %vm2283_vm8, 1.0, %v8215_v16 }
 0x462   :  { %4422 = vmatmul.msk.f32.gmra.mxu3 %vm940_vm1, %v4358_v34  ;;  %2940 = vst.msk [vmem:[%s8020_s4 + $0x1e0] sm:$0xff] %vm940_vm1, %v4358_v34  ;;  %v3989_v18 = vsel %vm940_vm1, %v4358_v34, 0.0  ;;  %v2206_v34 = vshll.u32 %v2205_v49, 16  ;;  %v4478_v49 = vld [vmem:[%s8016_s0 + $0x150] sm:$0xff] }
 0x463   :  { %v3990_v38 = vadd.f32 %v3989_v18, %v3988_v50  ;;  %v4471_v50 = vld [vmem:[%s8016_s0 + $0x118] sm:$0xff] }
 0x464   :  { %v7771_v27 = vpop.f32.mrf.mxu3  ;;  %v3713_v52 = vsub.f32 %v8328_v37, %v4471_v50 }
 0x465   :  { %2870 = vst.msk [vmem:[%s8019_s3 + $0x1b0] sm:$0xff] %vm148_vm0, %v7771_v27 }
 0x466   :  { %v2188_v36 = vpop.xlane.xlu1 %2187  ;;  %v4038_v61 = vmul.f32 %v3713_v52, %v3713_v52 }
 0x467   :  { %v2189_v45 = vcvt.f32.s32 %v2188_v36  ;;  %v4039_v36 = vmul.f32 %v3714_v2, %v3714_v2 }
 0x469   :  { %v2192_v60 = vadd.s32 %v2191_v28, %v2189_v45  ;;  %v3716_v28 = vsub.f32 %v7005_v23, %v4474_v63  ;;  %v4138_v23 = vsel %vm148_vm0, %v4039_v36, 0.0 }
 0x46b   :  { %vm2284_vm9 = vcmp.eq.s32.totalorder %v5236_v51, %v2192_v60 }
 0x46c   :  { %v4359_v43 = vsel %vm2284_vm9, 1.0, %v8215_v16 }
 0x46d   :  { %4423 = vmatmul.msk.f32.gmra.mxu3 %vm940_vm1, %v4359_v43  ;;  %2941 = vst.msk [vmem:[%s8020_s4 + $0x1e8] sm:$0xff] %vm940_vm1, %v4359_v43  ;;  %v3991_v14 = vsel %vm940_vm1, %v4359_v43, 0.0  ;;  %v4136_v43 = vsel %vm148_vm0, %v4038_v61, 0.0 }
 0x46e   :  { %v7786_v58 = vadd.f32 %v3991_v14, %v3990_v38  ;;  %v4134_v38 = vsel %vm148_vm0, %v4037_v26, 0.0  ;;  %v4040_v14 = vmul.f32 %v3715_v44, %v3715_v44  ;;  %v3720_v26 = vsub.f32 %v7215_v57, %v4478_v49  ;;  %v4480_v57 = vld [vmem:[%s8016_s0 + $0x160] sm:$0xff] }
 0x46f   :  { %v3722_v44 = vsub.f32 %v7295_v10, %v4480_v57 }
 0x470   :  { %v7788_v19 = vpop.f32.mrf.mxu3  ;;  %v4140_v17 = vsel %vm148_vm0, %v4040_v14, 0.0  ;;  %v4045_v20 = vmul.f32 %v3720_v26, %v3720_v26 }
 0x471   :  { %2871 = vst.msk [vmem:[%s8019_s3 + $0x1b8] sm:$0xff] %vm148_vm0, %v7788_v19  ;;  %v4047_v63 = vmul.f32 %v3722_v44, %v3722_v44  ;;  %v4490_v44 = vld [vmem:[%s8016_s0 + $0x1b0] sm:$0xff] }
 0x472   :  { %v4150_v36 = vsel %vm148_vm0, %v4045_v20, 0.0 }
 0x476   :  { %v2717_v32 = vpop.f32.mrf.mxu1 }
 0x477   :  { %2847 = vst.msk [vmem:[%s8019_s3 + $0xf8] sm:$0xff] %vm148_vm0, %v2717_v32  ;;  %v3709_v39 = vsub.f32 %v2717_v32, %v4467_v5  ;;  %v8329_v32 = vld [vmem:[#allocation44_spill] sm:$0xff] }
 0x478   :  { %v3717_v5 = vsub.f32 %v8329_v32, %v4475_v33 }
 0x479   :  { %v4034_v24 = vmul.f32 %v3709_v39, %v3709_v39 }
 0x47a   :  { %v4042_v8 = vmul.f32 %v3717_v5, %v3717_v5 }
 0x47b   :  { %v4128_v53 = vsel %vm148_vm0, %v4034_v24, 0.0  ;;  %v2220_v24 = vcvt.f32.s32 %v7653_v42 }
 0x47c   :  { %v4129_v31 = vadd.f32 %v4128_v53, %v4127_v15 }
 0x47d   :  { %v2221_v46 = vshll.u32 %v2220_v24, 16 }
 0x481   :  { %v2720_v9 = vpop.f32.mrf.mxu1 }
 0x482   :  { %2848 = vst.msk [vmem:[%s8019_s3 + $0x100] sm:$0xff] %vm148_vm0, %v2720_v9  ;;  %v3710_v41 = vsub.f32 %v2720_v9, %v4470_v6 }
 0x484   :  { %v4035_v25 = vmul.f32 %v3710_v41, %v3710_v41 }
 0x486   :  { %v4130_v15 = vsel %vm148_vm0, %v4035_v25, 0.0  ;;  %v4043_v25 = vmul.f32 %v3718_v40, %v3718_v40 }
 0x487   :  { %v4131_v12 = vadd.f32 %v4130_v15, %v4129_v31  ;;  %v4041_v31 = vmul.f32 %v3716_v28, %v3716_v28  ;;  %v4144_v15 = vsel %vm148_vm0, %v4042_v8, 0.0  ;;  %v4482_v28 = vld [vmem:[%s8016_s0 + $0x170] sm:$0xff] }
 0x488   :  { %v2203_v55 = vpop.xlane.xlu2 %2202  ;;  %v4146_v61 = vsel %vm148_vm0, %v4043_v25, 0.0 }
 0x489   :  { %v4133_v18 = vadd.f32 %v4132_v47, %v4131_v12  ;;  %v2204_v13 = vcvt.f32.s32 %v2203_v55  ;;  %v4142_v52 = vsel %vm148_vm0, %v4041_v31, 0.0 }
 0x48b   :  { %v4135_v45 = vadd.f32 %v4134_v38, %v4133_v18  ;;  %v2207_v60 = vadd.s32 %v2206_v34, %v2204_v13  ;;  %v4481_v13 = vld [vmem:[%s8016_s0 + $0x168] sm:$0xff] }
 0x48c   :  { %v7843_v39 = vpop.f32.mrf.mxu3  ;;  %v3723_v10 = vsub.f32 %v7343_v62, %v4481_v13  ;;  %v4483_v62 = vld [vmem:[%s8016_s0 + $0x178] sm:$0xff] }
 0x48d   :  { %v4137_v53 = vadd.f32 %v4136_v43, %v4135_v45  ;;  %vm2285_vm10 = vcmp.eq.s32.totalorder %v5236_v51, %v2207_v60  ;;  %2872 = vst.msk [vmem:[%s8019_s3 + $0x1c0] sm:$0xff] %vm148_vm0, %v7843_v39  ;;  %v3724_v45 = vsub.f32 %v7431_v29, %v4482_v28  ;;  %v3725_v32 = vsub.f32 %v7479_v48, %v4483_v62  ;;  %v4484_v29 = vld [vmem:[%s8016_s0 + $0x180] sm:$0xff]  ;;  %v4485_v48 = vld [vmem:[%s8016_s0 + $0x188] sm:$0xff] }
 0x48e   :  { %v4360_v42 = vsel %vm2285_vm10, 1.0, %v8215_v16  ;;  %v4048_v33 = vmul.f32 %v3723_v10, %v3723_v10  ;;  %v3726_v31 = vsub.f32 %v7535_v11, %v4484_v29 }
 0x48f   :  { %v4139_v0 = vadd.f32 %v4138_v23, %v4137_v53  ;;  %4424 = vmatmul.msk.f32.gmra.mxu3 %vm940_vm1, %v4360_v42  ;;  %2942 = vst.msk [vmem:[%s8020_s4 + $0x1f0] sm:$0xff] %vm940_vm1, %v4360_v42  ;;  %v3993_v9 = vsel %vm940_vm1, %v4360_v42, 0.0  ;;  %v4154_v53 = vsel %vm148_vm0, %v4047_v63, 0.0  ;;  %v4049_v23 = vmul.f32 %v3724_v45, %v3724_v45  ;;  %v4493_v45 = vld [vmem:[%s8016_s0 + $0x1c8] sm:$0xff] }
 0x490   :  { %v3994_v6 = vadd.f32 %v3993_v9, %v7786_v58  ;;  %v2218_v41 = vpop.xlane.xlu0 %2217  ;;  %v4479_v58 = vld [vmem:[%s8016_s0 + $0x158] sm:$0xff]  ;;  %v4050_v9 = vmul.f32 %v3725_v32, %v3725_v32  ;;  %v4051_v22 = vmul.f32 %v3726_v31, %v3726_v31 }
 0x491   :  { %v4141_v50 = vadd.f32 %v4140_v17, %v4139_v0  ;;  %v2219_v37 = vcvt.f32.s32 %v2218_v41  ;;  %v3721_v12 = vsub.f32 %v7236_v54, %v4479_v58  ;;  %v4148_v54 = vsel %vm148_vm0, %v4044_v1, 0.0 }
 0x492   :  { %v4156_v0 = vsel %vm148_vm0, %v4048_v33, 0.0  ;;  %v3727_v17 = vsub.f32 %v7571_v59, %v4485_v48  ;;  %v4158_v11 = vsel %vm148_vm0, %v4049_v23, 0.0  ;;  %v4160_v59 = vsel %vm148_vm0, %v4050_v9, 0.0  ;;  %v4494_v33 = vld [vmem:[%s8016_s0 + $0x1d0] sm:$0xff]  ;;  %v4495_v9 = vld [vmem:[%s8016_s0 + $0x1d8] sm:$0xff] }
 0x493   :  { %v4143_v3 = vadd.f32 %v4142_v52, %v4141_v50  ;;  %v2222_v2 = vadd.s32 %v2221_v46, %v2219_v37  ;;  %v4046_v18 = vmul.f32 %v3721_v12, %v3721_v12  ;;  %v4487_v52 = vld [vmem:[%s8016_s0 + $0x198] sm:$0xff] }
 0x494   :  { %v4052_v37 = vmul.f32 %v3727_v17, %v3727_v17  ;;  %v3729_v25 = vsub.f32 %v7689_v7, %v4487_v52  ;;  %v4489_v7 = vld [vmem:[%s8016_s0 + $0x1a8] sm:$0xff]  ;;  %v4498_v52 = vld [vmem:[%s8016_s0 + $0x1f0] sm:$0xff] }
 0x495   :  { %v4145_v47 = vadd.f32 %v4144_v15, %v4143_v3  ;;  %vm2286_vm11 = vcmp.eq.s32.totalorder %v5236_v51, %v2222_v2  ;;  %v4152_v14 = vsel %vm148_vm0, %v4046_v18, 0.0  ;;  %v4162_v3 = vsel %vm148_vm0, %v4051_v22, 0.0 }
 0x496   :  { %v4361_v55 = vsel %vm2286_vm11, 1.0, %v8215_v16  ;;  %v4164_v12 = vsel %vm148_vm0, %v4052_v37, 0.0 }
 0x497   :  { %v4147_v34 = vadd.f32 %v4146_v61, %v4145_v47  ;;  %4425 = vmatmul.msk.f32.gmra.mxu3 %vm940_vm1, %v4361_v55  ;;  %2943 = vst.msk [vmem:[%s8020_s4 + $0x1f8] sm:$0xff] %vm940_vm1, %v4361_v55  ;;  %v3995_v51 = vsel %vm940_vm1, %v4361_v55, 0.0  ;;  %vm4204_vm1 = vcmask 57344   ;;  %v4054_v47 = vmul.f32 %v3729_v25, %v3729_v25 }
 0x498   :  { %v3996_v16 = vadd.f32 %v3995_v51, %v3994_v6  ;;  %v4486_v6 = vld [vmem:[%s8016_s0 + $0x190] sm:$0xff]  ;;  %v3731_v61 = vsub.f32 %v7739_v21, %v4489_v7  ;;  %v3732_v55 = vsub.f32 %v7771_v27, %v4490_v44  ;;  %v4491_v21 = vld [vmem:[%s8016_s0 + $0x1b8] sm:$0xff] }
 0x499   :  { %v4149_v38 = vadd.f32 %v4148_v54, %v4147_v34  ;;  %v3728_v41 = vsub.f32 %v7643_v56, %v4486_v6  ;;  %v4488_v56 = vld [vmem:[%s8016_s0 + $0x1a0] sm:$0xff]  ;;  %v4168_v51 = vsel %vm148_vm0, %v4054_v47, 0.0  ;;  %v3733_v18 = vsub.f32 %v7788_v19, %v4491_v21 }
 0x49a   :  { %v3997_v60 = vrot.slane %v3996_v16, 4  ;;  %v3730_v15 = vsub.f32 %v7721_v35, %v4488_v56  ;;  %v4056_v54 = vmul.f32 %v3731_v61, %v3731_v61  ;;  %v4496_v6 = vld [vmem:[%s8016_s0 + $0x1e0] sm:$0xff] }
 0x49b   :  { %v4151_v43 = vadd.f32 %v4150_v36, %v4149_v38  ;;  %v4053_v2 = vmul.f32 %v3728_v41, %v3728_v41  ;;  %v4492_v38 = vld [vmem:[%s8016_s0 + $0x1c0] sm:$0xff]  ;;  %v4058_v28 = vmul.f32 %v3733_v18, %v3733_v18 }
 0x49c   :  { %v3998_v5 = vadd.f32 %v3997_v60, %v3996_v16  ;;  %v4055_v57 = vmul.f32 %v3730_v15, %v3730_v15  ;;  %v4057_v16 = vmul.f32 %v3732_v55, %v3732_v55  ;;  %v3734_v27 = vsub.f32 %v7843_v39, %v4492_v38 }
 0x49d   :  { %v4153_v24 = vadd.f32 %v4152_v14, %v4151_v43  ;;  %v4166_v35 = vsel %vm148_vm0, %v4053_v2, 0.0  ;;  %v4172_v63 = vsel %vm148_vm0, %v4056_v54, 0.0  ;;  %v4176_v39 = vsel %vm148_vm0, %v4058_v28, 0.0 }
 0x49e   :  { %v3999_v4 = vrot.slane %v3998_v5, 2  ;;  %v4170_v10 = vsel %vm148_vm0, %v4055_v57, 0.0  ;;  %v4174_v43 = vsel %vm148_vm0, %v4057_v16, 0.0  ;;  %v4059_v14 = vmul.f32 %v3734_v27, %v3734_v27 }
 0x49f   :  { %v4155_v40 = vadd.f32 %v4154_v53, %v4153_v24  ;;  %v2795_v42 = vpop.f32.mrf.mxu3 }
 0x4a0   :  { %2873 = vst.msk [vmem:[%s8019_s3 + $0x1c8] sm:$0xff] %vm148_vm0, %v2795_v42  ;;  %v4000_v8 = vadd.f32 %v3999_v4, %v3998_v5  ;;  %v3735_v60 = vsub.f32 %v2795_v42, %v4493_v45  ;;  %v4178_v53 = vsel %vm148_vm0, %v4059_v14, 0.0 }
 0x4a1   :  { %v4157_v30 = vadd.f32 %v4156_v0, %v4155_v40 }
 0x4a2   :  { %v4001_v46 = vrot.slane %v4000_v8, 1  ;;  %v4060_v5 = vmul.f32 %v3735_v60, %v3735_v60 }
 0x4a3   :  { %v4159_v50 = vadd.f32 %v4158_v11, %v4157_v30 }
 0x4a4   :  { %v4002_v49 = vadd.f32 %v4001_v46, %v4000_v8  ;;  %v4180_v31 = vsel %vm148_vm0, %v4060_v5, 0.0  ;;  %v4497_v46 = vld [vmem:[%s8016_s0 + $0x1e8] sm:$0xff] }
 0x4a5   :  { %v4161_v26 = vadd.f32 %v4160_v59, %v4159_v50 }
 0x4a6   :  { %4205 = vst.msk [vmem:[#allocation2] sm:$0x1] %vm4204_vm1, %v4002_v49 }
 0x4a7   :  { %v4163_v1 = vadd.f32 %v4162_v3, %v4161_v26  ;;  %v2798_v58 = vpop.f32.mrf.mxu3 }
 0x4a8   :  { %2874 = vst.msk [vmem:[%s8019_s3 + $0x1d0] sm:$0xff] %vm148_vm0, %v2798_v58  ;;  %v3736_v62 = vsub.f32 %v2798_v58, %v4494_v33  ;;  %v4499_v58 = vld [vmem:[%s8016_s0 + $0x1f8] sm:$0xff] }
 0x4a9   :  { %v4165_v20 = vadd.f32 %v4164_v12, %v4163_v1 }
 0x4aa   :  { %v4061_v23 = vmul.f32 %v3736_v62, %v3736_v62 }
 0x4ab   :  { %v4167_v34 = vadd.f32 %v4166_v35, %v4165_v20 }
 0x4ac   :  { %v4182_v40 = vsel %vm148_vm0, %v4061_v23, 0.0 }
 0x4ad   :  { %v4169_v13 = vadd.f32 %v4168_v51, %v4167_v34 }
 0x4af   :  { %v4171_v36 = vadd.f32 %v4170_v10, %v4169_v13 }
 0x4b1   :  { %v4173_v19 = vadd.f32 %v4172_v63, %v4171_v36 }
 0x4b3   :  { %v4175_v32 = vadd.f32 %v4174_v43, %v4173_v19 }
 0x4b5   :  { %v4177_v24 = vadd.f32 %v4176_v39, %v4175_v32 }
 0x4b7   :  { %v4179_v29 = vadd.f32 %v4178_v53, %v4177_v24 }
 0x4b9   :  { %v4181_v4 = vadd.f32 %v4180_v31, %v4179_v29 }
 0x4bb   :  { %v4183_v42 = vadd.f32 %v4182_v40, %v4181_v4 }
 0x4bf   :  { %v2801_v0 = vpop.f32.mrf.mxu3 }
 0x4c0   :  { %2875 = vst.msk [vmem:[%s8019_s3 + $0x1d8] sm:$0xff] %vm148_vm0, %v2801_v0  ;;  %v3737_v48 = vsub.f32 %v2801_v0, %v4495_v9 }
 0x4c2   :  { %v4062_v17 = vmul.f32 %v3737_v48, %v3737_v48 }
 0x4c4   :  { %v4184_v8 = vsel %vm148_vm0, %v4062_v17, 0.0 }
 0x4c5   :  { %v4185_v30 = vadd.f32 %v4184_v8, %v4183_v42 }
 0x4e5   :  { %v2804_v11 = vpop.f32.mrf.mxu3 }
 0x4e6   :  { %2876 = vst.msk [vmem:[%s8019_s3 + $0x1e0] sm:$0xff] %vm148_vm0, %v2804_v11  ;;  %v3738_v41 = vsub.f32 %v2804_v11, %v4496_v6 }
 0x4e8   :  { %v4063_v37 = vmul.f32 %v3738_v41, %v3738_v41 }
 0x4ea   :  { %v4186_v26 = vsel %vm148_vm0, %v4063_v37, 0.0 }
 0x4eb   :  { %v4187_v56 = vadd.f32 %v4186_v26, %v4185_v30 }
 0x4f0   :  { %v2807_v22 = vpop.f32.mrf.mxu3 }
 0x4f1   :  { %2877 = vst.msk [vmem:[%s8019_s3 + $0x1e8] sm:$0xff] %vm148_vm0, %v2807_v22  ;;  %v3739_v50 = vsub.f32 %v2807_v22, %v4497_v46 }
 0x4f3   :  { %v4064_v49 = vmul.f32 %v3739_v50, %v3739_v50 }
 0x4f5   :  { %v4188_v2 = vsel %vm148_vm0, %v4064_v49, 0.0 }
 0x4f6   :  { %v4189_v47 = vadd.f32 %v4188_v2, %v4187_v56 }
 0x512   :  { %v2810_v59 = vpop.f32.mrf.mxu3 }
 0x513   :  { %2878 = vst.msk [vmem:[%s8019_s3 + $0x1f0] sm:$0xff] %vm148_vm0, %v2810_v59  ;;  %v3740_v25 = vsub.f32 %v2810_v59, %v4498_v52 }
 0x515   :  { %v4065_v3 = vmul.f32 %v3740_v25, %v3740_v25 }
 0x517   :  { %v4190_v1 = vsel %vm148_vm0, %v4065_v3, 0.0 }
 0x518   :  { %v4191_v61 = vadd.f32 %v4190_v1, %v4189_v47 }
 0x51a   :  { %v2813_v15 = vpop.f32.mrf.mxu3 }
 0x51b   :  { %2879 = vst.msk [vmem:[%s8019_s3 + $0x1f8] sm:$0xff] %vm148_vm0, %v2813_v15  ;;  %v3741_v12 = vsub.f32 %v2813_v15, %v4499_v58  ;;  %s4527_s3 = smov [#allocation2]  }
 0x51c   :  { %s4218_s6 = sshll.u32 %s4527_s3, 4  ;;  %s4219_s6 = int_to_ptr.vmem [resolvable:$true] %s4218_s6 }
 0x51d   :  { %v4066_v7 = vmul.f32 %v3741_v12, %v3741_v12 }
 0x51f   :  { %v4192_v20 = vsel %vm148_vm0, %v4066_v7, 0.0 }
 0x520   :  { %v4193_v35 = vadd.f32 %v4192_v20, %v4191_v61 }
 0x522   :  { %4194 = vadd.xlane.f32.xlu1 %v4193_v35 }
 0x595   :  { %v4195_v57 = vpop.xlane.xlu1 %4194 }
 0x596   :  { %v4196_v44 = vrot.slane %v4195_v57, 4 }
 0x598   :  { %v4197_v55 = vadd.f32 %v4196_v44, %v4195_v57 }
 0x59a   :  { %v4198_v34 = vrot.slane %v4197_v55, 2 }
 0x59c   :  { %v4199_v51 = vadd.f32 %v4198_v34, %v4197_v55 }
 0x59e   :  { %v4200_v54 = vrot.slane %v4199_v51, 1 }
 0x5a0   :  { %v4201_v21 = vadd.f32 %v4200_v54, %v4199_v51 }
 0x5a2   :  { %4428 = vpush %v4201_v21 }
 0x5d3   :  { %s4429_s9 = spop %4428 }
 0x5d4   :  { %v4206_v18 = vstv %s4429_s9 }
 0x5d5   :  { %4208 = vst.msk [vmem:[#allocation2] sm:$0x1] %vm4207_vm12, %v4206_v18 }
 0x5d6   :  { %4223 = dma.vmem_to_hbm [thread:$0]  %s4219_s6, 16, %s4221_s8, [#allocation3]  }
 0x5d7   :  { %4524 = dma.done.wait [#allocation3], 16  }
 0x5d8   :  { %4525 = vsyncadd [#allocation3], 4294967280 }
 0x5d9   :  { %4232 = vsyncpa [#allocation3], 1 }

</bundles_post_ra>
